<compile_context>
chip_gen: v6e
topology: v6e:2x2x1
jax: 0.10.0
libtpu: 0.0.40
codegen_flags: <defaults>
</compile_context>

<pallas_src>
import jax
import jax.numpy as jnp
from jax.experimental import pallas as pl
from jax.experimental.pallas import tpu as pltpu


def _round_up(x, m):
    return (x + m - 1) // m * m


# ---------------------------------------------------------------------------
# Pallas kernels
# ---------------------------------------------------------------------------

def _conv_pool_kernel(x_ref, w_ref, b_ref, o_ref):
    """Fused 3x3 conv + folded-BN bias + ReLU + 2x2/stride-2 maxpool for one M-tile.

    x_ref : (4*TM, K)  bf16  im2col patches; the 4 pool quadrants of the TM pooled
                             output rows are stacked along the matmul M dimension.
    w_ref : (K, Cp)    bf16  HWIO-flattened conv weight, eval-mode BN scale folded in.
    b_ref : (1, Cp)    f32   folded BN bias.
    o_ref : (TM, Cp)   bf16  pooled stage-output tile.
    """
    tm = o_ref.shape[0]
    y = jnp.dot(x_ref[...], w_ref[...], preferred_element_type=jnp.float32)
    y = jnp.maximum(y + b_ref[...], 0.0)                       # fp32 epilogue on the VPU
    # 2x2 maxpool == elementwise max of the 4 quadrant row bands (static, sublane-aligned).
    out = jnp.maximum(jnp.maximum(y[0 * tm:1 * tm], y[1 * tm:2 * tm]),
                      jnp.maximum(y[2 * tm:3 * tm], y[3 * tm:4 * tm]))
    o_ref[...] = out.astype(o_ref.dtype)


def _last_stage_head_kernel(x_ref, w4_ref, b4_ref, w1_ref, b1_ref, w2_ref, b2_ref,
                            w3_ref, b3_ref, o_ref):
    """Last conv stage (conv+BN+ReLU+pool -> (Mp,512)) fused with the full classifier.

    x_ref : (4*Mp, K4) bf16 quadrant-stacked patches of the whole (padded) batch.
    o_ref : (Mp, Np)   f32  logits (Np = num_classes padded to 128).
    """
    mp = o_ref.shape[0]
    y = jnp.dot(x_ref[...], w4_ref[...], preferred_element_type=jnp.float32)
    y = jnp.maximum(y + b4_ref[...], 0.0)
    feat = jnp.maximum(jnp.maximum(y[0 * mp:1 * mp], y[1 * mp:2 * mp]),
                       jnp.maximum(y[2 * mp:3 * mp], y[3 * mp:4 * mp]))
    h = feat.astype(jnp.bfloat16)
    h = jnp.dot(h, w1_ref[...], preferred_element_type=jnp.float32) + b1_ref[...]
    h = jnp.maximum(h, 0.0).astype(jnp.bfloat16)
    h = jnp.dot(h, w2_ref[...], preferred_element_type=jnp.float32) + b2_ref[...]
    h = jnp.maximum(h, 0.0).astype(jnp.bfloat16)
    o_ref[...] = jnp.dot(h, w3_ref[...], preferred_element_type=jnp.float32) + b3_ref[...]


# ---------------------------------------------------------------------------
# Glue: pool-quadrant im2col, stage wrapper, parameter init / packing
# ---------------------------------------------------------------------------

def _pick_m_tile(nm):
    """M-tiling over pooled output rows: multiple-of-8 tiles, <=32 pooled rows per
    tile (<=128 matmul rows in flight), >=2 grid steps when possible (v7x megacore)."""
    nm8 = _round_up(nm, 8)
    if nm8 <= 8:
        return nm8, nm8, 1
    tile = min(32, _round_up(nm8 // 2, 8))
    nm_pad = _round_up(nm8, tile)
    return tile, nm_pad, nm_pad // tile


def _im2col_pool_quadrants(x, kp):
    """im2col for a 3x3/pad-1 conv, rows grouped by 2x2-pool quadrant.

    x  : (N, H, W, C) bf16 with C the REAL channel count (no zero-padded channels,
         so the contraction dim carries no zero-inflation).
    kp : pad the 9*C patch dim up to this (multiple of 8).
    Returns (patches (4, N*Ho*Wo, kp) bf16, Ho, Wo); quadrant index = 2*dh + dw.
    """
    n, h, w_, c = x.shape
    assert h % 2 == 0 and w_ % 2 == 0, "MaxPool2d(2,2) would truncate odd spatial dims"
    ho, wo = h // 2, w_ // 2
    k = 9 * c
    xp = jnp.pad(x, ((0, 0), (1, 1), (1, 1), (0, 0)))
    cols = [xp[:, kh:kh + h, kw:kw + w_, :] for kh in range(3) for kw in range(3)]
    patches = jnp.concatenate(cols, axis=-1)                        # (N, H, W, 9C)
    patches = patches.reshape(n, ho, 2, wo, 2, k)
    patches = patches.transpose(2, 4, 0, 1, 3, 5).reshape(4, n * ho * wo, k)
    if kp != k:
        patches = jnp.pad(patches, ((0, 0), (0, 0), (0, kp - k)))
    return patches.astype(jnp.bfloat16), ho, wo


def conv_pool_stage(x, w_kp, bias, cin_real):
    """One fused stage: USConv2d(3x3,pad1) + USBatchNorm2d(eval) + ReLU + MaxPool2x2.

    x        : (N, H, W, C) bf16 (C may be 128-padded; only the first cin_real are used)
    w_kp     : (Kp, Cp) bf16 folded weight,  bias : (1, Cp) f32
    Returns (N, H//2, W//2, Cp) bf16 (Cp lane-padded to 128).
    """
    n = x.shape[0]
    kp, cp = w_kp.shape
    patches, ho, wo = _im2col_pool_quadrants(x[..., :cin_real], kp)
    nm = n * ho * wo
    tile, nm_pad, grid_m = _pick_m_tile(nm)
    if nm_pad != nm:
        patches = jnp.pad(patches, ((0, 0), (0, nm_pad - nm), (0, 0)))
    # Block the 4 quadrants per M-tile: grid step i reads one contiguous (4*tile, kp)
    # slab, so the kernel needs no value reshapes at all.
    patches = patches.reshape(4, grid_m, tile, kp).transpose(1, 0, 2, 3)
    patches = patches.reshape(grid_m * 4 * tile, kp)

    out = pl.pallas_call(
        _conv_pool_kernel,
        out_shape=jax.ShapeDtypeStruct((nm_pad, cp), jnp.bfloat16),
        grid=(grid_m,),
        in_specs=[
            pl.BlockSpec((4 * tile, kp), lambda i: (i, 0)),   # quadrant-stacked patches
            pl.BlockSpec((kp, cp), lambda i: (0, 0)),         # folded conv weight
            pl.BlockSpec((1, cp), lambda i: (0, 0)),          # folded BN bias
        ],
        out_specs=pl.BlockSpec((tile, cp), lambda i: (i, 0)),
        compiler_params=pltpu.CompilerParams(dimension_semantics=("parallel",)),
    )(patches, w_kp, bias)
    return out[:nm].reshape(n, ho, wo, cp)


def init_params(key, in_ch=3, num_classes=10):
    """Deterministic init matching VGG._initialize_weights (eval-mode BN).

    Weights are rounded to bf16 once so the Pallas path and the fp32 reference use
    numerically identical parameters.
    """
    cfg = [32, 64, 128, 512]    # small VGG feature config: conv-BN-ReLU-MaxPool x4
    eps = 1e-5
    convs = []
    c = in_ch
    for cout in cfg:
        key, k = jax.random.split(key)
        std = (2.0 / (cout * 3 * 3)) ** 0.5                 # kaiming_normal_(fan_out, relu)
        w = jax.random.normal(k, (3, 3, c, cout), jnp.float32) * std
        w = w.astype(jnp.bfloat16).astype(jnp.float32)
        # BN: gamma=1, beta=0, running_mean=0, running_var=1; conv bias = 0.
        bn_scale = jnp.full((cout,), 1.0 / (1.0 + eps) ** 0.5, jnp.float32)
        bn_bias = jnp.zeros((cout,), jnp.float32)
        convs.append((w, bn_scale, bn_bias))
        c = cout

    fcs = []
    for din, dout in [(512, 512), (512, 512), (512, num_classes)]:
        key, k = jax.random.split(key)
        w = jax.random.normal(k, (din, dout), jnp.float32) * 0.01   # normal(0, 0.01)
        w = w.astype(jnp.bfloat16).astype(jnp.float32)
        b = jnp.zeros((dout,), jnp.float32)                         # constant_(0)
        fcs.append((w, b))
    return {"convs": convs, "fcs": fcs}


def pack_params(params):
    """Fold BN scale into the conv weights, flatten to (K, Cp) with K = 9*cin_real,
    lane-pad Cout (and classifier N) to 128, cast MXU operands to bf16.

    Returns (packed arrays, static per-stage (cin_real, cout_real) metadata).
    """
    packed_convs, meta = [], []
    for (w, s, b) in params["convs"]:
        _, _, cin, cout = w.shape
        cp = _round_up(cout, 128)
        k = 9 * cin
        kp = _round_up(k, 8)
        wf = (w * s).reshape(k, cout)                       # fold BN scale in fp32
        wf = jnp.pad(wf, ((0, kp - k), (0, cp - cout)))
        bp = jnp.zeros((1, cp), jnp.float32).at[0, :cout].set(b)
        packed_convs.append((wf.astype(jnp.bfloat16), bp))
        meta.append((cin, cout))

    (w1, b1), (w2, b2), (w3, b3) = params["fcs"]
    npad = _round_up(w3.shape[1], 128)                      # classifier N: 10 -> 128
    w3p = jnp.pad(w3, ((0, 0), (0, npad - w3.shape[1])))
    b3p = jnp.zeros((1, npad), jnp.float32).at[0, :w3.shape[1]].set(b3)
    packed_fcs = (w1.astype(jnp.bfloat16), b1.reshape(1, -1),
                  w2.astype(jnp.bfloat16), b2.reshape(1, -1),
                  w3p.astype(jnp.bfloat16), b3p)
    return {"convs": packed_convs, "fcs": packed_fcs}, tuple(meta)


def vgg_forward(x_nchw, packed, meta, num_classes):
    """meta is a static tuple of per-stage (cin_real, cout_real)."""
    x = jnp.transpose(x_nchw, (0, 2, 3, 1)).astype(jnp.bfloat16)   # NCHW -> NHWC, bf16
    convs = packed["convs"]

    # All but the last conv stage: one fused conv+BN+ReLU+pool call each.
    for (wf, bias), (cin, _cout) in zip(convs[:-1], meta[:-1]):
        x = conv_pool_stage(x, wf, bias, cin)

    # Last conv stage fused with the whole classifier head (single pallas_call).
    w4, b4 = convs[-1]
    cin4, _ = meta[-1]
    kp4 = w4.shape[0]
    n = x.shape[0]
    patches, ho, wo = _im2col_pool_quadrants(x[..., :cin4], kp4)
    assert ho == 1 and wo == 1, (
        "classifier flatten only matches torch.flatten(x,1) for a 1x1 feature map")
    mp = _round_up(n, 8)                                    # sublane-pad the batch rows
    if mp != n:
        patches = jnp.pad(patches, ((0, 0), (0, mp - n), (0, 0)))
    patches = patches.reshape(4 * mp, kp4)                  # quadrant-major stack

    w1, b1, w2, b2, w3p, b3p = packed["fcs"]
    npad = w3p.shape[1]
    out = pl.pallas_call(
        _last_stage_head_kernel,
        out_shape=jax.ShapeDtypeStruct((mp, npad), jnp.float32),
        grid=(1,),
        in_specs=[
            pl.BlockSpec((4 * mp, kp4), lambda i: (0, 0)),
            pl.BlockSpec(w4.shape, lambda i: (0, 0)),
            pl.BlockSpec(b4.shape, lambda i: (0, 0)),
            pl.BlockSpec(w1.shape, lambda i: (0, 0)),
            pl.BlockSpec(b1.shape, lambda i: (0, 0)),
            pl.BlockSpec(w2.shape, lambda i: (0, 0)),
            pl.BlockSpec(b2.shape, lambda i: (0, 0)),
            pl.BlockSpec(w3p.shape, lambda i: (0, 0)),
            pl.BlockSpec(b3p.shape, lambda i: (0, 0)),
        ],
        out_specs=pl.BlockSpec((mp, npad), lambda i: (0, 0)),
        compiler_params=pltpu.CompilerParams(dimension_semantics=("arbitrary",)),
    )(patches, w4, b4, w1, b1, w2, b2, w3p, b3p)
    # TODO(synk): nn.Dropout has no inference-time effect; train-mode dropout omitted.
    return out[:n, :num_classes]


# Pure-JAX fp32 reference (sanity check only; uses the unpadded logical weights).
def reference_forward(x_nhwc, params):
    x = x_nhwc
    for (w, scale, bias) in params["convs"]:
        y = jax.lax.conv_general_dilated(
            x, w, (1, 1), "SAME", dimension_numbers=("NHWC", "HWIO", "NHWC"))
        x = jnp.maximum(y * scale + bias, 0.0)
        x = jax.lax.reduce_window(x, -jnp.inf, jax.lax.max,
                                  (1, 2, 2, 1), (1, 2, 2, 1), "VALID")
    x = x.reshape(x.shape[0], -1)
    (w1, b1), (w2, b2), (w3, b3) = params["fcs"]
    x = jnp.maximum(x @ w1 + b1, 0.0)
    x = jnp.maximum(x @ w2 + b2, 0.0)
    return x @ w3 + b3


if __name__ == "__main__":
    key = jax.random.PRNGKey(0)
    k_param, k_x = jax.random.split(key)
    params = init_params(k_param, in_ch=3, num_classes=10)
    packed, meta = pack_params(params)

    # Small NCHW input consistent with the module (batch=2, C=3, 16x16 -> 1x1x512 features).
    x = jax.random.normal(k_x, (2, 3, 16, 16), jnp.float32)

    fwd = jax.jit(vgg_forward, static_argnums=(2, 3))
    out = jax.block_until_ready(fwd(x, packed, meta, 10))
    assert out.shape == (2, 10), out.shape

    ref = jax.block_until_ready(reference_forward(jnp.transpose(x, (0, 2, 3, 1)), params))
    err = float(jnp.max(jnp.abs(out - ref)))
    ref_scale = float(jnp.max(jnp.abs(ref)))
    # bf16 MXU inputs vs fp32 reference: allow a few % of the logit scale.
    assert err <= 0.1 * ref_scale + 1e-3, ("mismatch", err, ref_scale)

    print("KERNEL_OK")
</pallas_src>

<mosaic_0001>
module attributes {stable_mosaic.version = 11 : i64} {
  func.func @_conv_pool_kernel(%arg0: i32, %arg1: memref<128x32xbf16, #tpu.memory_space<vmem>>, %arg2: memref<32x128xbf16, #tpu.memory_space<vmem>>, %arg3: memref<1x128xf32, #tpu.memory_space<vmem>>, %arg4: memref<32x128xbf16, #tpu.memory_space<vmem>>) attributes {dimension_semantics = [#tpu.dimension_semantics<parallel>], iteration_bounds = array<i64: 4>, scalar_prefetch = 0 : i64, scratch_operands = 0 : i64, tpu.core_type = #tpu.core_type<tc>, window_params = [{transform_indices = @transform_0, window_bounds = array<i64: 128, 32>}, {pipeline_mode = #tpu.pipeline_mode<synchronous>, transform_indices = @transform_1, window_bounds = array<i64: 32, 128>}, {pipeline_mode = #tpu.pipeline_mode<synchronous>, transform_indices = @transform_2, window_bounds = array<i64: 1, 128>}, {transform_indices = @transform_3, window_bounds = array<i64: 32, 128>}]} {
    %c0 = arith.constant 0 : index
    %c0_0 = arith.constant 0 : index
    %0 = vector.load %arg1[%c0, %c0_0] : memref<128x32xbf16, #tpu.memory_space<vmem>>, vector<128x32xbf16>
    %c0_1 = arith.constant 0 : index
    %c0_2 = arith.constant 0 : index
    %1 = vector.load %arg2[%c0_1, %c0_2] : memref<32x128xbf16, #tpu.memory_space<vmem>>, vector<32x128xbf16>
    %cst = arith.constant dense<0.000000e+00> : vector<128x128xf32>
    %2 = tpu.matmul %0, %1, %cst {dimension_numbers = #tpu.dot_dimension_numbers<[1], [0], [0], [1], [0, 0, 1, 1], [], []>} : vector<128x32xbf16>, vector<32x128xbf16>, vector<128x128xf32> -> vector<128x128xf32>
    %c0_3 = arith.constant 0 : index
    %c0_4 = arith.constant 0 : index
    %3 = vector.load %arg3[%c0_3, %c0_4] : memref<1x128xf32, #tpu.memory_space<vmem>>, vector<1x128xf32>
    %4 = vector.broadcast %3 : vector<1x128xf32> to vector<128x128xf32>
    %5 = arith.addf %2, %4 : vector<128x128xf32>
    %cst_5 = arith.constant 0.000000e+00 : f32
    %6 = vector.broadcast %cst_5 : f32 to vector<128x128xf32>
    %7 = arith.maximumf %5, %6 : vector<128x128xf32>
    %8 = vector.extract_strided_slice %7 {offsets = [0, 0], sizes = [32, 128], strides = [1, 1]} : vector<128x128xf32> to vector<32x128xf32>
    %9 = vector.extract_strided_slice %7 {offsets = [32, 0], sizes = [32, 128], strides = [1, 1]} : vector<128x128xf32> to vector<32x128xf32>
    %10 = arith.maximumf %8, %9 : vector<32x128xf32>
    %11 = vector.extract_strided_slice %7 {offsets = [64, 0], sizes = [32, 128], strides = [1, 1]} : vector<128x128xf32> to vector<32x128xf32>
    %12 = vector.extract_strided_slice %7 {offsets = [96, 0], sizes = [32, 128], strides = [1, 1]} : vector<128x128xf32> to vector<32x128xf32>
    %13 = arith.maximumf %11, %12 : vector<32x128xf32>
    %14 = arith.maximumf %10, %13 : vector<32x128xf32>
    %15 = arith.truncf %14 : vector<32x128xf32> to vector<32x128xbf16>
    %c0_6 = arith.constant 0 : index
    %c0_7 = arith.constant 0 : index
    %16 = vector.load %arg4[%c0_6, %c0_7] : memref<32x128xbf16, #tpu.memory_space<vmem>>, vector<32x128xbf16>
    tpu.vector_store %arg4[%c0_6, %c0_7], %15 {strides = array<i32>} : memref<32x128xbf16, #tpu.memory_space<vmem>>, vector<32x128xbf16>,
    return
  }
  func.func @transform_0(%arg0: i32) -> (i32, i32) {
    %c0_i32 = arith.constant 0 : i32
    %c0_i32_0 = arith.constant 0 : i32
    return %arg0, %c0_i32 : i32, i32
  }
  func.func @transform_1(%arg0: i32) -> (i32, i32) {
    %c0_i32 = arith.constant 0 : i32
    %c0_i32_0 = arith.constant 0 : i32
    %c0_i32_1 = arith.constant 0 : i32
    return %c0_i32, %c0_i32_0 : i32, i32
  }
  func.func @transform_2(%arg0: i32) -> (i32, i32) {
    %c0_i32 = arith.constant 0 : i32
    %c0_i32_0 = arith.constant 0 : i32
    %c0_i32_1 = arith.constant 0 : i32
    return %c0_i32, %c0_i32_0 : i32, i32
  }
  func.func @transform_3(%arg0: i32) -> (i32, i32) {
    %c0_i32 = arith.constant 0 : i32
    %c0_i32_0 = arith.constant 0 : i32
    return %arg0, %c0_i32 : i32, i32
  }
}

module attributes {stable_mosaic.version = 11 : i64} {
  func.func @_conv_pool_kernel(%arg0: i32, %arg1: memref<64x288xbf16, #tpu.memory_space<vmem>>, %arg2: memref<288x128xbf16, #tpu.memory_space<vmem>>, %arg3: memref<1x128xf32, #tpu.memory_space<vmem>>, %arg4: memref<16x128xbf16, #tpu.memory_space<vmem>>) attributes {dimension_semantics = [#tpu.dimension_semantics<parallel>], iteration_bounds = array<i64: 2>, scalar_prefetch = 0 : i64, scratch_operands = 0 : i64, tpu.core_type = #tpu.core_type<tc>, window_params = [{transform_indices = @transform_0, window_bounds = array<i64: 64, 288>}, {pipeline_mode = #tpu.pipeline_mode<synchronous>, transform_indices = @transform_1, window_bounds = array<i64: 288, 128>}, {pipeline_mode = #tpu.pipeline_mode<synchronous>, transform_indices = @transform_2, window_bounds = array<i64: 1, 128>}, {transform_indices = @transform_3, window_bounds = array<i64: 16, 128>}]} {
    %c0 = arith.constant 0 : index
    %c0_0 = arith.constant 0 : index
    %0 = vector.load %arg1[%c0, %c0_0] : memref<64x288xbf16, #tpu.memory_space<vmem>>, vector<64x288xbf16>
    %c0_1 = arith.constant 0 : index
    %c0_2 = arith.constant 0 : index
    %1 = vector.load %arg2[%c0_1, %c0_2] : memref<288x128xbf16, #tpu.memory_space<vmem>>, vector<288x128xbf16>
    %cst = arith.constant dense<0.000000e+00> : vector<64x128xf32>
    %2 = tpu.matmul %0, %1, %cst {dimension_numbers = #tpu.dot_dimension_numbers<[1], [0], [0], [1], [0, 0, 1, 1], [], []>} : vector<64x288xbf16>, vector<288x128xbf16>, vector<64x128xf32> -> vector<64x128xf32>
    %c0_3 = arith.constant 0 : index
    %c0_4 = arith.constant 0 : index
    %3 = vector.load %arg3[%c0_3, %c0_4] : memref<1x128xf32, #tpu.memory_space<vmem>>, vector<1x128xf32>
    %4 = vector.broadcast %3 : vector<1x128xf32> to vector<64x128xf32>
    %5 = arith.addf %2, %4 : vector<64x128xf32>
    %cst_5 = arith.constant 0.000000e+00 : f32
    %6 = vector.broadcast %cst_5 : f32 to vector<64x128xf32>
    %7 = arith.maximumf %5, %6 : vector<64x128xf32>
    %8 = vector.extract_strided_slice %7 {offsets = [0, 0], sizes = [16, 128], strides = [1, 1]} : vector<64x128xf32> to vector<16x128xf32>
    %9 = vector.extract_strided_slice %7 {offsets = [16, 0], sizes = [16, 128], strides = [1, 1]} : vector<64x128xf32> to vector<16x128xf32>
    %10 = arith.maximumf %8, %9 : vector<16x128xf32>
    %11 = vector.extract_strided_slice %7 {offsets = [32, 0], sizes = [16, 128], strides = [1, 1]} : vector<64x128xf32> to vector<16x128xf32>
    %12 = vector.extract_strided_slice %7 {offsets = [48, 0], sizes = [16, 128], strides = [1, 1]} : vector<64x128xf32> to vector<16x128xf32>
    %13 = arith.maximumf %11, %12 : vector<16x128xf32>
    %14 = arith.maximumf %10, %13 : vector<16x128xf32>
    %15 = arith.truncf %14 : vector<16x128xf32> to vector<16x128xbf16>
    %c0_6 = arith.constant 0 : index
    %c0_7 = arith.constant 0 : index
    %16 = vector.load %arg4[%c0_6, %c0_7] : memref<16x128xbf16, #tpu.memory_space<vmem>>, vector<16x128xbf16>
    tpu.vector_store %arg4[%c0_6, %c0_7], %15 {strides = array<i32>} : memref<16x128xbf16, #tpu.memory_space<vmem>>, vector<16x128xbf16>,
    return
  }
  func.func @transform_0(%arg0: i32) -> (i32, i32) {
    %c0_i32 = arith.constant 0 : i32
    %c0_i32_0 = arith.constant 0 : i32
    return %arg0, %c0_i32 : i32, i32
  }
  func.func @transform_1(%arg0: i32) -> (i32, i32) {
    %c0_i32 = arith.constant 0 : i32
    %c0_i32_0 = arith.constant 0 : i32
    %c0_i32_1 = arith.constant 0 : i32
    return %c0_i32, %c0_i32_0 : i32, i32
  }
  func.func @transform_2(%arg0: i32) -> (i32, i32) {
    %c0_i32 = arith.constant 0 : i32
    %c0_i32_0 = arith.constant 0 : i32
    %c0_i32_1 = arith.constant 0 : i32
    return %c0_i32, %c0_i32_0 : i32, i32
  }
  func.func @transform_3(%arg0: i32) -> (i32, i32) {
    %c0_i32 = arith.constant 0 : i32
    %c0_i32_0 = arith.constant 0 : i32
    return %arg0, %c0_i32 : i32, i32
  }
}

module attributes {stable_mosaic.version = 11 : i64} {
  func.func @_conv_pool_kernel(%arg0: i32, %arg1: memref<32x576xbf16, #tpu.memory_space<vmem>>, %arg2: memref<576x128xbf16, #tpu.memory_space<vmem>>, %arg3: memref<1x128xf32, #tpu.memory_space<vmem>>, %arg4: memref<8x128xbf16, #tpu.memory_space<vmem>>) attributes {dimension_semantics = [#tpu.dimension_semantics<parallel>], iteration_bounds = array<i64: 1>, scalar_prefetch = 0 : i64, scratch_operands = 0 : i64, tpu.core_type = #tpu.core_type<tc>, window_params = [{transform_indices = @transform_0, window_bounds = array<i64: 32, 576>}, {pipeline_mode = #tpu.pipeline_mode<synchronous>, transform_indices = @transform_1, window_bounds = array<i64: 576, 128>}, {pipeline_mode = #tpu.pipeline_mode<synchronous>, transform_indices = @transform_2, window_bounds = array<i64: 1, 128>}, {transform_indices = @transform_3, window_bounds = array<i64: 8, 128>}]} {
    %c0 = arith.constant 0 : index
    %c0_0 = arith.constant 0 : index
    %0 = vector.load %arg1[%c0, %c0_0] : memref<32x576xbf16, #tpu.memory_space<vmem>>, vector<32x576xbf16>
    %c0_1 = arith.constant 0 : index
    %c0_2 = arith.constant 0 : index
    %1 = vector.load %arg2[%c0_1, %c0_2] : memref<576x128xbf16, #tpu.memory_space<vmem>>, vector<576x128xbf16>
    %cst = arith.constant dense<0.000000e+00> : vector<32x128xf32>
    %2 = tpu.matmul %0, %1, %cst {dimension_numbers = #tpu.dot_dimension_numbers<[1], [0], [0], [1], [0, 0, 1, 1], [], []>} : vector<32x576xbf16>, vector<576x128xbf16>, vector<32x128xf32> -> vector<32x128xf32>
    %c0_3 = arith.constant 0 : index
    %c0_4 = arith.constant 0 : index
    %3 = vector.load %arg3[%c0_3, %c0_4] : memref<1x128xf32, #tpu.memory_space<vmem>>, vector<1x128xf32>
    %4 = vector.broadcast %3 : vector<1x128xf32> to vector<32x128xf32>
    %5 = arith.addf %2, %4 : vector<32x128xf32>
    %cst_5 = arith.constant 0.000000e+00 : f32
    %6 = vector.broadcast %cst_5 : f32 to vector<32x128xf32>
    %7 = arith.maximumf %5, %6 : vector<32x128xf32>
    %8 = vector.extract_strided_slice %7 {offsets = [0, 0], sizes = [8, 128], strides = [1, 1]} : vector<32x128xf32> to vector<8x128xf32>
    %9 = vector.extract_strided_slice %7 {offsets = [8, 0], sizes = [8, 128], strides = [1, 1]} : vector<32x128xf32> to vector<8x128xf32>
    %10 = arith.maximumf %8, %9 : vector<8x128xf32>
    %11 = vector.extract_strided_slice %7 {offsets = [16, 0], sizes = [8, 128], strides = [1, 1]} : vector<32x128xf32> to vector<8x128xf32>
    %12 = vector.extract_strided_slice %7 {offsets = [24, 0], sizes = [8, 128], strides = [1, 1]} : vector<32x128xf32> to vector<8x128xf32>
    %13 = arith.maximumf %11, %12 : vector<8x128xf32>
    %14 = arith.maximumf %10, %13 : vector<8x128xf32>
    %15 = arith.truncf %14 : vector<8x128xf32> to vector<8x128xbf16>
    %c0_6 = arith.constant 0 : index
    %c0_7 = arith.constant 0 : index
    %16 = vector.load %arg4[%c0_6, %c0_7] : memref<8x128xbf16, #tpu.memory_space<vmem>>, vector<8x128xbf16>
    tpu.vector_store %arg4[%c0_6, %c0_7], %15 {strides = array<i32>} : memref<8x128xbf16, #tpu.memory_space<vmem>>, vector<8x128xbf16>,
    return
  }
  func.func @transform_0(%arg0: i32) -> (i32, i32) {
    %c0_i32 = arith.constant 0 : i32
    %c0_i32_0 = arith.constant 0 : i32
    return %arg0, %c0_i32 : i32, i32
  }
  func.func @transform_1(%arg0: i32) -> (i32, i32) {
    %c0_i32 = arith.constant 0 : i32
    %c0_i32_0 = arith.constant 0 : i32
    %c0_i32_1 = arith.constant 0 : i32
    return %c0_i32, %c0_i32_0 : i32, i32
  }
  func.func @transform_2(%arg0: i32) -> (i32, i32) {
    %c0_i32 = arith.constant 0 : i32
    %c0_i32_0 = arith.constant 0 : i32
    %c0_i32_1 = arith.constant 0 : i32
    return %c0_i32, %c0_i32_0 : i32, i32
  }
  func.func @transform_3(%arg0: i32) -> (i32, i32) {
    %c0_i32 = arith.constant 0 : i32
    %c0_i32_0 = arith.constant 0 : i32
    return %arg0, %c0_i32 : i32, i32
  }
}

module attributes {stable_mosaic.version = 11 : i64} {
  func.func @_last_stage_head_kernel(%arg0: i32, %arg1: memref<32x1152xbf16, #tpu.memory_space<vmem>>, %arg2: memref<1152x512xbf16, #tpu.memory_space<vmem>>, %arg3: memref<1x512xf32, #tpu.memory_space<vmem>>, %arg4: memref<512x512xbf16, #tpu.memory_space<vmem>>, %arg5: memref<1x512xf32, #tpu.memory_space<vmem>>, %arg6: memref<512x512xbf16, #tpu.memory_space<vmem>>, %arg7: memref<1x512xf32, #tpu.memory_space<vmem>>, %arg8: memref<512x128xbf16, #tpu.memory_space<vmem>>, %arg9: memref<1x128xf32, #tpu.memory_space<vmem>>, %arg10: memref<8x128xf32, #tpu.memory_space<vmem>>) attributes {dimension_semantics = [#tpu.dimension_semantics<arbitrary>], iteration_bounds = array<i64: 1>, scalar_prefetch = 0 : i64, scratch_operands = 0 : i64, tpu.core_type = #tpu.core_type<tc>, window_params = [{pipeline_mode = #tpu.pipeline_mode<synchronous>, transform_indices = @transform_0, window_bounds = array<i64: 32, 1152>}, {pipeline_mode = #tpu.pipeline_mode<synchronous>, transform_indices = @transform_1, window_bounds = array<i64: 1152, 512>}, {pipeline_mode = #tpu.pipeline_mode<synchronous>, transform_indices = @transform_2, window_bounds = array<i64: 1, 512>}, {pipeline_mode = #tpu.pipeline_mode<synchronous>, transform_indices = @transform_3, window_bounds = array<i64: 512, 512>}, {pipeline_mode = #tpu.pipeline_mode<synchronous>, transform_indices = @transform_4, window_bounds = array<i64: 1, 512>}, {pipeline_mode = #tpu.pipeline_mode<synchronous>, transform_indices = @transform_5, window_bounds = array<i64: 512, 512>}, {pipeline_mode = #tpu.pipeline_mode<synchronous>, transform_indices = @transform_6, window_bounds = array<i64: 1, 512>}, {pipeline_mode = #tpu.pipeline_mode<synchronous>, transform_indices = @transform_7, window_bounds = array<i64: 512, 128>}, {pipeline_mode = #tpu.pipeline_mode<synchronous>, transform_indices = @transform_8, window_bounds = array<i64: 1, 128>}, {pipeline_mode = #tpu.pipeline_mode<synchronous>, transform_indices = @transform_9, window_bounds = array<i64: 8, 128>}]} {
    %c0 = arith.constant 0 : index
    %c0_0 = arith.constant 0 : index
    %0 = vector.load %arg1[%c0, %c0_0] : memref<32x1152xbf16, #tpu.memory_space<vmem>>, vector<32x1152xbf16>
    %c0_1 = arith.constant 0 : index
    %c0_2 = arith.constant 0 : index
    %1 = vector.load %arg2[%c0_1, %c0_2] : memref<1152x512xbf16, #tpu.memory_space<vmem>>, vector<1152x512xbf16>
    %cst = arith.constant dense<0.000000e+00> : vector<32x512xf32>
    %2 = tpu.matmul %0, %1, %cst {dimension_numbers = #tpu.dot_dimension_numbers<[1], [0], [0], [1], [0, 0, 1, 1], [], []>} : vector<32x1152xbf16>, vector<1152x512xbf16>, vector<32x512xf32> -> vector<32x512xf32>
    %c0_3 = arith.constant 0 : index
    %c0_4 = arith.constant 0 : index
    %3 = vector.load %arg3[%c0_3, %c0_4] : memref<1x512xf32, #tpu.memory_space<vmem>>, vector<1x512xf32>
    %4 = vector.broadcast %3 : vector<1x512xf32> to vector<32x512xf32>
    %5 = arith.addf %2, %4 : vector<32x512xf32>
    %cst_5 = arith.constant 0.000000e+00 : f32
    %6 = vector.broadcast %cst_5 : f32 to vector<32x512xf32>
    %7 = arith.maximumf %5, %6 : vector<32x512xf32>
    %8 = vector.extract_strided_slice %7 {offsets = [0, 0], sizes = [8, 512], strides = [1, 1]} : vector<32x512xf32> to vector<8x512xf32>
    %9 = vector.extract_strided_slice %7 {offsets = [8, 0], sizes = [8, 512], strides = [1, 1]} : vector<32x512xf32> to vector<8x512xf32>
    %10 = arith.maximumf %8, %9 : vector<8x512xf32>
    %11 = vector.extract_strided_slice %7 {offsets = [16, 0], sizes = [8, 512], strides = [1, 1]} : vector<32x512xf32> to vector<8x512xf32>
    %12 = vector.extract_strided_slice %7 {offsets = [24, 0], sizes = [8, 512], strides = [1, 1]} : vector<32x512xf32> to vector<8x512xf32>
    %13 = arith.maximumf %11, %12 : vector<8x512xf32>
    %14 = arith.maximumf %10, %13 : vector<8x512xf32>
    %15 = arith.truncf %14 : vector<8x512xf32> to vector<8x512xbf16>
    %c0_6 = arith.constant 0 : index
    %c0_7 = arith.constant 0 : index
    %16 = vector.load %arg4[%c0_6, %c0_7] : memref<512x512xbf16, #tpu.memory_space<vmem>>, vector<512x512xbf16>
    %cst_8 = arith.constant dense<0.000000e+00> : vector<8x512xf32>
    %17 = tpu.matmul %15, %16, %cst_8 {dimension_numbers = #tpu.dot_dimension_numbers<[1], [0], [0], [1], [0, 0, 1, 1], [], []>} : vector<8x512xbf16>, vector<512x512xbf16>, vector<8x512xf32> -> vector<8x512xf32>
    %c0_9 = arith.constant 0 : index
    %c0_10 = arith.constant 0 : index
    %18 = vector.load %arg5[%c0_9, %c0_10] : memref<1x512xf32, #tpu.memory_space<vmem>>, vector<1x512xf32>
    %19 = vector.broadcast %18 : vector<1x512xf32> to vector<8x512xf32>
    %20 = arith.addf %17, %19 : vector<8x512xf32>
    %cst_11 = arith.constant 0.000000e+00 : f32
    %21 = vector.broadcast %cst_11 : f32 to vector<8x512xf32>
    %22 = arith.maximumf %20, %21 : vector<8x512xf32>
    %23 = arith.truncf %22 : vector<8x512xf32> to vector<8x512xbf16>
    %c0_12 = arith.constant 0 : index
    %c0_13 = arith.constant 0 : index
    %24 = vector.load %arg6[%c0_12, %c0_13] : memref<512x512xbf16, #tpu.memory_space<vmem>>, vector<512x512xbf16>
    %cst_14 = arith.constant dense<0.000000e+00> : vector<8x512xf32>
    %25 = tpu.matmul %23, %24, %cst_14 {dimension_numbers = #tpu.dot_dimension_numbers<[1], [0], [0], [1], [0, 0, 1, 1], [], []>} : vector<8x512xbf16>, vector<512x512xbf16>, vector<8x512xf32> -> vector<8x512xf32>
    %c0_15 = arith.constant 0 : index
    %c0_16 = arith.constant 0 : index
    %26 = vector.load %arg7[%c0_15, %c0_16] : memref<1x512xf32, #tpu.memory_space<vmem>>, vector<1x512xf32>
    %27 = vector.broadcast %26 : vector<1x512xf32> to vector<8x512xf32>
    %28 = arith.addf %25, %27 : vector<8x512xf32>
    %cst_17 = arith.constant 0.000000e+00 : f32
    %29 = vector.broadcast %cst_17 : f32 to vector<8x512xf32>
    %30 = arith.maximumf %28, %29 : vector<8x512xf32>
    %31 = arith.truncf %30 : vector<8x512xf32> to vector<8x512xbf16>
    %c0_18 = arith.constant 0 : index
    %c0_19 = arith.constant 0 : index
    %32 = vector.load %arg8[%c0_18, %c0_19] : memref<512x128xbf16, #tpu.memory_space<vmem>>, vector<512x128xbf16>
    %cst_20 = arith.constant dense<0.000000e+00> : vector<8x128xf32>
    %33 = tpu.matmul %31, %32, %cst_20 {dimension_numbers = #tpu.dot_dimension_numbers<[1], [0], [0], [1], [0, 0, 1, 1], [], []>} : vector<8x512xbf16>, vector<512x128xbf16>, vector<8x128xf32> -> vector<8x128xf32>
    %c0_21 = arith.constant 0 : index
    %c0_22 = arith.constant 0 : index
    %34 = vector.load %arg9[%c0_21, %c0_22] : memref<1x128xf32, #tpu.memory_space<vmem>>, vector<1x128xf32>
    %35 = vector.broadcast %34 : vector<1x128xf32> to vector<8x128xf32>
    %36 = arith.addf %33, %35 : vector<8x128xf32>
    %c0_23 = arith.constant 0 : index
    %c0_24 = arith.constant 0 : index
    %37 = vector.load %arg10[%c0_23, %c0_24] : memref<8x128xf32, #tpu.memory_space<vmem>>, vector<8x128xf32>
    tpu.vector_store %arg10[%c0_23, %c0_24], %36 {strides = array<i32>} : memref<8x128xf32, #tpu.memory_space<vmem>>, vector<8x128xf32>,
    return
  }
  func.func @transform_0(%arg0: i32) -> (i32, i32) {
    %c0_i32 = arith.constant 0 : i32
    %c0_i32_0 = arith.constant 0 : i32
    %c0_i32_1 = arith.constant 0 : i32
    return %c0_i32, %c0_i32_0 : i32, i32
  }
  func.func @transform_1(%arg0: i32) -> (i32, i32) {
    %c0_i32 = arith.constant 0 : i32
    %c0_i32_0 = arith.constant 0 : i32
    %c0_i32_1 = arith.constant 0 : i32
    return %c0_i32, %c0_i32_0 : i32, i32
  }
  func.func @transform_2(%arg0: i32) -> (i32, i32) {
    %c0_i32 = arith.constant 0 : i32
    %c0_i32_0 = arith.constant 0 : i32
    %c0_i32_1 = arith.constant 0 : i32
    return %c0_i32, %c0_i32_0 : i32, i32
  }
  func.func @transform_3(%arg0: i32) -> (i32, i32) {
    %c0_i32 = arith.constant 0 : i32
    %c0_i32_0 = arith.constant 0 : i32
    %c0_i32_1 = arith.constant 0 : i32
    return %c0_i32, %c0_i32_0 : i32, i32
  }
  func.func @transform_4(%arg0: i32) -> (i32, i32) {
    %c0_i32 = arith.constant 0 : i32
    %c0_i32_0 = arith.constant 0 : i32
    %c0_i32_1 = arith.constant 0 : i32
    return %c0_i32, %c0_i32_0 : i32, i32
  }
  func.func @transform_5(%arg0: i32) -> (i32, i32) {
    %c0_i32 = arith.constant 0 : i32
    %c0_i32_0 = arith.constant 0 : i32
    %c0_i32_1 = arith.constant 0 : i32
    return %c0_i32, %c0_i32_0 : i32, i32
  }
  func.func @transform_6(%arg0: i32) -> (i32, i32) {
    %c0_i32 = arith.constant 0 : i32
    %c0_i32_0 = arith.constant 0 : i32
    %c0_i32_1 = arith.constant 0 : i32
    return %c0_i32, %c0_i32_0 : i32, i32
  }
  func.func @transform_7(%arg0: i32) -> (i32, i32) {
    %c0_i32 = arith.constant 0 : i32
    %c0_i32_0 = arith.constant 0 : i32
    %c0_i32_1 = arith.constant 0 : i32
    return %c0_i32, %c0_i32_0 : i32, i32
  }
  func.func @transform_8(%arg0: i32) -> (i32, i32) {
    %c0_i32 = arith.constant 0 : i32
    %c0_i32_0 = arith.constant 0 : i32
    %c0_i32_1 = arith.constant 0 : i32
    return %c0_i32, %c0_i32_0 : i32, i32
  }
  func.func @transform_9(%arg0: i32) -> (i32, i32) {
    %c0_i32 = arith.constant 0 : i32
    %c0_i32_0 = arith.constant 0 : i32
    %c0_i32_1 = arith.constant 0 : i32
    return %c0_i32, %c0_i32_0 : i32, i32
  }
}

</mosaic_0001>

<bundles_post_ra>
// kernel: vgg_forward.4
= control target key start
LH: loop header
LB: loop body
LE: loop exit
PB: predicated region body
PF: predicated region fallthrough
CT: control target
= control target key end

     0   :  { %s609_s12 = smov 0   ;;  %s648_s0 = inlined_call_operand.vmem [shape: bf16[512,32], index: 0, kind: input, shape index: {}]   ;;  %s649_s1 = inlined_call_operand.vmem [shape: bf16[32,128], index: 1, kind: input, shape index: {}]   ;;  %s650_s2 = inlined_call_operand.vmem [shape: f32[1,128], index: 2, kind: input, shape index: {}]   ;;  %s651_s3 = inlined_call_operand.vmem [shape: bf16[128,128], index: 3, kind: output, shape index: {}]  }
   0x1 LB: > { %s480_s13 = sadd.s32 4294967295, %s587_s12   ;;  %p484_p0 = scmp.ge.s32.totalorder %s587_s12, 1  ;;  %s587_s12 = sphi %s609_s12, %s13_s12  }
   0x2   : > { %p138_p1 = scmp.lt.s32.totalorder %s587_s12, 5 }
   0x4   : > { %p139_p2 = pnand %p484_p0, %p138_p1 }
   0x5   : > { %s485_s16 = sshll.u32 (!%p139_p2), %s480_s13, 4  ;;  %s487_s25 = sshll.u32 (!%p139_p2), %s480_s13, 2 }
   0x6   : > { %142 = sbr.rel (%p139_p2) target bundleno = 238 (0xee), region = 32  ;;  %p163_p3 = scmp.lt.s32.totalorder (!%p139_p2), %s485_s16, 63 }
   0x7   : > { %p169_p4 = scmp.lt.s32.totalorder (!%p139_p2), %s487_s25, 15 }
   0xb   : > { %v571_v0 = vld [vmem:[%s649_s1 + $0x8] sm:$0xff]   ;;  %v572_v1 = vld [vmem:[%s649_s1] sm:$0xff]   ;;  %s653_s16 = smov (!%p163_p3, %s485_s16), 63  ;;  %vm254_vm0 = vcmask 261120   ;;  %s655_s25 = smov (!%p169_p4, %s487_s25), 15 }
   0xc   : > { %539 = vmatprep.subr.bf16.mxu0 %v571_v0  ;;  %559 = vmatprep.subr.bf16.mxu1 %v571_v0  ;;  %s486_s19 = sshll.u32 %s653_s16, 2  ;;  %v489_v14 = vld [vmem:[%s650_s2] ss:$0 sm:$0xff]  ;;  %s488_s26 = sshll.u32 %s655_s25, 2 }
   0xd   : > { %540 = vmatpush3.bf16.msra.mxu0 %v571_v0  ;;  %561 = vmatpush3.bf16.msra.mxu1 %v571_v0  ;;  %s166_s22 = scalar_lea.vmem %s648_s0, %s486_s19  ;;  %s172_s29 = scalar_lea.vmem %s651_s3, %s488_s26 }
   0xe   : > { %541 = vmatprep.subr.bf16.mxu0 %v572_v1  ;;  %560 = vmatprep.subr.bf16.mxu1 %v572_v1  ;;  %v573_v2 = vld [vmem:[%s166_s22] sm:$0xff]   ;;  %v575_v4 = vld [vmem:[%s166_s22 + $0x8] sm:$0xff]   ;;  %v577_v6 = vld [vmem:[%s166_s22 + $0x10] sm:$0xff]  }
   0xf   : > { %v574_v3 = vld [vmem:[%s166_s22 + $0x20] sm:$0xff]   ;;  %543 = vmatprep.mubr.msk.bf16.mxu0 %vm254_vm0, %v573_v2  ;;  %v576_v5 = vld [vmem:[%s166_s22 + $0x28] sm:$0xff]   ;;  %v578_v7 = vld [vmem:[%s166_s22 + $0x30] sm:$0xff]  }
  0x10   : > { %551 = vmatprep.mubr.msk.bf16.mxu1 %vm254_vm0, %v574_v3  ;;  %v579_v8 = vld [vmem:[%s166_s22 + $0x18] sm:$0xff]  }
  0x11   : > { %542 = vmatpush3.bf16.msra.mxu0 %v572_v1  ;;  %562 = vmatpush3.bf16.msra.mxu1 %v572_v1  ;;  %v580_v9 = vld [vmem:[%s166_s22 + $0x38] sm:$0xff]  }
  0x14   : > { %544 = vmatmul.mubr.msk.bf16.vlgmr.msra.gmra.mxu0 %vm254_vm0, %v575_v4  ;;  %552 = vmatmul.mubr.msk.bf16.vlgmr.msra.gmra.mxu1 %vm254_vm0, %v576_v5 }
  0x15   : > { %547 = vmatprep.mubr.msk.bf16.mxu0 %vm254_vm0, %v577_v6  ;;  %555 = vmatprep.mubr.msk.bf16.mxu1 %vm254_vm0, %v578_v7 }
  0x1c   : > { %548 = vmatmul.mubr.msk.bf16.gmra.mxu0 %vm254_vm0, %v579_v8  ;;  %556 = vmatmul.mubr.msk.bf16.gmra.mxu1 %vm254_vm0, %v580_v9 }
  0xd4   : > { %v545_v10 = vpop.f32.mrf.mxu0  ;;  %v553_v11 = vpop.f32.mrf.mxu1 }
  0xd5   : > { %v322_v18 = vadd.f32 %v545_v10, %v489_v14  ;;  %v354_v20 = vadd.f32 %v553_v11, %v489_v14 }
  0xd6   : > { %v313_v12 = vpop.f32.mrf.mxu0  ;;  %v345_v13 = vpop.f32.mrf.mxu1 }
  0xd7   : > { %v314_v22 = vadd.f32 %v489_v14, %v313_v12  ;;  %v346_v25 = vadd.f32 %v489_v14, %v345_v13  ;;  %v378_v28 = vmax.f32 %v322_v18, 0.0  ;;  %v386_v33 = vmax.f32 %v354_v20, 0.0 }
  0xd8   : > { %v546_v15 = vpop.f32.mrf.mxu0  ;;  %v554_v16 = vpop.f32.mrf.mxu1 }
  0xd9   : > { %v325_v29 = vadd.f32 %v546_v15, %v489_v14  ;;  %v357_v30 = vadd.f32 %v554_v16, %v489_v14  ;;  %v376_v38 = vmax.f32 %v314_v22, 0.0  ;;  %v384_v43 = vmax.f32 %v346_v25, 0.0 }
  0xda   : > { %v316_v17 = vpop.f32.mrf.mxu0  ;;  %v348_v19 = vpop.f32.mrf.mxu1 }
  0xdb   : > { %v317_v39 = vadd.f32 %v489_v14, %v316_v17  ;;  %v349_v40 = vadd.f32 %v489_v14, %v348_v19  ;;  %v379_v48 = vmax.f32 %v325_v29, 0.0  ;;  %v387_v49 = vmax.f32 %v357_v30, 0.0 }
  0xdc   : > { %v549_v21 = vpop.f32.mrf.mxu0  ;;  %v557_v24 = vpop.f32.mrf.mxu1 }
  0xdd   : > { %v338_v23 = vadd.f32 %v549_v21, %v489_v14  ;;  %v370_v26 = vadd.f32 %v557_v24, %v489_v14  ;;  %v377_v57 = vmax.f32 %v317_v39, 0.0  ;;  %v385_v58 = vmax.f32 %v349_v40, 0.0 }
  0xde   : > { %v329_v27 = vpop.f32.mrf.mxu0  ;;  %v361_v32 = vpop.f32.mrf.mxu1 }
  0xdf   : > { %v330_v31 = vadd.f32 %v489_v14, %v329_v27  ;;  %v382_v34 = vmax.f32 %v338_v23, 0.0  ;;  %v390_v35 = vmax.f32 %v370_v26, 0.0  ;;  %v362_v36 = vadd.f32 %v489_v14, %v361_v32 }
  0xe0   : > { %v550_v37 = vpop.f32.mrf.mxu0  ;;  %v558_v42 = vpop.f32.mrf.mxu1 }
  0xe1   : > { %v341_v41 = vadd.f32 %v550_v37, %v489_v14  ;;  %v380_v44 = vmax.f32 %v330_v31, 0.0  ;;  %v388_v45 = vmax.f32 %v362_v36, 0.0  ;;  %v373_v46 = vadd.f32 %v558_v42, %v489_v14 }
  0xe2   : > { %v332_v47 = vpop.f32.mrf.mxu0  ;;  %v364_v52 = vpop.f32.mrf.mxu1  ;;  %v394_v53 = vmax.f32 %v378_v28, %v382_v34  ;;  %v398_v54 = vmax.f32 %v386_v33, %v390_v35 }
  0xe3   : > { %v383_v50 = vmax.f32 %v341_v41, 0.0  ;;  %v333_v51 = vadd.f32 %v489_v14, %v332_v47  ;;  %v391_v55 = vmax.f32 %v373_v46, 0.0  ;;  %v365_v56 = vadd.f32 %v489_v14, %v364_v52 }
  0xe4   : > { %v392_v61 = vmax.f32 %v376_v38, %v380_v44  ;;  %v396_v62 = vmax.f32 %v384_v43, %v388_v45  ;;  %v402_v2 = vmax.f32 %v394_v53, %v398_v54 }
  0xe5   : > { %v395_v59 = vmax.f32 %v379_v48, %v383_v50  ;;  %v381_v60 = vmax.f32 %v333_v51, 0.0  ;;  %v399_v63 = vmax.f32 %v387_v49, %v391_v55  ;;  %v389_v0 = vmax.f32 %v365_v56, 0.0 }
  0xe6   : > { %v400_v5 = vmax.f32 %v392_v61, %v396_v62 }
  0xe7   : > { %v393_v1 = vmax.f32 %v377_v57, %v381_v60  ;;  %v403_v3 = vmax.f32 %v395_v59, %v399_v63  ;;  %v397_v4 = vmax.f32 %v385_v58, %v389_v0 }
  0xe9   : > { %v526_v6 = vpack.c.bf16 %v403_v3, %v402_v2  ;;  %v401_v7 = vmax.f32 %v393_v1, %v397_v4 }
  0xeb   : > { %528 = vst [vmem:[%s172_s29 + $0x8] sm:$0xff] %v526_v6   ;;  %v521_v8 = vpack.c.bf16 %v401_v7, %v400_v5 }
  0xed   : > { %522 = vst [vmem:[%s172_s29] sm:$0xff] %v521_v8  }
  0xee PF: > { %s13_s12 = sadd.s32 1, %s587_s12  }
  0xef   : > { %p10_p5 = scmp.ge.s32.totalorder %s13_s12, 6  }
  0xf1   :  { %12 = sbr.rel (!%p10_p5) target bundleno = 1 (0x1), region = 62 }

// kernel: vgg_forward.5
= control target key start
LH: loop header
LB: loop body
LE: loop exit
PB: predicated region body
PF: predicated region fallthrough
CT: control target
= control target key end

     0   :  { %s828_s12 = smov 0   ;;  %s924_s0 = inlined_call_operand.vmem [shape: bf16[128,288], index: 0, kind: input, shape index: {}]   ;;  %s925_s1 = inlined_call_operand.vmem [shape: bf16[288,128], index: 1, kind: input, shape index: {}]   ;;  %s926_s2 = inlined_call_operand.vmem [shape: f32[1,128], index: 2, kind: input, shape index: {}]   ;;  %s927_s3 = inlined_call_operand.vmem [shape: bf16[32,128], index: 3, kind: output, shape index: {}]  }
   0x1 LB: > { %s628_s13 = sadd.s32 4294967295, %s806_s12   ;;  %p632_p0 = scmp.ge.s32.totalorder %s806_s12, 1  ;;  %s806_s12 = sphi %s828_s12, %s13_s12  }
   0x2   : > { %p139_p1 = scmp.lt.s32.totalorder %s806_s12, 3 }
   0x4   : > { %p140_p2 = pnand %p632_p0, %p139_p1 }
   0x5   : > { %s633_s16 = sshll.u32 (!%p140_p2), %s628_s13, 3  ;;  %s635_s5 = sshll.u32 (!%p140_p2), %s628_s13, 1 }
   0x6   : > { %143 = sbr.rel (%p140_p2) target bundleno = 274 (0x112), region = 32  ;;  %p165_p3 = scmp.lt.s32.totalorder (!%p140_p2), %s633_s16, 15 }
   0x7   : > { %p172_p4 = scmp.lt.s32.totalorder (!%p140_p2), %s635_s5, 3 }
   0xb   : > { %v766_v0 = vld [vmem:[%s925_s1 + $0x78] sm:$0xff]   ;;  %v768_v2 = vld [vmem:[%s925_s1 + $0x70] sm:$0xff]   ;;  %v770_v4 = vld [vmem:[%s925_s1 + $0x68] sm:$0xff]   ;;  %s929_s16 = smov (!%p165_p3, %s633_s16), 15  ;;  %vm405_vm0 = vcmask 261120   ;;  %s931_s5 = smov (!%p172_p4, %s635_s5), 3 }
   0xc   : > { %v767_v1 = vld [vmem:[%s925_s1 + $0x38] sm:$0xff]   ;;  %683 = vmatprep.subr.bf16.mxu0 %v766_v0  ;;  %741 = vmatprep.subr.bf16.mxu1 %v766_v0  ;;  %v769_v3 = vld [vmem:[%s925_s1 + $0x30] sm:$0xff]   ;;  %v771_v5 = vld [vmem:[%s925_s1 + $0x28] sm:$0xff]   ;;  %s757_s29 = smul.u32 12, %s929_s16  ;;  %s636_s13 = sshll.u32 %s931_s5, 2 }
   0xd   : > { %684 = vmatpush3.bf16.msra.mxu0 %v767_v1  ;;  %749 = vmatpush3.bf16.msra.mxu1 %v767_v1  ;;  %v772_v6 = vld [vmem:[%s925_s1 + $0x60] sm:$0xff]   ;;  %v774_v8 = vld [vmem:[%s925_s1 + $0x58] sm:$0xff]   ;;  %v776_v10 = vld [vmem:[%s925_s1 + $0x50] sm:$0xff]   ;;  %s175_s8 = scalar_lea.vmem %s927_s3, %s636_s13 }
   0xe   : > { %685 = vmatprep.subr.bf16.mxu0 %v768_v2  ;;  %742 = vmatprep.subr.bf16.mxu1 %v768_v2  ;;  %v773_v7 = vld [vmem:[%s925_s1 + $0x20] sm:$0xff]   ;;  %s868_s9 = scalar_lea.vmem %s924_s0, %s757_s29  ;;  %v775_v9 = vld [vmem:[%s925_s1 + $0x18] sm:$0xff]   ;;  %v777_v13 = vld [vmem:[%s925_s1 + $0x10] sm:$0xff]  }
   0xf   : > { %v784_v11 = vld [vmem:[%s868_s9 + $0x4] ss:$12 sps:$4 sm:$0xff]   ;;  %v787_v12 = vld [vmem:[%s868_s9 + $0x4c] ss:$12 sps:$4 sm:$0xff]   ;;  %v785_v20 = vld [vmem:[%s868_s9 + $0x48] ss:$12 sps:$4 sm:$0xff]  }
  0x10   : > { %v778_v14 = vld [vmem:[%s925_s1 + $0x48] sm:$0xff]   ;;  %450 = vmatprep.mubr.bf16.mxu0 %v784_v11  ;;  %474 = vmatprep.mubr.bf16.mxu1 %v787_v12  ;;  %v780_v16 = vld [vmem:[%s925_s1 + $0x40] sm:$0xff]   ;;  %v798_v28 = vld [vmem:[%s868_s9 + $0x30] ss:$12 sps:$4 sm:$0xff]  }
  0x11   : > { %686 = vmatpush3.bf16.msra.mxu0 %v769_v3  ;;  %750 = vmatpush3.bf16.msra.mxu1 %v769_v3  ;;  %v779_v15 = vld [vmem:[%s925_s1 + $0x8] sm:$0xff]   ;;  %v781_v17 = vld [vmem:[%s925_s1] sm:$0xff]   ;;  %v799_v29 = vld [vmem:[%s868_s9 + $0x50] ss:$12 sps:$4 sm:$0xff]  }
  0x12   : > { %687 = vmatprep.subr.bf16.mxu0 %v770_v4  ;;  %743 = vmatprep.subr.bf16.mxu1 %v770_v4  ;;  %v788_v18 = vld [vmem:[%s925_s1 + $0x88] sm:$0xff]   ;;  %v789_v22 = vld [vmem:[%s925_s1 + $0x80] sm:$0xff]  }
  0x13   : > { %v782_v19 = vld [vmem:[%s868_s9] ss:$12 sps:$4 sm:$0xff]   ;;  %v790_v21 = vld [vmem:[%s868_s9 + $0x1c] ss:$12 sps:$4 sm:$0xff]   ;;  %v793_v24 = vld [vmem:[%s868_s9 + $0x18] ss:$12 sps:$4 sm:$0xff]  }
  0x14   : > { %v792_v23 = vld [vmem:[%s868_s9 + $0x8] ss:$12 sps:$4 sm:$0xff]   ;;  %v794_v25 = vld [vmem:[%s868_s9 + $0x20] ss:$12 sps:$4 sm:$0xff]   ;;  %v797_v27 = vld [vmem:[%s868_s9 + $0x38] ss:$12 sps:$4 sm:$0xff]  }
  0x15   : > { %688 = vmatpush3.bf16.msra.mxu0 %v771_v5  ;;  %751 = vmatpush3.bf16.msra.mxu1 %v771_v5  ;;  %v795_v26 = vld [vmem:[%s868_s9 + $0x34] ss:$12 sps:$4 sm:$0xff]  }
  0x16   : > { %689 = vmatprep.subr.bf16.mxu0 %v772_v6  ;;  %744 = vmatprep.subr.bf16.mxu1 %v772_v6  ;;  %v637_v51 = vld [vmem:[%s926_s2] ss:$0 sm:$0xff] }
  0x19   : > { %690 = vmatpush3.bf16.msra.mxu0 %v773_v7  ;;  %752 = vmatpush3.bf16.msra.mxu1 %v773_v7 }
  0x1a   : > { %691 = vmatprep.subr.bf16.mxu0 %v774_v8  ;;  %745 = vmatprep.subr.bf16.mxu1 %v774_v8 }
  0x1d   : > { %692 = vmatpush3.bf16.msra.mxu0 %v775_v9  ;;  %753 = vmatpush3.bf16.msra.mxu1 %v775_v9 }
  0x1e   : > { %693 = vmatprep.subr.bf16.mxu0 %v776_v10  ;;  %746 = vmatprep.subr.bf16.mxu1 %v776_v10 }
  0x21   : > { %694 = vmatpush3.bf16.msra.mxu0 %v777_v13  ;;  %754 = vmatpush3.bf16.msra.mxu1 %v777_v13 }
  0x22   : > { %695 = vmatprep.subr.bf16.mxu0 %v778_v14  ;;  %747 = vmatprep.subr.bf16.mxu1 %v778_v14 }
  0x25   : > { %696 = vmatpush3.bf16.msra.mxu0 %v779_v15  ;;  %755 = vmatpush3.bf16.msra.mxu1 %v779_v15 }
  0x26   : > { %697 = vmatprep.subr.bf16.mxu0 %v780_v16  ;;  %748 = vmatprep.subr.bf16.mxu1 %v780_v16 }
  0x29   : > { %698 = vmatpush3.bf16.msra.mxu0 %v781_v17  ;;  %756 = vmatpush3.bf16.msra.mxu1 %v781_v17 }
  0x2a   : > { %729 = vmatprep.subr.bf16.mxu1 %v788_v18 }
  0x2c   : > { %451 = vmatmul.mubr.bf16.vlgmr.msra.gmra.mxu0 %v782_v19  ;;  %475 = vmatmul.mubr.bf16.vlgmr.msra.gmra.mxu1 %v785_v20 }
  0x2d   : > { %730 = vmatpush3.bf16.msra.mxu1 %v788_v18  ;;  %458 = vmatprep.mubr.bf16.mxu0 %v790_v21 }
  0x2e   : > { %731 = vmatprep.subr.bf16.mxu1 %v789_v22  ;;  %733 = vmatprep.mubr.msk.bf16.mxu1 %vm405_vm0, %v792_v23 }
  0x31   : > { %732 = vmatpush3.bf16.msra.mxu1 %v789_v22 }
  0x34   : > { %459 = vmatmul.mubr.bf16.gmra.mxu0 %v793_v24  ;;  %734 = vmatmul.mubr.msk.bf16.vlgmr.msra.gmra.mxu1 %vm405_vm0, %v794_v25 }
  0x35   : > { %466 = vmatprep.mubr.bf16.mxu0 %v795_v26  ;;  %737 = vmatprep.mubr.msk.bf16.mxu1 %vm405_vm0, %v797_v27 }
  0x3c   : > { %467 = vmatmul.mubr.bf16.gmra.mxu0 %v798_v28  ;;  %738 = vmatmul.mubr.msk.bf16.gmra.mxu1 %vm405_vm0, %v799_v29 }
  0xec   : > { %v699_v30 = vpop.f32.mrf.mxu0  ;;  %v717_v31 = vpop.f32.mrf.mxu1 }
  0xee   : > { %v700_v32 = vpop.f32.mrf.mxu0  ;;  %v718_v33 = vpop.f32.mrf.mxu1 }
  0xef   : > { %v719_v50 = vadd.f32 %v718_v33, %v717_v31  ;;  %v701_v52 = vadd.f32 %v700_v32, %v699_v30 }
  0xf0   : > { %v702_v34 = vpop.f32.mrf.mxu0  ;;  %v720_v35 = vpop.f32.mrf.mxu1 }
  0xf1   : > { %v477_v61 = vadd.f32 %v719_v50, %v637_v51  ;;  %v453_v0 = vadd.f32 %v701_v52, %v637_v51 }
  0xf2   : > { %v703_v36 = vpop.f32.mrf.mxu0  ;;  %v721_v37 = vpop.f32.mrf.mxu1 }
  0xf3   : > { %v704_v53 = vadd.f32 %v703_v36, %v702_v34  ;;  %v722_v54 = vadd.f32 %v721_v37, %v720_v35 }
  0xf4   : > { %v705_v38 = vpop.f32.mrf.mxu0  ;;  %v735_v39 = vpop.f32.mrf.mxu1 }
  0xf5   : > { %v456_v1 = vadd.f32 %v704_v53, %v637_v51  ;;  %v480_v2 = vadd.f32 %v722_v54, %v637_v51 }
  0xf6   : > { %v706_v40 = vpop.f32.mrf.mxu0  ;;  %v517_v41 = vpop.f32.mrf.mxu1 }
  0xf7   : > { %v707_v44 = vadd.f32 %v706_v40, %v705_v38  ;;  %v518_v9 = vadd.f32 %v517_v41, %v453_v0 }
  0xf8   : > { %v708_v42 = vpop.f32.mrf.mxu0  ;;  %v736_v43 = vpop.f32.mrf.mxu1 }
  0xf9   : > { %v461_v55 = vadd.f32 %v707_v44, %v637_v51  ;;  %v548_v19 = vmax.f32 %v518_v9, 0.0 }
  0xfa   : > { %v709_v45 = vpop.f32.mrf.mxu0  ;;  %v520_v46 = vpop.f32.mrf.mxu1 }
  0xfb   : > { %v710_v47 = vadd.f32 %v709_v45, %v708_v42  ;;  %v526_v63 = vadd.f32 %v735_v39, %v461_v55  ;;  %v521_v10 = vadd.f32 %v520_v46, %v456_v1 }
  0xfc   : > { %v711_v48 = vpop.f32.mrf.mxu0  ;;  %v739_v49 = vpop.f32.mrf.mxu1 }
  0xfd   : > { %v464_v58 = vadd.f32 %v710_v47, %v637_v51  ;;  %v542_v6 = vadd.f32 %v739_v49, %v477_v61  ;;  %v550_v15 = vmax.f32 %v526_v63, 0.0  ;;  %v549_v20 = vmax.f32 %v521_v10, 0.0 }
  0xfe   : > { %v712_v56 = vpop.f32.mrf.mxu0  ;;  %v533_v57 = vpop.f32.mrf.mxu1 }
  0xff   : > { %v713_v59 = vadd.f32 %v712_v56, %v711_v48  ;;  %v529_v5 = vadd.f32 %v736_v43, %v464_v58  ;;  %v554_v17 = vmax.f32 %v542_v6, 0.0  ;;  %v556_v24 = vmax.f32 %v548_v19, %v550_v15 }
 0x100   : > { %v714_v60 = vpop.f32.mrf.mxu0  ;;  %v740_v3 = vpop.f32.mrf.mxu1 }
 0x101   : > { %v469_v62 = vadd.f32 %v713_v59, %v637_v51  ;;  %v545_v12 = vadd.f32 %v740_v3, %v480_v2  ;;  %v551_v16 = vmax.f32 %v529_v5, 0.0 }
 0x102   : > { %v715_v4 = vpop.f32.mrf.mxu0  ;;  %v536_v14 = vpop.f32.mrf.mxu1 }
 0x103   : > { %v534_v7 = vadd.f32 %v533_v57, %v469_v62  ;;  %v716_v8 = vadd.f32 %v715_v4, %v714_v60  ;;  %v555_v22 = vmax.f32 %v545_v12, 0.0  ;;  %v557_v25 = vmax.f32 %v549_v20, %v551_v16 }
 0x105   : > { %v552_v11 = vmax.f32 %v534_v7, 0.0  ;;  %v472_v13 = vadd.f32 %v716_v8, %v637_v51 }
 0x107   : > { %v537_v18 = vadd.f32 %v536_v14, %v472_v13  ;;  %v558_v21 = vmax.f32 %v552_v11, %v554_v17 }
 0x109   : > { %v553_v23 = vmax.f32 %v537_v18, 0.0  ;;  %v560_v27 = vmax.f32 %v556_v24, %v558_v21 }
 0x10b   : > { %v559_v26 = vmax.f32 %v553_v23, %v555_v22 }
 0x10d   : > { %v561_v28 = vmax.f32 %v557_v25, %v559_v26 }
 0x10f   : > { %v681_v29 = vpack.c.bf16 %v561_v28, %v560_v27 }
 0x111   : > { %682 = vst [vmem:[%s175_s8] sm:$0xff] %v681_v29  }
 0x112 PF: > { %s13_s12 = sadd.s32 1, %s806_s12  }
 0x113   : > { %p10_p5 = scmp.ge.s32.totalorder %s13_s12, 4  }
 0x115   :  { %12 = sbr.rel (!%p10_p5) target bundleno = 1 (0x1), region = 62 }

// kernel: vgg_forward.6
= control target key start
LH: loop header
LB: loop body
LE: loop exit
PB: predicated region body
PF: predicated region fallthrough
CT: control target
= control target key end

     0   :  { %vm372_vm0 = vcmask 523264   ;;  %s876_s1 = inlined_call_operand.vmem [shape: bf16[576,128], index: 1, kind: input, shape index: {}]   ;;  %s877_s0 = inlined_call_operand.vmem [shape: bf16[32,576], index: 0, kind: input, shape index: {}]   ;;  %s878_s2 = inlined_call_operand.vmem [shape: f32[1,128], index: 2, kind: input, shape index: {}]   ;;  %s879_s3 = inlined_call_operand.vmem [shape: bf16[8,128], index: 3, kind: output, shape index: {}]  }
   0x1   :  { %v662_v0 = vld [vmem:[%s876_s1 + $0x78] sm:$0xff]   ;;  %v666_v4 = vld [vmem:[%s876_s1 + $0x70] sm:$0xff]   ;;  %v670_v8 = vld [vmem:[%s876_s1 + $0x68] sm:$0xff]  }
   0x2   :  { %v663_v1 = vld [vmem:[%s876_s1 + $0xf8] sm:$0xff]   ;;  %588 = vmatprep.subr.bf16.mxu0 %v662_v0  ;;  %v667_v5 = vld [vmem:[%s876_s1 + $0xf0] sm:$0xff]   ;;  %v671_v9 = vld [vmem:[%s876_s1 + $0xe8] sm:$0xff]  }
   0x3   :  { %v664_v2 = vld [vmem:[%s876_s1 + $0x38] sm:$0xff]   ;;  %616 = vmatprep.subr.bf16.mxu1 %v663_v1  ;;  %v668_v6 = vld [vmem:[%s876_s1 + $0x30] sm:$0xff]   ;;  %v672_v10 = vld [vmem:[%s876_s1 + $0x28] sm:$0xff]  }
   0x4   :  { %v665_v3 = vld [vmem:[%s876_s1 + $0xb8] sm:$0xff]   ;;  %589 = vmatpush3.bf16.msra.mxu0 %v664_v2  ;;  %v669_v7 = vld [vmem:[%s876_s1 + $0xb0] sm:$0xff]   ;;  %v673_v11 = vld [vmem:[%s876_s1 + $0xa8] sm:$0xff]  }
   0x5   :  { %617 = vmatpush3.bf16.msra.mxu1 %v665_v3  ;;  %590 = vmatprep.subr.bf16.mxu0 %v666_v4  ;;  %v674_v12 = vld [vmem:[%s876_s1 + $0x60] sm:$0xff]   ;;  %v678_v16 = vld [vmem:[%s876_s1 + $0x58] sm:$0xff]   ;;  %v682_v20 = vld [vmem:[%s876_s1 + $0x50] sm:$0xff]  }
   0x6   :  { %618 = vmatprep.subr.bf16.mxu1 %v667_v5  ;;  %v675_v13 = vld [vmem:[%s876_s1 + $0xe0] sm:$0xff]   ;;  %v679_v17 = vld [vmem:[%s876_s1 + $0xd8] sm:$0xff]   ;;  %v683_v21 = vld [vmem:[%s876_s1 + $0xd0] sm:$0xff]  }
   0x7   :  { %v676_v14 = vld [vmem:[%s876_s1 + $0x20] sm:$0xff]   ;;  %v680_v18 = vld [vmem:[%s876_s1 + $0x18] sm:$0xff]   ;;  %v684_v22 = vld [vmem:[%s876_s1 + $0x10] sm:$0xff]  }
   0x8   :  { %591 = vmatpush3.bf16.msra.mxu0 %v668_v6  ;;  %v677_v15 = vld [vmem:[%s876_s1 + $0xa0] sm:$0xff]   ;;  %v681_v19 = vld [vmem:[%s876_s1 + $0x98] sm:$0xff]   ;;  %v685_v23 = vld [vmem:[%s876_s1 + $0x90] sm:$0xff]  }
   0x9   :  { %619 = vmatpush3.bf16.msra.mxu1 %v669_v7  ;;  %592 = vmatprep.subr.bf16.mxu0 %v670_v8  ;;  %v686_v24 = vld [vmem:[%s876_s1 + $0x48] sm:$0xff]   ;;  %v690_v28 = vld [vmem:[%s876_s1 + $0x40] sm:$0xff]   ;;  %v700_v36 = vld [vmem:[%s876_s1 + $0x118] sm:$0xff]  }
   0xa   :  { %620 = vmatprep.subr.bf16.mxu1 %v671_v9  ;;  %v687_v25 = vld [vmem:[%s876_s1 + $0xc8] sm:$0xff]   ;;  %v691_v29 = vld [vmem:[%s876_s1 + $0xc0] sm:$0xff]   ;;  %v701_v37 = vld [vmem:[%s876_s1 + $0x110] sm:$0xff]  }
   0xb   :  { %v688_v26 = vld [vmem:[%s876_s1 + $0x8] sm:$0xff]   ;;  %v692_v30 = vld [vmem:[%s876_s1] sm:$0xff]  }
   0xc   :  { %593 = vmatpush3.bf16.msra.mxu0 %v672_v10  ;;  %v689_v27 = vld [vmem:[%s876_s1 + $0x88] sm:$0xff]   ;;  %v693_v31 = vld [vmem:[%s876_s1 + $0x80] sm:$0xff]  }
   0xd   :  { %621 = vmatpush3.bf16.msra.mxu1 %v673_v11  ;;  %594 = vmatprep.subr.bf16.mxu0 %v674_v12  ;;  %v694_v32 = vld [vmem:[%s877_s0] ss:$20 sps:$4 sm:$0xff]   ;;  %v696_v33 = vld [vmem:[%s877_s0 + $0x4] ss:$20 sps:$4 sm:$0xff]   ;;  %v697_v34 = vld [vmem:[%s877_s0 + $0x8] ss:$20 sps:$4 sm:$0xff]  }
   0xe   :  { %622 = vmatprep.subr.bf16.mxu1 %v675_v13  ;;  %v699_v35 = vld [vmem:[%s877_s0 + $0xc] ss:$20 sps:$4 sm:$0xff]   ;;  %411 = vmatprep.mubr.bf16.mxu0 %v696_v33  ;;  %v704_v39 = vld [vmem:[%s877_s0 + $0x34] ss:$20 sps:$4 sm:$0xff]   ;;  %v707_v42 = vld [vmem:[%s877_s0 + $0x30] ss:$20 sps:$4 sm:$0xff]  }
   0xf   :  { %460 = vmatprep.mubr.bf16.mxu1 %v699_v35  ;;  %v702_v38 = vld [vmem:[%s877_s0 + $0x2c] ss:$20 sps:$4 sm:$0xff]   ;;  %v706_v40 = vld [vmem:[%s877_s0 + $0x28] ss:$20 sps:$4 sm:$0xff]   ;;  %v710_v43 = vld [vmem:[%s877_s0 + $0x10] ss:$20 sps:$4 sm:$0xff]  }
  0x10   :  { %595 = vmatpush3.bf16.msra.mxu0 %v676_v14  ;;  %v708_v41 = vld [vmem:[%s876_s1 + $0x108] sm:$0xff]   ;;  %v709_v44 = vld [vmem:[%s876_s1 + $0x100] sm:$0xff]  }
  0x11   :  { %623 = vmatpush3.bf16.msra.mxu1 %v677_v15  ;;  %596 = vmatprep.subr.bf16.mxu0 %v678_v16  ;;  %v711_v45 = vld [vmem:[%s877_s0 + $0x38] ss:$20 sps:$4 sm:$0xff]   ;;  %v539_v61 = vld [vmem:[%s878_s2] ss:$0 sm:$0xff] }
  0x12   :  { %624 = vmatprep.subr.bf16.mxu1 %v679_v17 }
  0x14   :  { %597 = vmatpush3.bf16.msra.mxu0 %v680_v18 }
  0x15   :  { %625 = vmatpush3.bf16.msra.mxu1 %v681_v19  ;;  %598 = vmatprep.subr.bf16.mxu0 %v682_v20 }
  0x16   :  { %626 = vmatprep.subr.bf16.mxu1 %v683_v21 }
  0x18   :  { %599 = vmatpush3.bf16.msra.mxu0 %v684_v22 }
  0x19   :  { %627 = vmatpush3.bf16.msra.mxu1 %v685_v23  ;;  %600 = vmatprep.subr.bf16.mxu0 %v686_v24 }
  0x1a   :  { %628 = vmatprep.subr.bf16.mxu1 %v687_v25 }
  0x1c   :  { %601 = vmatpush3.bf16.msra.mxu0 %v688_v26 }
  0x1d   :  { %629 = vmatpush3.bf16.msra.mxu1 %v689_v27  ;;  %602 = vmatprep.subr.bf16.mxu0 %v690_v28 }
  0x1e   :  { %630 = vmatprep.subr.bf16.mxu1 %v691_v29 }
  0x20   :  { %603 = vmatpush3.bf16.msra.mxu0 %v692_v30 }
  0x21   :  { %631 = vmatpush3.bf16.msra.mxu1 %v693_v31  ;;  %650 = vmatprep.subr.bf16.mxu0 %v700_v36 }
  0x23   :  { %412 = vmatmul.mubr.bf16.vlgmr.msra.gmra.mxu0 %v694_v32 }
  0x24   :  { %461 = vmatmul.mubr.bf16.vlgmr.msra.gmra.mxu1 %v697_v34  ;;  %651 = vmatpush3.bf16.msra.mxu0 %v700_v36 }
  0x25   :  { %652 = vmatprep.subr.bf16.mxu0 %v701_v37  ;;  %419 = vmatprep.mubr.bf16.mxu0 %v702_v38 }
  0x26   :  { %468 = vmatprep.mubr.bf16.mxu1 %v704_v39 }
  0x28   :  { %653 = vmatpush3.bf16.msra.mxu0 %v701_v37 }
  0x29   :  { %654 = vmatprep.subr.bf16.mxu0 %v708_v41 }
  0x2b   :  { %420 = vmatmul.mubr.bf16.gmra.mxu0 %v706_v40 }
  0x2c   :  { %469 = vmatmul.mubr.bf16.gmra.mxu1 %v707_v42  ;;  %658 = vmatprep.mubr.msk.bf16.mxu0 %vm372_vm0, %v710_v43 }
  0x2d   :  { %655 = vmatpush3.bf16.msra.mxu0 %v708_v41 }
  0x2e   :  { %656 = vmatprep.subr.bf16.mxu0 %v709_v44 }
  0x31   :  { %657 = vmatpush3.bf16.msra.mxu0 %v709_v44 }
  0x34   :  { %659 = vmatmul.mubr.msk.bf16.vlgmr.msra.gmra.mxu0 %vm372_vm0, %v711_v45 }
  0xe3   :  { %v604_v46 = vpop.f32.mrf.mxu0 }
  0xe4   :  { %v632_v47 = vpop.f32.mrf.mxu1 }
  0xe5   :  { %v605_v48 = vpop.f32.mrf.mxu0 }
  0xe6   :  { %v633_v49 = vpop.f32.mrf.mxu1  ;;  %v606_v59 = vadd.f32 %v605_v48, %v604_v46 }
  0xe7   :  { %v607_v50 = vpop.f32.mrf.mxu0  ;;  %v634_v6 = vadd.f32 %v633_v49, %v632_v47 }
  0xe8   :  { %v635_v51 = vpop.f32.mrf.mxu1  ;;  %v414_v5 = vadd.f32 %v606_v59, %v539_v61 }
  0xe9   :  { %v608_v52 = vpop.f32.mrf.mxu0 }
  0xea   :  { %v636_v53 = vpop.f32.mrf.mxu1  ;;  %v609_v63 = vadd.f32 %v608_v52, %v607_v50  ;;  %v463_v15 = vadd.f32 %v634_v6, %v414_v5 }
  0xeb   :  { %v610_v54 = vpop.f32.mrf.mxu0  ;;  %v637_v14 = vadd.f32 %v636_v53, %v635_v51 }
  0xec   :  { %v638_v55 = vpop.f32.mrf.mxu1  ;;  %v417_v10 = vadd.f32 %v609_v63, %v539_v61 }
  0xed   :  { %v611_v56 = vpop.f32.mrf.mxu0 }
  0xee   :  { %v612_v57 = vadd.f32 %v611_v56, %v610_v54  ;;  %v639_v58 = vpop.f32.mrf.mxu1  ;;  %v466_v20 = vadd.f32 %v637_v14, %v417_v10 }
  0xef   :  { %v613_v60 = vpop.f32.mrf.mxu0  ;;  %v640_v1 = vadd.f32 %v639_v58, %v638_v55 }
  0xf0   :  { %v641_v62 = vpop.f32.mrf.mxu1  ;;  %v422_v0 = vadd.f32 %v612_v57, %v539_v61 }
  0xf1   :  { %v614_v2 = vpop.f32.mrf.mxu0 }
  0xf2   :  { %v615_v3 = vadd.f32 %v614_v2, %v613_v60  ;;  %v642_v4 = vpop.f32.mrf.mxu1  ;;  %v471_v11 = vadd.f32 %v640_v1, %v422_v0 }
  0xf3   :  { %v643_v8 = vadd.f32 %v642_v4, %v641_v62 }
  0xf4   :  { %v425_v7 = vadd.f32 %v615_v3, %v539_v61  ;;  %v660_v9 = vpop.f32.mrf.mxu0 }
  0xf5   :  { %v520_v17 = vadd.f32 %v660_v9, %v471_v11 }
  0xf6   :  { %v511_v12 = vpop.f32.mrf.mxu0  ;;  %v474_v13 = vadd.f32 %v643_v8, %v425_v7 }
  0xf7   :  { %v512_v18 = vadd.f32 %v511_v12, %v463_v15  ;;  %v528_v24 = vmax.f32 %v520_v17, 0.0 }
  0xf8   :  { %v661_v16 = vpop.f32.mrf.mxu0 }
  0xf9   :  { %v523_v19 = vadd.f32 %v661_v16, %v474_v13  ;;  %v526_v25 = vmax.f32 %v512_v18, 0.0 }
  0xfa   :  { %v514_v21 = vpop.f32.mrf.mxu0 }
  0xfb   :  { %v529_v22 = vmax.f32 %v523_v19, 0.0  ;;  %v515_v23 = vadd.f32 %v514_v21, %v466_v20 }
  0xfd   :  { %v527_v26 = vmax.f32 %v515_v23, 0.0  ;;  %v531_v27 = vmax.f32 %v528_v24, %v529_v22 }
  0xff   :  { %v530_v28 = vmax.f32 %v526_v25, %v527_v26 }
 0x101   :  { %v532_v29 = vmax.f32 %v530_v28, %v531_v27 }
 0x103   :  { %v533_v30 = vpack.c.bf16 %v532_v29, %v532_v29 }
 0x105   :  { %534 = vst [vmem:[%s879_s3] sm:$0xf] %v533_v30 }

// kernel: vgg_forward.7
= control target key start
LH: loop header
LB: loop body
LE: loop exit
PB: predicated region body
PF: predicated region fallthrough
CT: control target
= control target key end

     0   :  { %s8305_s1 = inlined_call_operand.vmem [shape: bf16[1152,512], index: 1, kind: input, shape index: {}]   ;;  %s8306_s0 = inlined_call_operand.vmem [shape: bf16[32,1152], index: 0, kind: input, shape index: {}]   ;;  %s8307_s3 = inlined_call_operand.vmem [shape: bf16[512,512], index: 3, kind: input, shape index: {}]   ;;  %s8308_s2 = inlined_call_operand.vmem [shape: f32[1,512], index: 2, kind: input, shape index: {}]   ;;  %s8309_s5 = inlined_call_operand.vmem [shape: bf16[512,512], index: 5, kind: input, shape index: {}]   ;;  %s8310_s4 = inlined_call_operand.vmem [shape: f32[1,512], index: 4, kind: input, shape index: {}]   ;;  %s8311_s7 = inlined_call_operand.vmem [shape: bf16[512,128], index: 7, kind: input, shape index: {}]   ;;  %s8312_s6 = inlined_call_operand.vmem [shape: f32[1,512], index: 6, kind: input, shape index: {}]   ;;  %s8313_s8 = inlined_call_operand.vmem [shape: f32[1,128], index: 8, kind: input, shape index: {}]   ;;  %s8314_s9 = inlined_call_operand.vmem [shape: f32[8,128], index: 9, kind: output, shape index: {}]  }
   0x1   :  { %v5369_v0 = vld [vmem:[%s8305_s1 + $0xe4] ss:$16 sps:$4 sm:$0xff]   ;;  %v5373_v2 = vld [vmem:[%s8305_s1 + $0xe0] ss:$16 sps:$4 sm:$0xff]  }
   0x2   :  { %v5371_v1 = vld [vmem:[%s8305_s1 + $0x2e4] ss:$16 sps:$4 sm:$0xff]   ;;  %1895 = vmatprep.subr.bf16.mxu0 %v5369_v0  ;;  %v5374_v3 = vld [vmem:[%s8305_s1 + $0x2e0] ss:$16 sps:$4 sm:$0xff]  }
   0x3   :  { %1948 = vmatprep.subr.bf16.mxu1 %v5371_v1  ;;  %v5375_v4 = vld [vmem:[%s8305_s1 + $0xc4] ss:$16 sps:$4 sm:$0xff]   ;;  %1896 = vmatpush1.bf16.msra.mxu0 %v5373_v2  ;;  %v5379_v6 = vld [vmem:[%s8305_s1 + $0xc0] ss:$16 sps:$4 sm:$0xff]  }
   0x4   :  { %1949 = vmatpush1.bf16.msra.mxu1 %v5374_v3  ;;  %v5377_v5 = vld [vmem:[%s8305_s1 + $0x2c4] ss:$16 sps:$4 sm:$0xff]   ;;  %1897 = vmatprep.subr.bf16.mxu0 %v5375_v4  ;;  %v5380_v7 = vld [vmem:[%s8305_s1 + $0x2c0] ss:$16 sps:$4 sm:$0xff]  }
   0x5   :  { %1950 = vmatprep.subr.bf16.mxu1 %v5377_v5  ;;  %v5381_v8 = vld [vmem:[%s8305_s1 + $0xa4] ss:$16 sps:$4 sm:$0xff]   ;;  %v5385_v10 = vld [vmem:[%s8305_s1 + $0xa0] ss:$16 sps:$4 sm:$0xff]   ;;  %v5468_v5 = vld [vmem:[%s8306_s0 + $0x8] ss:$36 sps:$4 sm:$0xff]  }
   0x6   :  { %v5383_v9 = vld [vmem:[%s8305_s1 + $0x2a4] ss:$16 sps:$4 sm:$0xff]   ;;  %v5386_v11 = vld [vmem:[%s8305_s1 + $0x2a0] ss:$16 sps:$4 sm:$0xff]  }
   0x7   :  { %1898 = vmatpush1.bf16.msra.mxu0 %v5379_v6  ;;  %v5387_v12 = vld [vmem:[%s8305_s1 + $0x84] ss:$16 sps:$4 sm:$0xff]   ;;  %v5391_v14 = vld [vmem:[%s8305_s1 + $0x80] ss:$16 sps:$4 sm:$0xff]  }
   0x8   :  { %1951 = vmatpush1.bf16.msra.mxu1 %v5380_v7  ;;  %1899 = vmatprep.subr.bf16.mxu0 %v5381_v8  ;;  %v5389_v13 = vld [vmem:[%s8305_s1 + $0x284] ss:$16 sps:$4 sm:$0xff]   ;;  %v5392_v15 = vld [vmem:[%s8305_s1 + $0x280] ss:$16 sps:$4 sm:$0xff]  }
   0x9   :  { %1952 = vmatprep.subr.bf16.mxu1 %v5383_v9  ;;  %v5393_v16 = vld [vmem:[%s8305_s1 + $0x64] ss:$16 sps:$4 sm:$0xff]   ;;  %v5397_v18 = vld [vmem:[%s8305_s1 + $0x60] ss:$16 sps:$4 sm:$0xff]  }
   0xa   :  { %v5395_v17 = vld [vmem:[%s8305_s1 + $0x264] ss:$16 sps:$4 sm:$0xff]   ;;  %v5398_v19 = vld [vmem:[%s8305_s1 + $0x260] ss:$16 sps:$4 sm:$0xff]  }
   0xb   :  { %1900 = vmatpush1.bf16.msra.mxu0 %v5385_v10  ;;  %v5399_v20 = vld [vmem:[%s8305_s1 + $0x44] ss:$16 sps:$4 sm:$0xff]   ;;  %v5403_v22 = vld [vmem:[%s8305_s1 + $0x40] ss:$16 sps:$4 sm:$0xff]  }
   0xc   :  { %1953 = vmatpush1.bf16.msra.mxu1 %v5386_v11  ;;  %1901 = vmatprep.subr.bf16.mxu0 %v5387_v12  ;;  %v5401_v21 = vld [vmem:[%s8305_s1 + $0x244] ss:$16 sps:$4 sm:$0xff]   ;;  %v5404_v23 = vld [vmem:[%s8305_s1 + $0x240] ss:$16 sps:$4 sm:$0xff]  }
   0xd   :  { %1954 = vmatprep.subr.bf16.mxu1 %v5389_v13  ;;  %v5405_v24 = vld [vmem:[%s8305_s1 + $0x24] ss:$16 sps:$4 sm:$0xff]   ;;  %v5409_v26 = vld [vmem:[%s8305_s1 + $0x20] ss:$16 sps:$4 sm:$0xff]  }
   0xe   :  { %v5407_v25 = vld [vmem:[%s8305_s1 + $0x224] ss:$16 sps:$4 sm:$0xff]   ;;  %v5410_v27 = vld [vmem:[%s8305_s1 + $0x220] ss:$16 sps:$4 sm:$0xff]  }
   0xf   :  { %1902 = vmatpush1.bf16.msra.mxu0 %v5391_v14  ;;  %v5411_v28 = vld [vmem:[%s8305_s1 + $0x4] ss:$16 sps:$4 sm:$0xff]   ;;  %v5415_v30 = vld [vmem:[%s8305_s1] ss:$16 sps:$4 sm:$0xff]  }
  0x10   :  { %1955 = vmatpush1.bf16.msra.mxu1 %v5392_v15  ;;  %1903 = vmatprep.subr.bf16.mxu0 %v5393_v16  ;;  %v5413_v29 = vld [vmem:[%s8305_s1 + $0x204] ss:$16 sps:$4 sm:$0xff]   ;;  %v5416_v31 = vld [vmem:[%s8305_s1 + $0x200] ss:$16 sps:$4 sm:$0xff]  }
  0x11   :  { %1956 = vmatprep.subr.bf16.mxu1 %v5395_v17  ;;  %v5417_v32 = vld [vmem:[%s8305_s1 + $0x1e4] ss:$16 sps:$4 sm:$0xff]   ;;  %v5421_v34 = vld [vmem:[%s8305_s1 + $0x1e0] ss:$16 sps:$4 sm:$0xff]  }
  0x12   :  { %v5419_v33 = vld [vmem:[%s8305_s1 + $0x3e4] ss:$16 sps:$4 sm:$0xff]   ;;  %v5422_v35 = vld [vmem:[%s8305_s1 + $0x3e0] ss:$16 sps:$4 sm:$0xff]  }
  0x13   :  { %1904 = vmatpush1.bf16.msra.mxu0 %v5397_v18  ;;  %v5423_v36 = vld [vmem:[%s8305_s1 + $0x1c4] ss:$16 sps:$4 sm:$0xff]   ;;  %v5427_v38 = vld [vmem:[%s8305_s1 + $0x1c0] ss:$16 sps:$4 sm:$0xff]  }
  0x14   :  { %1957 = vmatpush1.bf16.msra.mxu1 %v5398_v19  ;;  %1905 = vmatprep.subr.bf16.mxu0 %v5399_v20  ;;  %v5425_v37 = vld [vmem:[%s8305_s1 + $0x3c4] ss:$16 sps:$4 sm:$0xff]   ;;  %v5428_v39 = vld [vmem:[%s8305_s1 + $0x3c0] ss:$16 sps:$4 sm:$0xff]  }
  0x15   :  { %1958 = vmatprep.subr.bf16.mxu1 %v5401_v21  ;;  %v5429_v40 = vld [vmem:[%s8305_s1 + $0x1a4] ss:$16 sps:$4 sm:$0xff]   ;;  %v5433_v42 = vld [vmem:[%s8305_s1 + $0x1a0] ss:$16 sps:$4 sm:$0xff]  }
  0x16   :  { %v5431_v41 = vld [vmem:[%s8305_s1 + $0x3a4] ss:$16 sps:$4 sm:$0xff]   ;;  %v5434_v43 = vld [vmem:[%s8305_s1 + $0x3a0] ss:$16 sps:$4 sm:$0xff]  }
  0x17   :  { %1906 = vmatpush1.bf16.msra.mxu0 %v5403_v22  ;;  %v5435_v44 = vld [vmem:[%s8305_s1 + $0x184] ss:$16 sps:$4 sm:$0xff]   ;;  %v5439_v46 = vld [vmem:[%s8305_s1 + $0x180] ss:$16 sps:$4 sm:$0xff]  }
  0x18   :  { %1959 = vmatpush1.bf16.msra.mxu1 %v5404_v23  ;;  %1907 = vmatprep.subr.bf16.mxu0 %v5405_v24  ;;  %v5437_v45 = vld [vmem:[%s8305_s1 + $0x384] ss:$16 sps:$4 sm:$0xff]   ;;  %v5440_v47 = vld [vmem:[%s8305_s1 + $0x380] ss:$16 sps:$4 sm:$0xff]  }
  0x19   :  { %1960 = vmatprep.subr.bf16.mxu1 %v5407_v25  ;;  %v5441_v48 = vld [vmem:[%s8305_s1 + $0x164] ss:$16 sps:$4 sm:$0xff]   ;;  %v6462_v51 = vld [vmem:[%s8306_s0 + $0xc] ss:$36 sps:$4 sm:$0xff]  }
  0x1a   :  { %v6454_v49 = vld [vmem:[%s8306_s0 + $0x4] ss:$36 sps:$4 sm:$0xff]   ;;  %v5445_v52 = vld [vmem:[%s8305_s1 + $0x160] ss:$16 sps:$4 sm:$0xff]   ;;  %1980 = vmatprep.mubr.bf16.mxu1 %v6462_v51 }
  0x1b   :  { %1908 = vmatpush1.bf16.msra.mxu0 %v5409_v26  ;;  %v5443_v50 = vld [vmem:[%s8305_s1 + $0x364] ss:$16 sps:$4 sm:$0xff]   ;;  %1927 = vmatprep.mubr.bf16.mxu0 %v6454_v49  ;;  %v5446_v53 = vld [vmem:[%s8305_s1 + $0x360] ss:$16 sps:$4 sm:$0xff]  }
  0x1c   :  { %1961 = vmatpush1.bf16.msra.mxu1 %v5410_v27  ;;  %1909 = vmatprep.subr.bf16.mxu0 %v5411_v28  ;;  %v5447_v54 = vld [vmem:[%s8305_s1 + $0x144] ss:$16 sps:$4 sm:$0xff]   ;;  %v5451_v56 = vld [vmem:[%s8305_s1 + $0x140] ss:$16 sps:$4 sm:$0xff]   ;;  %v6591_v27 = vld [vmem:[%s8306_s0 + $0x48] ss:$36 sps:$4 sm:$0xff]  }
  0x1d   :  { %1962 = vmatprep.subr.bf16.mxu1 %v5413_v29  ;;  %v5449_v55 = vld [vmem:[%s8305_s1 + $0x344] ss:$16 sps:$4 sm:$0xff]   ;;  %v5452_v57 = vld [vmem:[%s8305_s1 + $0x340] ss:$16 sps:$4 sm:$0xff]  }
  0x1e   :  { %v5453_v58 = vld [vmem:[%s8305_s1 + $0x124] ss:$16 sps:$4 sm:$0xff]   ;;  %v5457_v60 = vld [vmem:[%s8305_s1 + $0x120] ss:$16 sps:$4 sm:$0xff]  }
  0x1f   :  { %1910 = vmatpush1.bf16.msra.mxu0 %v5415_v30  ;;  %v5455_v59 = vld [vmem:[%s8305_s1 + $0x324] ss:$16 sps:$4 sm:$0xff]   ;;  %v5458_v61 = vld [vmem:[%s8305_s1 + $0x320] ss:$16 sps:$4 sm:$0xff]  }
  0x20   :  { %1963 = vmatpush1.bf16.msra.mxu1 %v5416_v31  ;;  %1911 = vmatprep.subr.bf16.mxu0 %v5417_v32  ;;  %v5459_v62 = vld [vmem:[%s8305_s1 + $0x104] ss:$16 sps:$4 sm:$0xff]   ;;  %v5463_v0 = vld [vmem:[%s8305_s1 + $0x100] ss:$16 sps:$4 sm:$0xff]  }
  0x21   :  { %1964 = vmatprep.subr.bf16.mxu1 %v5419_v33  ;;  %v5461_v63 = vld [vmem:[%s8305_s1 + $0x304] ss:$16 sps:$4 sm:$0xff]   ;;  %v5464_v1 = vld [vmem:[%s8305_s1 + $0x300] ss:$16 sps:$4 sm:$0xff]  }
  0x22   :  { %v5473_v2 = vld [vmem:[%s8305_s1 + $0x4e4] ss:$16 sps:$4 sm:$0xff]   ;;  %v5471_v6 = vld [vmem:[%s8305_s1 + $0x4e0] ss:$16 sps:$4 sm:$0xff]  }
  0x23   :  { %1912 = vmatpush2.bf16.msra.mxu0 %v5421_v34  ;;  %v5476_v3 = vld [vmem:[%s8305_s1 + $0x6e4] ss:$16 sps:$4 sm:$0xff]   ;;  %v5474_v7 = vld [vmem:[%s8305_s1 + $0x6e0] ss:$16 sps:$4 sm:$0xff]  }
  0x24   :  { %1965 = vmatpush2.bf16.msra.mxu1 %v5422_v35  ;;  %1913 = vmatprep.subr.bf16.mxu0 %v5423_v36  ;;  %v6517_v4 = vld [vmem:[%s8306_s0] ss:$36 sps:$4 sm:$0xff]   ;;  %v6586_v26 = vld [vmem:[%s8306_s0 + $0x4c] ss:$36 sps:$4 sm:$0xff]   ;;  %v5552_v28 = vld [vmem:[%s8306_s0 + $0x54] ss:$36 sps:$4 sm:$0xff]  }
  0x25   :  { %1966 = vmatprep.subr.bf16.mxu1 %v5425_v37  ;;  %v5479_v8 = vld [vmem:[%s8305_s1 + $0x4c4] ss:$16 sps:$4 sm:$0xff]   ;;  %v5477_v10 = vld [vmem:[%s8305_s1 + $0x4c0] ss:$16 sps:$4 sm:$0xff]  }
  0x26   :  { %v5482_v9 = vld [vmem:[%s8305_s1 + $0x6c4] ss:$16 sps:$4 sm:$0xff]   ;;  %v5480_v11 = vld [vmem:[%s8305_s1 + $0x6c0] ss:$16 sps:$4 sm:$0xff]  }
  0x27   :  { %1914 = vmatpush2.bf16.msra.mxu0 %v5427_v38  ;;  %v5485_v12 = vld [vmem:[%s8305_s1 + $0x4a4] ss:$16 sps:$4 sm:$0xff]   ;;  %v5483_v14 = vld [vmem:[%s8305_s1 + $0x4a0] ss:$16 sps:$4 sm:$0xff]  }
  0x28   :  { %1967 = vmatpush2.bf16.msra.mxu1 %v5428_v39  ;;  %1915 = vmatprep.subr.bf16.mxu0 %v5429_v40  ;;  %v5488_v13 = vld [vmem:[%s8305_s1 + $0x6a4] ss:$16 sps:$4 sm:$0xff]   ;;  %v5486_v15 = vld [vmem:[%s8305_s1 + $0x6a0] ss:$16 sps:$4 sm:$0xff]  }
  0x29   :  { %1968 = vmatprep.subr.bf16.mxu1 %v5431_v41  ;;  %v5491_v16 = vld [vmem:[%s8305_s1 + $0x484] ss:$16 sps:$4 sm:$0xff]   ;;  %v5489_v18 = vld [vmem:[%s8305_s1 + $0x480] ss:$16 sps:$4 sm:$0xff]  }
  0x2a   :  { %v5494_v17 = vld [vmem:[%s8305_s1 + $0x684] ss:$16 sps:$4 sm:$0xff]   ;;  %v5492_v19 = vld [vmem:[%s8305_s1 + $0x680] ss:$16 sps:$4 sm:$0xff]  }
  0x2b   :  { %1916 = vmatpush2.bf16.msra.mxu0 %v5433_v42  ;;  %v5497_v20 = vld [vmem:[%s8305_s1 + $0x464] ss:$16 sps:$4 sm:$0xff]   ;;  %v5495_v22 = vld [vmem:[%s8305_s1 + $0x460] ss:$16 sps:$4 sm:$0xff]  }
  0x2c   :  { %1969 = vmatpush2.bf16.msra.mxu1 %v5434_v43  ;;  %1917 = vmatprep.subr.bf16.mxu0 %v5435_v44  ;;  %v5500_v21 = vld [vmem:[%s8305_s1 + $0x664] ss:$16 sps:$4 sm:$0xff]   ;;  %v5498_v23 = vld [vmem:[%s8305_s1 + $0x660] ss:$16 sps:$4 sm:$0xff]  }
  0x2d   :  { %1970 = vmatprep.subr.bf16.mxu1 %v5437_v45  ;;  %v5503_v24 = vld [vmem:[%s8305_s1 + $0x444] ss:$16 sps:$4 sm:$0xff]   ;;  %v5501_v29 = vld [vmem:[%s8305_s1 + $0x440] ss:$16 sps:$4 sm:$0xff]  }
  0x2e   :  { %v5506_v25 = vld [vmem:[%s8305_s1 + $0x644] ss:$16 sps:$4 sm:$0xff]   ;;  %v5504_v30 = vld [vmem:[%s8305_s1 + $0x640] ss:$16 sps:$4 sm:$0xff]  }
  0x2f   :  { %1918 = vmatpush2.bf16.msra.mxu0 %v5439_v46  ;;  %v5509_v31 = vld [vmem:[%s8305_s1 + $0x424] ss:$16 sps:$4 sm:$0xff]   ;;  %v5507_v34 = vld [vmem:[%s8305_s1 + $0x420] ss:$16 sps:$4 sm:$0xff]  }
  0x30   :  { %1971 = vmatpush2.bf16.msra.mxu1 %v5440_v47  ;;  %1919 = vmatprep.subr.bf16.mxu0 %v5441_v48  ;;  %v5512_v32 = vld [vmem:[%s8305_s1 + $0x624] ss:$16 sps:$4 sm:$0xff]   ;;  %v5510_v35 = vld [vmem:[%s8305_s1 + $0x620] ss:$16 sps:$4 sm:$0xff]  }
  0x31   :  { %1972 = vmatprep.subr.bf16.mxu1 %v5443_v50  ;;  %v5560_v33 = vld [vmem:[%s8306_s0 + $0x50] ss:$36 sps:$4 sm:$0xff]   ;;  %v5578_v43 = vld [vmem:[%s8306_s0 + $0x1c] ss:$36 sps:$4 sm:$0xff]  }
  0x32   :  { %v5515_v36 = vld [vmem:[%s8305_s1 + $0x404] ss:$16 sps:$4 sm:$0xff]   ;;  %v5513_v38 = vld [vmem:[%s8305_s1 + $0x400] ss:$16 sps:$4 sm:$0xff]  }
  0x33   :  { %1920 = vmatpush2.bf16.msra.mxu0 %v5445_v52  ;;  %v5518_v37 = vld [vmem:[%s8305_s1 + $0x604] ss:$16 sps:$4 sm:$0xff]   ;;  %v5516_v39 = vld [vmem:[%s8305_s1 + $0x600] ss:$16 sps:$4 sm:$0xff]  }
  0x34   :  { %1973 = vmatpush2.bf16.msra.mxu1 %v5446_v53  ;;  %1921 = vmatprep.subr.bf16.mxu0 %v5447_v54  ;;  %v5521_v40 = vld [vmem:[%s8305_s1 + $0x5e4] ss:$16 sps:$4 sm:$0xff]   ;;  %v5519_v44 = vld [vmem:[%s8305_s1 + $0x5e0] ss:$16 sps:$4 sm:$0xff]  }
  0x35   :  { %1974 = vmatprep.subr.bf16.mxu1 %v5449_v55  ;;  %v6637_v41 = vld [vmem:[%s8306_s0 + $0x14] ss:$36 sps:$4 sm:$0xff]   ;;  %v5522_v45 = vld [vmem:[%s8305_s1 + $0x7e0] ss:$16 sps:$4 sm:$0xff]  }
  0x36   :  { %v5524_v42 = vld [vmem:[%s8305_s1 + $0x7e4] ss:$16 sps:$4 sm:$0xff]   ;;  %v5525_v48 = vld [vmem:[%s8305_s1 + $0x5c0] ss:$16 sps:$4 sm:$0xff]  }
  0x37   :  { %1922 = vmatpush2.bf16.msra.mxu0 %v5451_v56  ;;  %v5527_v46 = vld [vmem:[%s8305_s1 + $0x5c4] ss:$16 sps:$4 sm:$0xff]   ;;  %v5528_v50 = vld [vmem:[%s8305_s1 + $0x7c0] ss:$16 sps:$4 sm:$0xff]  }
  0x38   :  { %1975 = vmatpush2.bf16.msra.mxu1 %v5452_v57  ;;  %1923 = vmatprep.subr.bf16.mxu0 %v5453_v58  ;;  %v5530_v47 = vld [vmem:[%s8305_s1 + $0x7c4] ss:$16 sps:$4 sm:$0xff]   ;;  %v5531_v54 = vld [vmem:[%s8305_s1 + $0x5a0] ss:$16 sps:$4 sm:$0xff]  }
  0x39   :  { %1976 = vmatprep.subr.bf16.mxu1 %v5455_v59  ;;  %v5533_v52 = vld [vmem:[%s8305_s1 + $0x5a4] ss:$16 sps:$4 sm:$0xff]   ;;  %v5534_v55 = vld [vmem:[%s8305_s1 + $0x7a0] ss:$16 sps:$4 sm:$0xff]  }
  0x3a   :  { %v5536_v53 = vld [vmem:[%s8305_s1 + $0x7a4] ss:$16 sps:$4 sm:$0xff]   ;;  %v5537_v58 = vld [vmem:[%s8305_s1 + $0x580] ss:$16 sps:$4 sm:$0xff]  }
  0x3b   :  { %1924 = vmatpush2.bf16.msra.mxu0 %v5457_v60  ;;  %v5539_v56 = vld [vmem:[%s8305_s1 + $0x584] ss:$16 sps:$4 sm:$0xff]   ;;  %v5540_v59 = vld [vmem:[%s8305_s1 + $0x780] ss:$16 sps:$4 sm:$0xff]  }
  0x3c   :  { %1977 = vmatpush2.bf16.msra.mxu1 %v5458_v61  ;;  %1925 = vmatprep.subr.bf16.mxu0 %v5459_v62  ;;  %v5542_v57 = vld [vmem:[%s8305_s1 + $0x784] ss:$16 sps:$4 sm:$0xff]   ;;  %v5543_v62 = vld [vmem:[%s8305_s1 + $0x560] ss:$16 sps:$4 sm:$0xff]  }
  0x3d   :  { %1978 = vmatprep.subr.bf16.mxu1 %v5461_v63  ;;  %v5545_v60 = vld [vmem:[%s8305_s1 + $0x564] ss:$16 sps:$4 sm:$0xff]   ;;  %v5546_v63 = vld [vmem:[%s8305_s1 + $0x760] ss:$16 sps:$4 sm:$0xff]  }
  0x3e   :  { %v5548_v61 = vld [vmem:[%s8305_s1 + $0x764] ss:$16 sps:$4 sm:$0xff]  }
  0x3f   :  { %1926 = vmatpush2.bf16.msra.mxu0 %v5463_v0  ;;  %v5556_v0 = vld [vmem:[%s8305_s1 + $0x544] ss:$16 sps:$4 sm:$0xff]  }
  0x40   :  { %1979 = vmatpush2.bf16.msra.mxu1 %v5464_v1  ;;  %2001 = vmatprep.subr.bf16.mxu0 %v5473_v2  ;;  %v5559_v1 = vld [vmem:[%s8305_s1 + $0x744] ss:$16 sps:$4 sm:$0xff]   ;;  %v5554_v2 = vld [vmem:[%s8305_s1 + $0x540] ss:$16 sps:$4 sm:$0xff]  }
  0x41   :  { %2054 = vmatprep.subr.bf16.mxu1 %v5476_v3  ;;  %v5557_v3 = vld [vmem:[%s8305_s1 + $0x740] ss:$16 sps:$4 sm:$0xff]  }
  0x42   :  { %1928 = vmatmul.mubr.bf16.vlgmr.msra.gmra.mxu0 %v6517_v4 }
  0x43   :  { %1981 = vmatmul.mubr.bf16.vlgmr.msra.gmra.mxu1 %v5468_v5  ;;  %2002 = vmatpush1.bf16.msra.mxu0 %v5471_v6  ;;  %v5563_v5 = vld [vmem:[%s8305_s1 + $0x524] ss:$16 sps:$4 sm:$0xff]  }
  0x44   :  { %2055 = vmatpush1.bf16.msra.mxu1 %v5474_v7  ;;  %2003 = vmatprep.subr.bf16.mxu0 %v5479_v8  ;;  %v5566_v6 = vld [vmem:[%s8305_s1 + $0x724] ss:$16 sps:$4 sm:$0xff]   ;;  %v5561_v7 = vld [vmem:[%s8305_s1 + $0x520] ss:$16 sps:$4 sm:$0xff]  }
  0x45   :  { %2056 = vmatprep.subr.bf16.mxu1 %v5482_v9  ;;  %1937 = vmatprep.mubr.bf16.mxu0 %v6586_v26  ;;  %v5564_v8 = vld [vmem:[%s8305_s1 + $0x720] ss:$16 sps:$4 sm:$0xff]   ;;  %v5569_v9 = vld [vmem:[%s8305_s1 + $0x504] ss:$16 sps:$4 sm:$0xff]  }
  0x46   :  { %1990 = vmatprep.mubr.bf16.mxu1 %v5552_v28  ;;  %v5599_v28 = vld [vmem:[%s8305_s1 + $0xac] ss:$16 sps:$4 sm:$0xff]  }
  0x47   :  { %2004 = vmatpush1.bf16.msra.mxu0 %v5477_v10  ;;  %v5572_v10 = vld [vmem:[%s8305_s1 + $0x704] ss:$16 sps:$4 sm:$0xff]  }
  0x48   :  { %2057 = vmatpush1.bf16.msra.mxu1 %v5480_v11  ;;  %2005 = vmatprep.subr.bf16.mxu0 %v5485_v12  ;;  %v5567_v11 = vld [vmem:[%s8305_s1 + $0x500] ss:$16 sps:$4 sm:$0xff]  }
  0x49   :  { %2058 = vmatprep.subr.bf16.mxu1 %v5488_v13  ;;  %v5570_v12 = vld [vmem:[%s8305_s1 + $0x700] ss:$16 sps:$4 sm:$0xff]  }
  0x4a   :  { %1938 = vmatmul.mubr.bf16.gmra.mxu0 %v6591_v27  ;;  %v5573_v13 = vld [vmem:[%s8306_s0 + $0x10] ss:$36 sps:$4 sm:$0xff]  }
  0x4b   :  { %2006 = vmatpush1.bf16.msra.mxu0 %v5483_v14  ;;  %1991 = vmatmul.mubr.bf16.gmra.mxu1 %v5560_v33  ;;  %v5581_v14 = vld [vmem:[%s8305_s1 + $0x8e4] ss:$16 sps:$4 sm:$0xff]  }
  0x4c   :  { %2059 = vmatpush1.bf16.msra.mxu1 %v5486_v15  ;;  %2007 = vmatprep.subr.bf16.mxu0 %v5491_v16  ;;  %v5584_v15 = vld [vmem:[%s8305_s1 + $0xec] ss:$16 sps:$4 sm:$0xff]   ;;  %v5605_v33 = vld [vmem:[%s8305_s1 + $0x884] ss:$16 sps:$4 sm:$0xff]  }
  0x4d   :  { %2060 = vmatprep.subr.bf16.mxu1 %v5494_v17  ;;  %2033 = vmatprep.mubr.bf16.mxu0 %v6637_v41  ;;  %v5576_v16 = vld [vmem:[%s8306_s0 + $0x18] ss:$36 sps:$4 sm:$0xff]   ;;  %v5579_v17 = vld [vmem:[%s8305_s1 + $0x8e0] ss:$16 sps:$4 sm:$0xff]  }
  0x4e   :  { %2086 = vmatprep.mubr.bf16.mxu1 %v5578_v43  ;;  %v5617_v43 = vld [vmem:[%s8305_s1 + $0x844] ss:$16 sps:$4 sm:$0xff]  }
  0x4f   :  { %2008 = vmatpush1.bf16.msra.mxu0 %v5489_v18  ;;  %v5582_v18 = vld [vmem:[%s8305_s1 + $0xe8] ss:$16 sps:$4 sm:$0xff]  }
  0x50   :  { %2061 = vmatpush1.bf16.msra.mxu1 %v5492_v19  ;;  %2009 = vmatprep.subr.bf16.mxu0 %v5497_v20  ;;  %v5587_v19 = vld [vmem:[%s8305_s1 + $0x8c4] ss:$16 sps:$4 sm:$0xff]   ;;  %v5590_v20 = vld [vmem:[%s8305_s1 + $0xcc] ss:$16 sps:$4 sm:$0xff]  }
  0x51   :  { %2062 = vmatprep.subr.bf16.mxu1 %v5500_v21  ;;  %v5591_v21 = vld [vmem:[%s8306_s0 + $0x5c] ss:$36 sps:$4 sm:$0xff]  }
  0x53   :  { %2010 = vmatpush1.bf16.msra.mxu0 %v5495_v22  ;;  %v5600_v22 = vld [vmem:[%s8306_s0 + $0x64] ss:$36 sps:$4 sm:$0xff]  }
  0x54   :  { %2063 = vmatpush1.bf16.msra.mxu1 %v5498_v23  ;;  %2011 = vmatprep.subr.bf16.mxu0 %v5503_v24  ;;  %v5585_v23 = vld [vmem:[%s8305_s1 + $0x8c0] ss:$16 sps:$4 sm:$0xff]   ;;  %v5588_v24 = vld [vmem:[%s8305_s1 + $0xc8] ss:$16 sps:$4 sm:$0xff]  }
  0x55   :  { %2064 = vmatprep.subr.bf16.mxu1 %v5506_v25  ;;  %v5596_v25 = vld [vmem:[%s8305_s1 + $0x8a4] ss:$16 sps:$4 sm:$0xff]  }
  0x57   :  { %2012 = vmatpush1.bf16.msra.mxu0 %v5501_v29  ;;  %v5593_v29 = vld [vmem:[%s8306_s0 + $0x58] ss:$36 sps:$4 sm:$0xff]  }
  0x58   :  { %2065 = vmatpush1.bf16.msra.mxu1 %v5504_v30  ;;  %2013 = vmatprep.subr.bf16.mxu0 %v5509_v31  ;;  %v5602_v30 = vld [vmem:[%s8306_s0 + $0x60] ss:$36 sps:$4 sm:$0xff]  }
  0x59   :  { %2066 = vmatprep.subr.bf16.mxu1 %v5512_v32  ;;  %v5594_v31 = vld [vmem:[%s8305_s1 + $0x8a0] ss:$16 sps:$4 sm:$0xff]   ;;  %v5597_v32 = vld [vmem:[%s8305_s1 + $0xa8] ss:$16 sps:$4 sm:$0xff]  }
  0x5b   :  { %2014 = vmatpush1.bf16.msra.mxu0 %v5507_v34  ;;  %v5608_v34 = vld [vmem:[%s8305_s1 + $0x8c] ss:$16 sps:$4 sm:$0xff]  }
  0x5c   :  { %2067 = vmatpush1.bf16.msra.mxu1 %v5510_v35  ;;  %2015 = vmatprep.subr.bf16.mxu0 %v5515_v36  ;;  %v5603_v35 = vld [vmem:[%s8305_s1 + $0x880] ss:$16 sps:$4 sm:$0xff]   ;;  %v5606_v36 = vld [vmem:[%s8305_s1 + $0x88] ss:$16 sps:$4 sm:$0xff]  }
  0x5d   :  { %2068 = vmatprep.subr.bf16.mxu1 %v5518_v37  ;;  %v5611_v37 = vld [vmem:[%s8305_s1 + $0x864] ss:$16 sps:$4 sm:$0xff]  }
  0x5f   :  { %2016 = vmatpush1.bf16.msra.mxu0 %v5513_v38  ;;  %v5614_v38 = vld [vmem:[%s8305_s1 + $0x6c] ss:$16 sps:$4 sm:$0xff]  }
  0x60   :  { %2069 = vmatpush1.bf16.msra.mxu1 %v5516_v39  ;;  %2017 = vmatprep.subr.bf16.mxu0 %v5521_v40  ;;  %v6253_v39 = vmov 0   ;;  %v5609_v40 = vld [vmem:[%s8305_s1 + $0x860] ss:$16 sps:$4 sm:$0xff]  }
  0x61   :  { %2070 = vmatprep.subr.bf16.mxu1 %v5524_v42  ;;  %v5612_v42 = vld [vmem:[%s8305_s1 + $0x68] ss:$16 sps:$4 sm:$0xff]  }
  0x63   :  { %2018 = vmatpush2.bf16.msra.mxu0 %v5519_v44  ;;  %v5615_v44 = vld [vmem:[%s8305_s1 + $0x840] ss:$16 sps:$4 sm:$0xff]  }
  0x64   :  { %2071 = vmatpush2.bf16.msra.mxu1 %v5522_v45  ;;  %2019 = vmatprep.subr.bf16.mxu0 %v5527_v46  ;;  %v5618_v45 = vld [vmem:[%s8305_s1 + $0x48] ss:$16 sps:$4 sm:$0xff]   ;;  %v5623_v46 = vld [vmem:[%s8305_s1 + $0x824] ss:$16 sps:$4 sm:$0xff]  }
  0x65   :  { %2072 = vmatprep.subr.bf16.mxu1 %v5530_v47  ;;  %v5626_v47 = vld [vmem:[%s8305_s1 + $0x2c] ss:$16 sps:$4 sm:$0xff]  }
  0x67   :  { %2020 = vmatpush2.bf16.msra.mxu0 %v5525_v48  ;;  %v5621_v48 = vld [vmem:[%s8305_s1 + $0x820] ss:$16 sps:$4 sm:$0xff]  }
  0x68   :  { %2073 = vmatpush2.bf16.msra.mxu1 %v5528_v50  ;;  %2021 = vmatprep.subr.bf16.mxu0 %v5533_v52  ;;  %v5624_v50 = vld [vmem:[%s8305_s1 + $0x28] ss:$16 sps:$4 sm:$0xff]   ;;  %v5629_v52 = vld [vmem:[%s8305_s1 + $0x804] ss:$16 sps:$4 sm:$0xff]  }
  0x69   :  { %2074 = vmatprep.subr.bf16.mxu1 %v5536_v53  ;;  %v5632_v53 = vld [vmem:[%s8305_s1 + $0xc] ss:$16 sps:$4 sm:$0xff]  }
  0x6b   :  { %2022 = vmatpush2.bf16.msra.mxu0 %v5531_v54  ;;  %v5627_v54 = vld [vmem:[%s8305_s1 + $0x800] ss:$16 sps:$4 sm:$0xff]  }
  0x6c   :  { %2075 = vmatpush2.bf16.msra.mxu1 %v5534_v55  ;;  %2023 = vmatprep.subr.bf16.mxu0 %v5539_v56  ;;  %v5630_v55 = vld [vmem:[%s8305_s1 + $0x8] ss:$16 sps:$4 sm:$0xff]   ;;  %v5636_v56 = vld [vmem:[%s8305_s1 + $0x1ec] ss:$16 sps:$4 sm:$0xff]  }
  0x6d   :  { %2076 = vmatprep.subr.bf16.mxu1 %v5542_v57  ;;  %v5639_v57 = vld [vmem:[%s8305_s1 + $0x2ec] ss:$16 sps:$4 sm:$0xff]  }
  0x6f   :  { %2024 = vmatpush2.bf16.msra.mxu0 %v5537_v58  ;;  %v6861_v58 = vld [vmem:[%s8306_s0 + $0x20] ss:$36 sps:$4 sm:$0xff]  }
  0x70   :  { %2077 = vmatpush2.bf16.msra.mxu1 %v5540_v59  ;;  %2025 = vmatprep.subr.bf16.mxu0 %v5545_v60  ;;  %v5634_v59 = vld [vmem:[%s8305_s1 + $0x1e8] ss:$16 sps:$4 sm:$0xff]  }
  0x71   :  { %2078 = vmatprep.subr.bf16.mxu1 %v5548_v61  ;;  %v5637_v60 = vld [vmem:[%s8305_s1 + $0x2e8] ss:$16 sps:$4 sm:$0xff]   ;;  %v5642_v61 = vld [vmem:[%s8305_s1 + $0x1cc] ss:$16 sps:$4 sm:$0xff]  }
  0x73   :  { %2026 = vmatpush2.bf16.msra.mxu0 %v5543_v62  ;;  %v5645_v62 = vld [vmem:[%s8305_s1 + $0x2cc] ss:$16 sps:$4 sm:$0xff]  }
  0x74   :  { %2079 = vmatpush2.bf16.msra.mxu1 %v5546_v63  ;;  %2027 = vmatprep.subr.bf16.mxu0 %v5556_v0  ;;  %v5640_v63 = vld [vmem:[%s8305_s1 + $0x1c8] ss:$16 sps:$4 sm:$0xff]  }
  0x75   :  { %2080 = vmatprep.subr.bf16.mxu1 %v5559_v1  ;;  %v5643_v0 = vld [vmem:[%s8305_s1 + $0x2c8] ss:$16 sps:$4 sm:$0xff]   ;;  %v5649_v1 = vld [vmem:[%s8305_s1 + $0x1ac] ss:$16 sps:$4 sm:$0xff]  }
  0x77   :  { %2028 = vmatpush2.bf16.msra.mxu0 %v5554_v2  ;;  %v5652_v2 = vld [vmem:[%s8305_s1 + $0x2ac] ss:$16 sps:$4 sm:$0xff]  }
  0x78   :  { %2081 = vmatpush2.bf16.msra.mxu1 %v5557_v3  ;;  %2029 = vmatprep.subr.bf16.mxu0 %v5563_v5  ;;  %v6892_v3 = vld [vmem:[%s8306_s0 + $0x68] ss:$36 sps:$4 sm:$0xff]  }
  0x79   :  { %2082 = vmatprep.subr.bf16.mxu1 %v5566_v6  ;;  %v5647_v5 = vld [vmem:[%s8305_s1 + $0x1a8] ss:$16 sps:$4 sm:$0xff]  }
  0x7a   :  { %v5650_v6 = vld [vmem:[%s8305_s1 + $0x2a8] ss:$16 sps:$4 sm:$0xff]  }
  0x7b   :  { %2030 = vmatpush2.bf16.msra.mxu0 %v5561_v7  ;;  %v5655_v7 = vld [vmem:[%s8305_s1 + $0x18c] ss:$16 sps:$4 sm:$0xff]  }
  0x7c   :  { %2083 = vmatpush2.bf16.msra.mxu1 %v5564_v8  ;;  %2031 = vmatprep.subr.bf16.mxu0 %v5569_v9  ;;  %v5658_v8 = vld [vmem:[%s8305_s1 + $0x28c] ss:$16 sps:$4 sm:$0xff]   ;;  %v5653_v9 = vld [vmem:[%s8305_s1 + $0x188] ss:$16 sps:$4 sm:$0xff]  }
  0x7d   :  { %2084 = vmatprep.subr.bf16.mxu1 %v5572_v10  ;;  %v5656_v10 = vld [vmem:[%s8305_s1 + $0x288] ss:$16 sps:$4 sm:$0xff]  }
  0x7f   :  { %2032 = vmatpush2.bf16.msra.mxu0 %v5567_v11  ;;  %v5661_v11 = vld [vmem:[%s8305_s1 + $0x16c] ss:$16 sps:$4 sm:$0xff]  }
  0x80   :  { %2085 = vmatpush2.bf16.msra.mxu1 %v5570_v12  ;;  %2107 = vmatprep.subr.bf16.mxu0 %v5581_v14  ;;  %v5664_v12 = vld [vmem:[%s8305_s1 + $0x26c] ss:$16 sps:$4 sm:$0xff]   ;;  %v5662_v14 = vld [vmem:[%s8305_s1 + $0x268] ss:$16 sps:$4 sm:$0xff]  }
  0x81   :  { %2160 = vmatprep.subr.bf16.mxu1 %v5584_v15  ;;  %v5667_v15 = vld [vmem:[%s8305_s1 + $0x14c] ss:$16 sps:$4 sm:$0xff]  }
  0x82   :  { %2034 = vmatmul.mubr.bf16.vlgmr.msra.gmra.mxu0 %v5573_v13  ;;  %v5659_v13 = vld [vmem:[%s8305_s1 + $0x168] ss:$16 sps:$4 sm:$0xff]  }
  0x83   :  { %2087 = vmatmul.mubr.bf16.vlgmr.msra.gmra.mxu1 %v5576_v16  ;;  %2108 = vmatpush1.bf16.msra.mxu0 %v5579_v17  ;;  %v5665_v16 = vld [vmem:[%s8305_s1 + $0x148] ss:$16 sps:$4 sm:$0xff]  }
  0x84   :  { %2161 = vmatpush1.bf16.msra.mxu1 %v5582_v18  ;;  %2109 = vmatprep.subr.bf16.mxu0 %v5587_v19  ;;  %v5668_v17 = vld [vmem:[%s8305_s1 + $0x248] ss:$16 sps:$4 sm:$0xff]   ;;  %v5673_v18 = vld [vmem:[%s8305_s1 + $0x12c] ss:$16 sps:$4 sm:$0xff]  }
  0x85   :  { %2162 = vmatprep.subr.bf16.mxu1 %v5590_v20  ;;  %2043 = vmatprep.mubr.bf16.mxu0 %v5591_v21  ;;  %v5676_v19 = vld [vmem:[%s8305_s1 + $0x22c] ss:$16 sps:$4 sm:$0xff]   ;;  %v5671_v20 = vld [vmem:[%s8305_s1 + $0x128] ss:$16 sps:$4 sm:$0xff]  }
  0x86   :  { %2096 = vmatprep.mubr.bf16.mxu1 %v5600_v22  ;;  %v5674_v21 = vld [vmem:[%s8305_s1 + $0x228] ss:$16 sps:$4 sm:$0xff]   ;;  %v5679_v22 = vld [vmem:[%s8305_s1 + $0x10c] ss:$16 sps:$4 sm:$0xff]  }
  0x87   :  { %2110 = vmatpush1.bf16.msra.mxu0 %v5585_v23  ;;  %v5682_v23 = vld [vmem:[%s8305_s1 + $0x20c] ss:$16 sps:$4 sm:$0xff]  }
  0x88   :  { %2163 = vmatpush1.bf16.msra.mxu1 %v5588_v24  ;;  %2111 = vmatprep.subr.bf16.mxu0 %v5596_v25  ;;  %v5677_v24 = vld [vmem:[%s8305_s1 + $0x108] ss:$16 sps:$4 sm:$0xff]  }
  0x89   :  { %2164 = vmatprep.subr.bf16.mxu1 %v5599_v28  ;;  %v5680_v25 = vld [vmem:[%s8305_s1 + $0x208] ss:$16 sps:$4 sm:$0xff]   ;;  %v5685_v28 = vld [vmem:[%s8305_s1 + $0x3ec] ss:$16 sps:$4 sm:$0xff]  }
  0x8a   :  { %2044 = vmatmul.mubr.bf16.gmra.mxu0 %v5593_v29  ;;  %v5688_v29 = vld [vmem:[%s8305_s1 + $0x4ec] ss:$16 sps:$4 sm:$0xff]  }
  0x8b   :  { %2097 = vmatmul.mubr.bf16.gmra.mxu1 %v5602_v30  ;;  %2112 = vmatpush1.bf16.msra.mxu0 %v5594_v31  ;;  %v5683_v30 = vld [vmem:[%s8305_s1 + $0x3e8] ss:$16 sps:$4 sm:$0xff]  }
  0x8c   :  { %2165 = vmatpush1.bf16.msra.mxu1 %v5597_v32  ;;  %2113 = vmatprep.subr.bf16.mxu0 %v5605_v33  ;;  %v5686_v31 = vld [vmem:[%s8305_s1 + $0x4e8] ss:$16 sps:$4 sm:$0xff]   ;;  %v5691_v32 = vld [vmem:[%s8305_s1 + $0x3cc] ss:$16 sps:$4 sm:$0xff]  }
  0x8d   :  { %2166 = vmatprep.subr.bf16.mxu1 %v5608_v34  ;;  %2139 = vmatprep.mubr.bf16.mxu0 %v6253_v39  ;;  %v5694_v33 = vld [vmem:[%s8305_s1 + $0x4cc] ss:$16 sps:$4 sm:$0xff]   ;;  %v5689_v34 = vld [vmem:[%s8305_s1 + $0x3c8] ss:$16 sps:$4 sm:$0xff]  }
  0x8e   :  { %2192 = vmatprep.mubr.bf16.mxu1 %v6454_v49  ;;  %v5620_v49 = vld [vmem:[%s8305_s1 + $0x4c] ss:$16 sps:$4 sm:$0xff]  }
  0x8f   :  { %2114 = vmatpush1.bf16.msra.mxu0 %v5603_v35  ;;  %v5692_v35 = vld [vmem:[%s8305_s1 + $0x4c8] ss:$16 sps:$4 sm:$0xff]  }
  0x90   :  { %2167 = vmatpush1.bf16.msra.mxu1 %v5606_v36  ;;  %2115 = vmatprep.subr.bf16.mxu0 %v5611_v37  ;;  %v5697_v36 = vld [vmem:[%s8305_s1 + $0x3ac] ss:$16 sps:$4 sm:$0xff]   ;;  %v5695_v37 = vld [vmem:[%s8305_s1 + $0x3a8] ss:$16 sps:$4 sm:$0xff]  }
  0x91   :  { %2168 = vmatprep.subr.bf16.mxu1 %v5614_v38  ;;  %v5698_v38 = vld [vmem:[%s8305_s1 + $0x4a8] ss:$16 sps:$4 sm:$0xff]  }
  0x93   :  { %2116 = vmatpush1.bf16.msra.mxu0 %v5609_v40  ;;  %v5703_v40 = vld [vmem:[%s8305_s1 + $0x38c] ss:$16 sps:$4 sm:$0xff]  }
  0x94   :  { %2169 = vmatpush1.bf16.msra.mxu1 %v5612_v42  ;;  %2117 = vmatprep.subr.bf16.mxu0 %v5617_v43  ;;  %v5701_v42 = vld [vmem:[%s8305_s1 + $0x388] ss:$16 sps:$4 sm:$0xff]  }
  0x95   :  { %2170 = vmatprep.subr.bf16.mxu1 %v5620_v49  ;;  %v5704_v43 = vld [vmem:[%s8305_s1 + $0x488] ss:$16 sps:$4 sm:$0xff]   ;;  %v5709_v49 = vld [vmem:[%s8305_s1 + $0x36c] ss:$16 sps:$4 sm:$0xff]  }
  0x97   :  { %2118 = vmatpush1.bf16.msra.mxu0 %v5615_v44  ;;  %v5712_v44 = vld [vmem:[%s8305_s1 + $0x46c] ss:$16 sps:$4 sm:$0xff]  }
  0x98   :  { %2171 = vmatpush1.bf16.msra.mxu1 %v5618_v45  ;;  %2119 = vmatprep.subr.bf16.mxu0 %v5623_v46  ;;  %v5710_v45 = vld [vmem:[%s8305_s1 + $0x468] ss:$16 sps:$4 sm:$0xff]   ;;  %v5715_v46 = vld [vmem:[%s8305_s1 + $0x34c] ss:$16 sps:$4 sm:$0xff]  }
  0x99   :  { %2172 = vmatprep.subr.bf16.mxu1 %v5626_v47  ;;  %v5713_v47 = vld [vmem:[%s8305_s1 + $0x348] ss:$16 sps:$4 sm:$0xff]  }
  0x9b   :  { %2120 = vmatpush1.bf16.msra.mxu0 %v5621_v48  ;;  %v5716_v48 = vld [vmem:[%s8305_s1 + $0x448] ss:$16 sps:$4 sm:$0xff]  }
  0x9c   :  { %2173 = vmatpush1.bf16.msra.mxu1 %v5624_v50  ;;  %2121 = vmatprep.subr.bf16.mxu0 %v5629_v52  ;;  %v5721_v50 = vld [vmem:[%s8305_s1 + $0x32c] ss:$16 sps:$4 sm:$0xff]  }
  0x9d   :  { %2174 = vmatprep.subr.bf16.mxu1 %v5632_v53  ;;  %v5724_v52 = vld [vmem:[%s8305_s1 + $0x42c] ss:$16 sps:$4 sm:$0xff]   ;;  %v5719_v53 = vld [vmem:[%s8305_s1 + $0x328] ss:$16 sps:$4 sm:$0xff]  }
  0x9f   :  { %2122 = vmatpush1.bf16.msra.mxu0 %v5627_v54  ;;  %v5722_v54 = vld [vmem:[%s8305_s1 + $0x428] ss:$16 sps:$4 sm:$0xff]  }
  0xa0   :  { %2175 = vmatpush1.bf16.msra.mxu1 %v5630_v55  ;;  %2213 = vmatprep.subr.bf16.mxu0 %v5639_v57  ;;  %v5727_v55 = vld [vmem:[%s8305_s1 + $0x30c] ss:$16 sps:$4 sm:$0xff]   ;;  %v5725_v57 = vld [vmem:[%s8305_s1 + $0x308] ss:$16 sps:$4 sm:$0xff]  }
  0xa1   :  { %2176 = vmatprep.subr.bf16.mxu1 %v5636_v56  ;;  %v5730_v56 = vld [vmem:[%s8305_s1 + $0x40c] ss:$16 sps:$4 sm:$0xff]  }
  0xa2   :  { %2140 = vmatmul.mubr.bf16.vlgmr.msra.gmra.mxu0 %v6861_v58 }
  0xa3   :  { %2214 = vmatpush1.bf16.msra.mxu0 %v5637_v60  ;;  %2149 = vmatprep.mubr.bf16.mxu0 %v6253_v39  ;;  %v5733_v60 = vld [vmem:[%s8305_s1 + $0x5ec] ss:$16 sps:$4 sm:$0xff]  }
  0xa4   :  { %2177 = vmatpush2.bf16.msra.mxu1 %v5634_v59  ;;  %2215 = vmatprep.subr.bf16.mxu0 %v5645_v62  ;;  %v5728_v59 = vld [vmem:[%s8305_s1 + $0x408] ss:$16 sps:$4 sm:$0xff]  }
  0xa5   :  { %2178 = vmatprep.subr.bf16.mxu1 %v5642_v61  ;;  %v5736_v61 = vld [vmem:[%s8305_s1 + $0x6ec] ss:$16 sps:$4 sm:$0xff]   ;;  %v5731_v62 = vld [vmem:[%s8305_s1 + $0x5e8] ss:$16 sps:$4 sm:$0xff]  }
  0xa7   :  { %2216 = vmatpush1.bf16.msra.mxu0 %v5643_v0  ;;  %v5739_v0 = vld [vmem:[%s8305_s1 + $0x5cc] ss:$16 sps:$4 sm:$0xff]  }
  0xa8   :  { %2179 = vmatpush2.bf16.msra.mxu1 %v5640_v63  ;;  %2217 = vmatprep.subr.bf16.mxu0 %v5652_v2  ;;  %v5734_v63 = vld [vmem:[%s8305_s1 + $0x6e8] ss:$16 sps:$4 sm:$0xff]  }
  0xa9   :  { %2180 = vmatprep.subr.bf16.mxu1 %v5649_v1  ;;  %v5742_v1 = vld [vmem:[%s8305_s1 + $0x6cc] ss:$16 sps:$4 sm:$0xff]   ;;  %v5737_v2 = vld [vmem:[%s8305_s1 + $0x5c8] ss:$16 sps:$4 sm:$0xff]  }
  0xaa   :  { %2150 = vmatmul.mubr.bf16.gmra.mxu0 %v6892_v3 }
  0xab   :  { %2218 = vmatpush1.bf16.msra.mxu0 %v5650_v6  ;;  %2245 = vmatprep.mubr.bf16.mxu0 %v6462_v51  ;;  %v5670_v51 = vld [vmem:[%s8305_s1 + $0x24c] ss:$16 sps:$4 sm:$0xff]  }
  0xac   :  { %2181 = vmatpush2.bf16.msra.mxu1 %v5647_v5  ;;  %2219 = vmatprep.subr.bf16.mxu0 %v5658_v8  ;;  %v5740_v5 = vld [vmem:[%s8305_s1 + $0x6c8] ss:$16 sps:$4 sm:$0xff]   ;;  %v5748_v8 = vld [vmem:[%s8305_s1 + $0x6ac] ss:$16 sps:$4 sm:$0xff]  }
  0xad   :  { %2182 = vmatprep.subr.bf16.mxu1 %v5655_v7  ;;  %v6243_v6 = vld [vmem:[%s8306_s0 + $0x8] ss:$36 sps:$4 sm:$0xff]  }
  0xae   :  { %v5745_v7 = vld [vmem:[%s8305_s1 + $0x5ac] ss:$16 sps:$4 sm:$0xff]  }
  0xaf   :  { %2220 = vmatpush1.bf16.msra.mxu0 %v5656_v10  ;;  %v5746_v10 = vld [vmem:[%s8305_s1 + $0x6a8] ss:$16 sps:$4 sm:$0xff]  }
  0xb0   :  { %2183 = vmatpush2.bf16.msra.mxu1 %v5653_v9  ;;  %2221 = vmatprep.subr.bf16.mxu0 %v5664_v12  ;;  %v5743_v9 = vld [vmem:[%s8305_s1 + $0x5a8] ss:$16 sps:$4 sm:$0xff]   ;;  %v5751_v12 = vld [vmem:[%s8305_s1 + $0x58c] ss:$16 sps:$4 sm:$0xff]  }
  0xb1   :  { %2184 = vmatprep.subr.bf16.mxu1 %v5661_v11  ;;  %v6244_v11 = vld [vmem:[%s8306_s0 + $0x54] ss:$36 sps:$4 sm:$0xff]  }
  0xb3   :  { %2222 = vmatpush1.bf16.msra.mxu0 %v5662_v14  ;;  %v5749_v14 = vld [vmem:[%s8305_s1 + $0x588] ss:$16 sps:$4 sm:$0xff]  }
  0xb4   :  { %2185 = vmatpush2.bf16.msra.mxu1 %v5659_v13  ;;  %2223 = vmatprep.subr.bf16.mxu0 %v5670_v51  ;;  %v5754_v13 = vld [vmem:[%s8305_s1 + $0x68c] ss:$16 sps:$4 sm:$0xff]  }
  0xb5   :  { %2186 = vmatprep.subr.bf16.mxu1 %v5667_v15  ;;  %v5752_v15 = vld [vmem:[%s8305_s1 + $0x688] ss:$16 sps:$4 sm:$0xff]   ;;  %v5757_v51 = vld [vmem:[%s8305_s1 + $0x56c] ss:$16 sps:$4 sm:$0xff]  }
  0xb7   :  { %2224 = vmatpush1.bf16.msra.mxu0 %v5668_v17  ;;  %v6245_v17 = vld [vmem:[%s8306_s0 + $0x50] ss:$36 sps:$4 sm:$0xff]  }
  0xb8   :  { %2187 = vmatpush2.bf16.msra.mxu1 %v5665_v16  ;;  %2225 = vmatprep.subr.bf16.mxu0 %v5676_v19  ;;  %v5760_v16 = vld [vmem:[%s8305_s1 + $0x66c] ss:$16 sps:$4 sm:$0xff]   ;;  %v5758_v19 = vld [vmem:[%s8305_s1 + $0x668] ss:$16 sps:$4 sm:$0xff]  }
  0xb9   :  { %2188 = vmatprep.subr.bf16.mxu1 %v5673_v18  ;;  %v5755_v18 = vld [vmem:[%s8305_s1 + $0x568] ss:$16 sps:$4 sm:$0xff]  }
  0xbb   :  { %2226 = vmatpush1.bf16.msra.mxu0 %v5674_v21  ;;  %v5763_v21 = vld [vmem:[%s8305_s1 + $0x54c] ss:$16 sps:$4 sm:$0xff]  }
  0xbc   :  { %2189 = vmatpush2.bf16.msra.mxu1 %v5671_v20  ;;  %2227 = vmatprep.subr.bf16.mxu0 %v5682_v23  ;;  %v6246_v20 = vld [vmem:[%s8306_s0 + $0x1c] ss:$36 sps:$4 sm:$0xff]   ;;  %v5761_v23 = vld [vmem:[%s8305_s1 + $0x548] ss:$16 sps:$4 sm:$0xff]  }
  0xbd   :  { %2190 = vmatprep.subr.bf16.mxu1 %v5679_v22  ;;  %v5766_v22 = vld [vmem:[%s8305_s1 + $0x64c] ss:$16 sps:$4 sm:$0xff]  }
  0xbf   :  { %2228 = vmatpush1.bf16.msra.mxu0 %v5680_v25  ;;  %v5769_v25 = vld [vmem:[%s8305_s1 + $0x52c] ss:$16 sps:$4 sm:$0xff]  }
  0xc0   :  { %2191 = vmatpush2.bf16.msra.mxu1 %v5677_v24  ;;  %2229 = vmatprep.subr.bf16.mxu0 %v5685_v28  ;;  %v5764_v24 = vld [vmem:[%s8305_s1 + $0x648] ss:$16 sps:$4 sm:$0xff]   ;;  %v5772_v28 = vld [vmem:[%s8305_s1 + $0x62c] ss:$16 sps:$4 sm:$0xff]  }
  0xc1   :  { %2266 = vmatprep.subr.bf16.mxu1 %v5688_v29  ;;  %v5767_v29 = vld [vmem:[%s8305_s1 + $0x528] ss:$16 sps:$4 sm:$0xff]  }
  0xc3   :  { %2193 = vmatmul.mubr.bf16.vlgmr.msra.gmra.mxu1 %v6517_v4  ;;  %2230 = vmatpush2.bf16.msra.mxu0 %v5683_v30  ;;  %v5700_v4 = vld [vmem:[%s8305_s1 + $0x4ac] ss:$16 sps:$4 sm:$0xff]   ;;  %v5770_v30 = vld [vmem:[%s8305_s1 + $0x628] ss:$16 sps:$4 sm:$0xff]  }
  0xc4   :  { %2267 = vmatpush1.bf16.msra.mxu1 %v5686_v31  ;;  %2231 = vmatprep.subr.bf16.mxu0 %v5691_v32  ;;  %v5775_v31 = vld [vmem:[%s8305_s1 + $0x50c] ss:$16 sps:$4 sm:$0xff]  }
  0xc5   :  { %2268 = vmatprep.subr.bf16.mxu1 %v5694_v33  ;;  %2202 = vmatprep.mubr.bf16.mxu1 %v6586_v26  ;;  %v5706_v26 = vld [vmem:[%s8305_s1 + $0x48c] ss:$16 sps:$4 sm:$0xff]   ;;  %v5773_v33 = vld [vmem:[%s8305_s1 + $0x508] ss:$16 sps:$4 sm:$0xff]  }
  0xc6   :  { %v5778_v32 = vld [vmem:[%s8305_s1 + $0x60c] ss:$16 sps:$4 sm:$0xff]  }
  0xc7   :  { %2232 = vmatpush2.bf16.msra.mxu0 %v5689_v34  ;;  %v5776_v34 = vld [vmem:[%s8305_s1 + $0x608] ss:$16 sps:$4 sm:$0xff]  }
  0xc8   :  { %2269 = vmatpush1.bf16.msra.mxu1 %v5692_v35  ;;  %2233 = vmatprep.subr.bf16.mxu0 %v5697_v36  ;;  %v5781_v35 = vld [vmem:[%s8305_s1 + $0x7ec] ss:$16 sps:$4 sm:$0xff]  }
  0xc9   :  { %2270 = vmatprep.subr.bf16.mxu1 %v5700_v4  ;;  %v5784_v36 = vld [vmem:[%s8305_s1 + $0x8ec] ss:$16 sps:$4 sm:$0xff]   ;;  %v5779_v4 = vld [vmem:[%s8305_s1 + $0x7e8] ss:$16 sps:$4 sm:$0xff]  }
  0xcb   :  { %2203 = vmatmul.mubr.bf16.gmra.mxu1 %v6591_v27  ;;  %2234 = vmatpush2.bf16.msra.mxu0 %v5695_v37  ;;  %v5707_v27 = vld [vmem:[%s8305_s1 + $0x368] ss:$16 sps:$4 sm:$0xff]  }
  0xcc   :  { %2271 = vmatpush1.bf16.msra.mxu1 %v5698_v38  ;;  %2235 = vmatprep.subr.bf16.mxu0 %v5703_v40  ;;  %v5782_v37 = vld [vmem:[%s8305_s1 + $0x8e8] ss:$16 sps:$4 sm:$0xff]   ;;  %v5787_v38 = vld [vmem:[%s8305_s1 + $0x7cc] ss:$16 sps:$4 sm:$0xff]  }
  0xcd   :  { %2272 = vmatprep.subr.bf16.mxu1 %v5706_v26  ;;  %2298 = vmatprep.mubr.bf16.mxu1 %v6637_v41  ;;  %v5718_v41 = vld [vmem:[%s8305_s1 + $0x44c] ss:$16 sps:$4 sm:$0xff]   ;;  %v6247_v26 = vld [vmem:[%s8306_s0 + $0x10] ss:$36 sps:$4 sm:$0xff]  }
  0xce   :  { %v5790_v40 = vld [vmem:[%s8305_s1 + $0x8cc] ss:$16 sps:$4 sm:$0xff]  }
  0xcf   :  { %2236 = vmatpush2.bf16.msra.mxu0 %v5701_v42  ;;  %v5785_v42 = vld [vmem:[%s8305_s1 + $0x7c8] ss:$16 sps:$4 sm:$0xff]  }
  0xd0   :  { %2273 = vmatpush1.bf16.msra.mxu1 %v5704_v43  ;;  %2237 = vmatprep.subr.bf16.mxu0 %v5709_v49  ;;  %v5788_v43 = vld [vmem:[%s8305_s1 + $0x8c8] ss:$16 sps:$4 sm:$0xff]   ;;  %v5793_v49 = vld [vmem:[%s8305_s1 + $0x7ac] ss:$16 sps:$4 sm:$0xff]  }
  0xd1   :  { %2274 = vmatprep.subr.bf16.mxu1 %v5712_v44  ;;  %v5796_v44 = vld [vmem:[%s8305_s1 + $0x8ac] ss:$16 sps:$4 sm:$0xff]  }
  0xd3   :  { %2238 = vmatpush2.bf16.msra.mxu0 %v5707_v27  ;;  %v6248_v27 = vld [vmem:[%s8306_s0 + $0x5c] ss:$36 sps:$4 sm:$0xff]  }
  0xd4   :  { %2275 = vmatpush1.bf16.msra.mxu1 %v5710_v45  ;;  %2239 = vmatprep.subr.bf16.mxu0 %v5715_v46  ;;  %v5791_v45 = vld [vmem:[%s8305_s1 + $0x7a8] ss:$16 sps:$4 sm:$0xff]  }
  0xd5   :  { %2276 = vmatprep.subr.bf16.mxu1 %v5718_v41  ;;  %v5794_v46 = vld [vmem:[%s8305_s1 + $0x8a8] ss:$16 sps:$4 sm:$0xff]   ;;  %v5799_v41 = vld [vmem:[%s8305_s1 + $0x78c] ss:$16 sps:$4 sm:$0xff]  }
  0xd7   :  { %2240 = vmatpush2.bf16.msra.mxu0 %v5713_v47  ;;  %v5802_v47 = vld [vmem:[%s8305_s1 + $0x88c] ss:$16 sps:$4 sm:$0xff]  }
  0xd8   :  { %2277 = vmatpush1.bf16.msra.mxu1 %v5716_v48  ;;  %2241 = vmatprep.subr.bf16.mxu0 %v5721_v50  ;;  %v6249_v48 = vld [vmem:[%s8306_s0 + $0x58] ss:$36 sps:$4 sm:$0xff]  }
  0xd9   :  { %2278 = vmatprep.subr.bf16.mxu1 %v5724_v52  ;;  %v5797_v50 = vld [vmem:[%s8305_s1 + $0x788] ss:$16 sps:$4 sm:$0xff]  }
  0xda   :  { %v5800_v52 = vld [vmem:[%s8305_s1 + $0x888] ss:$16 sps:$4 sm:$0xff]  }
  0xdb   :  { %2242 = vmatpush2.bf16.msra.mxu0 %v5719_v53  ;;  %v5805_v53 = vld [vmem:[%s8305_s1 + $0x76c] ss:$16 sps:$4 sm:$0xff]  }
  0xdc   :  { %2279 = vmatpush1.bf16.msra.mxu1 %v5722_v54  ;;  %2243 = vmatprep.subr.bf16.mxu0 %v5727_v55  ;;  %v5808_v54 = vld [vmem:[%s8305_s1 + $0x86c] ss:$16 sps:$4 sm:$0xff]   ;;  %v5803_v55 = vld [vmem:[%s8305_s1 + $0x768] ss:$16 sps:$4 sm:$0xff]  }
  0xdd   :  { %2280 = vmatprep.subr.bf16.mxu1 %v5730_v56  ;;  %v5806_v56 = vld [vmem:[%s8305_s1 + $0x868] ss:$16 sps:$4 sm:$0xff]  }
  0xdf   :  { %2244 = vmatpush2.bf16.msra.mxu0 %v5725_v57  ;;  %v5811_v57 = vld [vmem:[%s8305_s1 + $0x74c] ss:$16 sps:$4 sm:$0xff]  }
  0xe0   :  { %2281 = vmatpush1.bf16.msra.mxu1 %v5728_v59  ;;  %2319 = vmatprep.subr.bf16.mxu0 %v5736_v61  ;;  %v5814_v59 = vld [vmem:[%s8305_s1 + $0x84c] ss:$16 sps:$4 sm:$0xff]   ;;  %v5812_v61 = vld [vmem:[%s8305_s1 + $0x848] ss:$16 sps:$4 sm:$0xff]  }
  0xe1   :  { %2282 = vmatprep.subr.bf16.mxu1 %v5733_v60  ;;  %v5809_v60 = vld [vmem:[%s8305_s1 + $0x748] ss:$16 sps:$4 sm:$0xff]  }
  0xe2   :  { %2246 = vmatmul.mubr.bf16.vlgmr.msra.gmra.mxu0 %v6243_v6  ;;  %v5821_v6 = vld [vmem:[%s8305_s1 + $0x708] ss:$16 sps:$4 sm:$0xff]  }
  0xe3   :  { %2320 = vmatpush1.bf16.msra.mxu0 %v5734_v63  ;;  %2255 = vmatprep.mubr.bf16.mxu0 %v6244_v11  ;;  %v5820_v63 = vld [vmem:[%s8305_s1 + $0x82c] ss:$16 sps:$4 sm:$0xff]  }
  0xe4   :  { %2283 = vmatpush2.bf16.msra.mxu1 %v5731_v62  ;;  %2321 = vmatprep.subr.bf16.mxu0 %v5742_v1  ;;  %v5817_v62 = vld [vmem:[%s8305_s1 + $0x72c] ss:$16 sps:$4 sm:$0xff]   ;;  %v5818_v1 = vld [vmem:[%s8305_s1 + $0x828] ss:$16 sps:$4 sm:$0xff]  }
  0xe5   :  { %2284 = vmatprep.subr.bf16.mxu1 %v5739_v0  ;;  %v5815_v0 = vld [vmem:[%s8305_s1 + $0x728] ss:$16 sps:$4 sm:$0xff]  }
  0xe6   :  { %v6250_v11 = vld [vmem:[%s8306_s0 + $0x18] ss:$36 sps:$4 sm:$0xff]  }
  0xe7   :  { %2322 = vmatpush1.bf16.msra.mxu0 %v5740_v5  ;;  %v5826_v5 = vld [vmem:[%s8305_s1 + $0x80c] ss:$16 sps:$4 sm:$0xff]  }
  0xe8   :  { %2285 = vmatpush2.bf16.msra.mxu1 %v5737_v2  ;;  %2323 = vmatprep.subr.bf16.mxu0 %v5748_v8  ;;  %v5823_v2 = vld [vmem:[%s8305_s1 + $0x70c] ss:$16 sps:$4 sm:$0xff]   ;;  %v5829_v8 = vld [vmem:[%s8307_s3 + $0xe4] ss:$16 sps:$4 sm:$0xff]  }
  0xe9   :  { %2286 = vmatprep.subr.bf16.mxu1 %v5745_v7  ;;  %v5824_v7 = vld [vmem:[%s8305_s1 + $0x808] ss:$16 sps:$4 sm:$0xff]  }
  0xea   :  { %2256 = vmatmul.mubr.bf16.gmra.mxu0 %v6245_v17  ;;  %v5836_v17 = vld [vmem:[%s8307_s3 + $0x80] ss:$16 sps:$4 sm:$0xff]  }
  0xeb   :  { %2324 = vmatpush1.bf16.msra.mxu0 %v5746_v10  ;;  %2351 = vmatprep.mubr.bf16.mxu0 %v6246_v20  ;;  %v5832_v10 = vld [vmem:[%s8307_s3 + $0xc4] ss:$16 sps:$4 sm:$0xff]   ;;  %v5839_v20 = vld [vmem:[%s8307_s3 + $0x60] ss:$16 sps:$4 sm:$0xff]  }
  0xec   :  { %2287 = vmatpush2.bf16.msra.mxu1 %v5743_v9  ;;  %2325 = vmatprep.subr.bf16.mxu0 %v5754_v13  ;;  %v5827_v9 = vld [vmem:[%s8307_s3 + $0xe0] ss:$16 sps:$4 sm:$0xff]  }
  0xed   :  { %2288 = vmatprep.subr.bf16.mxu1 %v5751_v12  ;;  %v6251_v12 = vld [vmem:[%s8306_s0 + $0x64] ss:$36 sps:$4 sm:$0xff]   ;;  %v5830_v13 = vld [vmem:[%s8307_s3 + $0xc0] ss:$16 sps:$4 sm:$0xff]  }
  0xef   :  { %2326 = vmatpush1.bf16.msra.mxu0 %v5752_v15 }
  0xf0   :  { %2289 = vmatpush2.bf16.msra.mxu1 %v5749_v14  ;;  %2327 = vmatprep.subr.bf16.mxu0 %v5760_v16  ;;  %v5835_v14 = vld [vmem:[%s8307_s3 + $0xa4] ss:$16 sps:$4 sm:$0xff]  }
  0xf1   :  { %2290 = vmatprep.subr.bf16.mxu1 %v5757_v51  ;;  %v6252_v51 = vld [vmem:[%s8306_s0 + $0x60] ss:$36 sps:$4 sm:$0xff]  }
  0xf3   :  { %2328 = vmatpush1.bf16.msra.mxu0 %v5758_v19 }
  0xf4   :  { %2291 = vmatpush2.bf16.msra.mxu1 %v5755_v18  ;;  %2329 = vmatprep.subr.bf16.mxu0 %v5766_v22  ;;  %v5841_v18 = vld [vmem:[%s8307_s3 + $0x64] ss:$16 sps:$4 sm:$0xff]   ;;  %v5842_v22 = vld [vmem:[%s8307_s3 + $0x40] ss:$16 sps:$4 sm:$0xff]  }
  0xf5   :  { %2292 = vmatprep.subr.bf16.mxu1 %v5763_v21 }
  0xf7   :  { %2330 = vmatpush1.bf16.msra.mxu0 %v5764_v24 }
  0xf8   :  { %2293 = vmatpush2.bf16.msra.mxu1 %v5761_v23  ;;  %2331 = vmatprep.subr.bf16.mxu0 %v5772_v28  ;;  %v5847_v23 = vld [vmem:[%s8307_s3 + $0x24] ss:$16 sps:$4 sm:$0xff]   ;;  %v5845_v28 = vld [vmem:[%s8307_s3 + $0x20] ss:$16 sps:$4 sm:$0xff]  }
  0xf9   :  { %2294 = vmatprep.subr.bf16.mxu1 %v5769_v25 }
  0xfb   :  { %2332 = vmatpush1.bf16.msra.mxu0 %v5770_v30 }
  0xfc   :  { %2295 = vmatpush2.bf16.msra.mxu1 %v5767_v29  ;;  %2333 = vmatprep.subr.bf16.mxu0 %v5778_v32  ;;  %v5850_v29 = vld [vmem:[%s8307_s3 + $0x4] ss:$16 sps:$4 sm:$0xff]   ;;  %v5848_v32 = vld [vmem:[%s8307_s3] ss:$16 sps:$4 sm:$0xff]  }
  0xfd   :  { %2296 = vmatprep.subr.bf16.mxu1 %v5775_v31 }
  0xff   :  { %2334 = vmatpush1.bf16.msra.mxu0 %v5776_v34  ;;  %v5925_v34 = vld [vmem:[%s8307_s3 + $0x2e4] ss:$16 sps:$4 sm:$0xff]  }
 0x100   :  { %2297 = vmatpush2.bf16.msra.mxu1 %v5773_v33  ;;  %2335 = vmatprep.subr.bf16.mxu0 %v5781_v35  ;;  %v5923_v33 = vld [vmem:[%s8307_s3 + $0x2e0] ss:$16 sps:$4 sm:$0xff]   ;;  %v5853_v35 = vld [vmem:[%s8307_s3 + $0x1e4] ss:$16 sps:$4 sm:$0xff]  }
 0x101   :  { %2372 = vmatprep.subr.bf16.mxu1 %v5784_v36  ;;  %v5928_v36 = vld [vmem:[%s8307_s3 + $0x2c4] ss:$16 sps:$4 sm:$0xff]  }
 0x102   :  { %v7299_v15 = vpop.f32.mrf.mxu0 }
 0x103   :  { %2299 = vmatmul.mubr.bf16.vlgmr.msra.gmra.mxu1 %v6247_v26  ;;  %2336 = vmatpush2.bf16.msra.mxu0 %v5779_v4  ;;  %v7335_v24 = vpop.f32.mrf.mxu1  ;;  %v5856_v26 = vld [vmem:[%s8307_s3 + $0x1c4] ss:$16 sps:$4 sm:$0xff]  }
 0x104   :  { %2373 = vmatpush1.bf16.msra.mxu1 %v5782_v37  ;;  %2337 = vmatprep.subr.bf16.mxu0 %v5787_v38  ;;  %v7311_v16 = vpop.f32.mrf.mxu0  ;;  %v5926_v38 = vld [vmem:[%s8307_s3 + $0x2c0] ss:$16 sps:$4 sm:$0xff]  }
 0x105   :  { %2374 = vmatprep.subr.bf16.mxu1 %v5790_v40  ;;  %2308 = vmatprep.mubr.bf16.mxu1 %v6248_v27  ;;  %v7345_v30 = vpop.f32.mrf.mxu1  ;;  %v5851_v40 = vld [vmem:[%s8307_s3 + $0x1e0] ss:$16 sps:$4 sm:$0xff]  }
 0x106   :  { %v7319_v19 = vpop.f32.mrf.mxu0  ;;  %v5854_v27 = vld [vmem:[%s8307_s3 + $0x1c0] ss:$16 sps:$4 sm:$0xff]  }
 0x107   :  { %2338 = vmatpush2.bf16.msra.mxu0 %v5785_v42  ;;  %v7364_v4 = vpop.f32.mrf.mxu1 }
 0x108   :  { %2375 = vmatpush1.bf16.msra.mxu1 %v5788_v43  ;;  %2339 = vmatprep.subr.bf16.mxu0 %v5793_v49  ;;  %v7327_v21 = vpop.f32.mrf.mxu0 }
 0x109   :  { %2376 = vmatprep.subr.bf16.mxu1 %v5796_v44  ;;  %v7377_v42 = vpop.f32.mrf.mxu1 }
 0x10a   :  { %v7337_v25 = vpop.f32.mrf.mxu0 }
 0x10b   :  { %2309 = vmatmul.mubr.bf16.gmra.mxu1 %v6249_v48  ;;  %2340 = vmatpush2.bf16.msra.mxu0 %v5791_v45  ;;  %v7381_v49 = vpop.f32.mrf.mxu1  ;;  %v5931_v45 = vld [vmem:[%s8307_s3 + $0x2a4] ss:$16 sps:$4 sm:$0xff]  }
 0x10c   :  { %2377 = vmatpush1.bf16.msra.mxu1 %v5794_v46  ;;  %2341 = vmatprep.subr.bf16.mxu0 %v5799_v41  ;;  %v7347_v31 = vpop.f32.mrf.mxu0  ;;  %v5859_v46 = vld [vmem:[%s8307_s3 + $0x1a4] ss:$16 sps:$4 sm:$0xff]   ;;  %v5929_v41 = vld [vmem:[%s8307_s3 + $0x2a0] ss:$16 sps:$4 sm:$0xff]  }
 0x10d   :  { %2378 = vmatprep.subr.bf16.mxu1 %v5802_v47  ;;  %2404 = vmatprep.mubr.bf16.mxu1 %v6253_v39  ;;  %v7397_v47 = vpop.f32.mrf.mxu1 }
 0x10e   :  { %v7366_v37 = vpop.f32.mrf.mxu0 }
 0x10f   :  { %2342 = vmatpush2.bf16.msra.mxu0 %v5797_v50  ;;  %v5857_v50 = vld [vmem:[%s8307_s3 + $0x1a0] ss:$16 sps:$4 sm:$0xff]  }
 0x110   :  { %2379 = vmatpush1.bf16.msra.mxu1 %v5800_v52  ;;  %2343 = vmatprep.subr.bf16.mxu0 %v5805_v53  ;;  %v7379_v43 = vpop.f32.mrf.mxu0  ;;  %v5934_v52 = vld [vmem:[%s8307_s3 + $0x284] ss:$16 sps:$4 sm:$0xff]  }
 0x111   :  { %2380 = vmatprep.subr.bf16.mxu1 %v5808_v54  ;;  %v5862_v53 = vld [vmem:[%s8307_s3 + $0x184] ss:$16 sps:$4 sm:$0xff]   ;;  %v5932_v54 = vld [vmem:[%s8307_s3 + $0x280] ss:$16 sps:$4 sm:$0xff]  }
 0x113   :  { %2344 = vmatpush2.bf16.msra.mxu0 %v5803_v55  ;;  %v7413_v55 = vpop.f32.mrf.mxu1 }
 0x114   :  { %2381 = vmatpush1.bf16.msra.mxu1 %v5806_v56  ;;  %2345 = vmatprep.subr.bf16.mxu0 %v5811_v57  ;;  %v5860_v57 = vld [vmem:[%s8307_s3 + $0x180] ss:$16 sps:$4 sm:$0xff]  }
 0x115   :  { %2382 = vmatprep.subr.bf16.mxu1 %v5814_v59  ;;  %v5937_v59 = vld [vmem:[%s8307_s3 + $0x264] ss:$16 sps:$4 sm:$0xff]  }
 0x117   :  { %2346 = vmatpush2.bf16.msra.mxu0 %v5809_v60  ;;  %v5865_v60 = vld [vmem:[%s8307_s3 + $0x164] ss:$16 sps:$4 sm:$0xff]  }
 0x118   :  { %2383 = vmatpush1.bf16.msra.mxu1 %v5812_v61  ;;  %2347 = vmatprep.subr.bf16.mxu0 %v5817_v62  ;;  %v5935_v61 = vld [vmem:[%s8307_s3 + $0x260] ss:$16 sps:$4 sm:$0xff]   ;;  %v7429_v62 = vpop.f32.mrf.mxu1 }
 0x119   :  { %2384 = vmatprep.subr.bf16.mxu1 %v5820_v63 }
 0x11b   :  { %2348 = vmatpush2.bf16.msra.mxu0 %v5815_v0  ;;  %v5863_v0 = vld [vmem:[%s8307_s3 + $0x160] ss:$16 sps:$4 sm:$0xff]  }
 0x11c   :  { %2385 = vmatpush1.bf16.msra.mxu1 %v5818_v1  ;;  %2349 = vmatprep.subr.bf16.mxu0 %v5823_v2  ;;  %v5940_v1 = vld [vmem:[%s8307_s3 + $0x244] ss:$16 sps:$4 sm:$0xff]  }
 0x11d   :  { %2386 = vmatprep.subr.bf16.mxu1 %v5826_v5  ;;  %v5868_v2 = vld [vmem:[%s8307_s3 + $0x144] ss:$16 sps:$4 sm:$0xff]   ;;  %v5938_v5 = vld [vmem:[%s8307_s3 + $0x240] ss:$16 sps:$4 sm:$0xff]  }
 0x11f   :  { %2350 = vmatpush2.bf16.msra.mxu0 %v5821_v6  ;;  %v5943_v6 = vld [vmem:[%s8307_s3 + $0x224] ss:$16 sps:$4 sm:$0xff]  }
 0x120   :  { %2387 = vmatpush1.bf16.msra.mxu1 %v5824_v7  ;;  %3247 = vmatprep.subr.bf16.mxu0 %v5829_v8  ;;  %v343_v7 = vlaneseq }
 0x121   :  { %3288 = vmatprep.subr.bf16.mxu1 %v5925_v34  ;;  %v5952_v34 = vld [vmem:[%s8307_s3 + $0x3c4] ss:$16 sps:$4 sm:$0xff]  }
 0x122   :  { %2352 = vmatmul.mubr.bf16.vlgmr.msra.gmra.mxu0 %v6250_v11  ;;  %v5866_v11 = vld [vmem:[%s8307_s3 + $0x140] ss:$16 sps:$4 sm:$0xff]  }
 0x123   :  { %2405 = vmatmul.mubr.bf16.vlgmr.msra.gmra.mxu1 %v6861_v58  ;;  %2361 = vmatprep.mubr.bf16.mxu0 %v6251_v12  ;;  %v5833_v58 = vld [vmem:[%s8307_s3 + $0xa0] ss:$16 sps:$4 sm:$0xff]   ;;  %v5946_v12 = vld [vmem:[%s8307_s3 + $0x204] ss:$16 sps:$4 sm:$0xff]  }
 0x124   :  { %2414 = vmatprep.mubr.bf16.mxu1 %v6253_v39  ;;  %3248 = vmatpush1.bf16.msra.mxu0 %v5827_v9  ;;  %v5838_v39 = vld [vmem:[%s8307_s3 + $0x84] ss:$16 sps:$4 sm:$0xff]   ;;  %v5941_v9 = vld [vmem:[%s8307_s3 + $0x220] ss:$16 sps:$4 sm:$0xff]  }
 0x125   :  { %3249 = vmatprep.subr.bf16.mxu0 %v5832_v10  ;;  %3289 = vmatpush1.bf16.msra.mxu1 %v5923_v33  ;;  %v5872_v33 = vld [vmem:[%s8307_s3 + $0x100] ss:$16 sps:$4 sm:$0xff]  }
 0x126   :  { %3290 = vmatprep.subr.bf16.mxu1 %v5928_v36 }
 0x128   :  { %3250 = vmatpush1.bf16.msra.mxu0 %v5830_v13  ;;  %v5871_v13 = vld [vmem:[%s8307_s3 + $0x124] ss:$16 sps:$4 sm:$0xff]  }
 0x129   :  { %3251 = vmatprep.subr.bf16.mxu0 %v5835_v14  ;;  %3291 = vmatpush1.bf16.msra.mxu1 %v5926_v38  ;;  %v7464_v14 = vshrl.u32 %v343_v7, 7 }
 0x12a   :  { %2362 = vmatmul.mubr.bf16.gmra.mxu0 %v6252_v51  ;;  %3292 = vmatprep.subr.bf16.mxu1 %v5931_v45 }
 0x12b   :  { %2415 = vmatmul.mubr.bf16.gmra.mxu1 %v6892_v3  ;;  %v5844_v3 = vld [vmem:[%s8307_s3 + $0x44] ss:$16 sps:$4 sm:$0xff]  }
 0x12c   :  { %3252 = vmatpush1.bf16.msra.mxu0 %v5833_v58 }
 0x12d   :  { %3253 = vmatprep.subr.bf16.mxu0 %v5838_v39  ;;  %3293 = vmatpush1.bf16.msra.mxu1 %v5929_v41  ;;  %v5944_v39 = vld [vmem:[%s8307_s3 + $0x200] ss:$16 sps:$4 sm:$0xff]  }
 0x12e   :  { %3294 = vmatprep.subr.bf16.mxu1 %v5934_v52 }
 0x130   :  { %3254 = vmatpush1.bf16.msra.mxu0 %v5836_v17  ;;  %v5869_v17 = vld [vmem:[%s8307_s3 + $0x120] ss:$16 sps:$4 sm:$0xff]  }
 0x131   :  { %3255 = vmatprep.subr.bf16.mxu0 %v5841_v18  ;;  %3295 = vmatpush1.bf16.msra.mxu1 %v5932_v54  ;;  %v5949_v18 = vld [vmem:[%s8307_s3 + $0x3e4] ss:$16 sps:$4 sm:$0xff]  }
 0x132   :  { %3296 = vmatprep.subr.bf16.mxu1 %v5937_v59 }
 0x134   :  { %3256 = vmatpush1.bf16.msra.mxu0 %v5839_v20  ;;  %v5874_v20 = vld [vmem:[%s8307_s3 + $0x104] ss:$16 sps:$4 sm:$0xff]  }
 0x135   :  { %3257 = vmatprep.subr.bf16.mxu0 %v5844_v3  ;;  %3297 = vmatpush1.bf16.msra.mxu1 %v5935_v61  ;;  %v7483_v3 = vsub.s32 0, %v7464_v14 }
 0x136   :  { %3298 = vmatprep.subr.bf16.mxu1 %v5940_v1 }
 0x138   :  { %3258 = vmatpush1.bf16.msra.mxu0 %v5842_v22  ;;  %v7486_v22 = vsub.s32 1, %v7464_v14 }
 0x139   :  { %3259 = vmatprep.subr.bf16.mxu0 %v5847_v23  ;;  %3299 = vmatpush1.bf16.msra.mxu1 %v5938_v5 }
 0x13a   :  { %3300 = vmatprep.subr.bf16.mxu1 %v5943_v6 }
 0x13c   :  { %3260 = vmatpush1.bf16.msra.mxu0 %v5845_v28  ;;  %v7491_v28 = vld [vmem:[%s8308_s2] sm:$0xf] }
 0x13d   :  { %3261 = vmatprep.subr.bf16.mxu0 %v5850_v29  ;;  %3301 = vmatpush1.bf16.msra.mxu1 %v5941_v9  ;;  %v5947_v29 = vld [vmem:[%s8307_s3 + $0x3e0] ss:$16 sps:$4 sm:$0xff]   ;;  %v346_v36 = vrot.slane %v7491_v28, %v7483_v3  ;;  %v350_v38 = vrot.slane %v7491_v28, %v7486_v22 }
 0x13e   :  { %3302 = vmatprep.subr.bf16.mxu1 %v5946_v12 }
 0x13f   :  { %v1936_v41 = vadd.f32 %v7327_v21, %v350_v38  ;;  %v1930_v52 = vadd.f32 %v7299_v15, %v346_v36  ;;  %v1944_v59 = vadd.f32 %v7366_v37, %v346_v36  ;;  %v5955_v21 = vld [vmem:[%s8307_s3 + $0x3a4] ss:$16 sps:$4 sm:$0xff]  }
 0x140   :  { %3262 = vmatpush1.bf16.msra.mxu0 %v5848_v32 }
 0x141   :  { %3263 = vmatprep.subr.bf16.mxu0 %v5853_v35  ;;  %3303 = vmatpush1.bf16.msra.mxu1 %v5944_v39  ;;  %v5877_v35 = vld [vmem:[%s8307_s3 + $0xec] ss:$16 sps:$4 sm:$0xff]   ;;  %v1983_v37 = vadd.f32 %v7335_v24, %v1930_v52 }
 0x142   :  { %v7383_v44 = vpop.f32.mrf.mxu0  ;;  %3304 = vmatprep.subr.bf16.mxu1 %v5949_v18 }
 0x143   :  { %v7448_v8 = vpop.f32.mrf.mxu1  ;;  %v2036_v5 = vadd.f32 %v7383_v44, %v1983_v37 }
 0x144   :  { %3264 = vmatpush2.bf16.msra.mxu0 %v5851_v40  ;;  %v7399_v48 = vpop.f32.mrf.mxu0 }
 0x145   :  { %3265 = vmatprep.subr.bf16.mxu0 %v5856_v26  ;;  %v7466_v58 = vpop.f32.mrf.mxu1  ;;  %3305 = vmatpush2.bf16.msra.mxu1 %v5947_v29  ;;  %v5950_v26 = vld [vmem:[%s8307_s3 + $0x3c0] ss:$16 sps:$4 sm:$0xff]   ;;  %v2089_v12 = vadd.f32 %v7448_v8, %v2036_v5  ;;  %v5881_v5 = vld [vmem:[%s8307_s3 + $0xa8] ss:$16 sps:$4 sm:$0xff]  }
 0x146   :  { %v7415_v56 = vpop.f32.mrf.mxu0  ;;  %3306 = vmatprep.subr.bf16.mxu1 %v5952_v34 }
 0x147   :  { %v2092_v23 = vpop.f32.mrf.mxu1 }
 0x148   :  { %3266 = vmatpush2.bf16.msra.mxu0 %v5854_v27  ;;  %v7431_v63 = vpop.f32.mrf.mxu0  ;;  %v1934_v27 = vadd.f32 %v7319_v19, %v346_v36 }
 0x149   :  { %3267 = vmatprep.subr.bf16.mxu0 %v5859_v46  ;;  %v2094_v40 = vpop.f32.mrf.mxu1  ;;  %3307 = vmatpush2.bf16.msra.mxu1 %v5950_v26  ;;  %v5964_v26 = vld [vmem:[%s8307_s3 + $0x344] ss:$16 sps:$4 sm:$0xff]  }
 0x14a   :  { %v7453_v10 = vpop.f32.mrf.mxu0  ;;  %v1987_v19 = vadd.f32 %v7364_v4, %v1934_v27  ;;  %3308 = vmatprep.subr.bf16.mxu1 %v5955_v21 }
 0x14b   :  { %v2098_v45 = vpop.f32.mrf.mxu1 }
 0x14c   :  { %3268 = vmatpush2.bf16.msra.mxu0 %v5857_v50  ;;  %v7471_v51 = vpop.f32.mrf.mxu0  ;;  %v1940_v50 = vadd.f32 %v7337_v25, %v346_v36  ;;  %v1989_v25 = vadd.f32 %v7377_v42, %v1936_v41  ;;  %v1997_v42 = vadd.f32 %v7413_v55, %v1944_v59 }
 0x14d   :  { %3269 = vmatprep.subr.bf16.mxu0 %v5862_v53  ;;  %v1932_v53 = vadd.f32 %v7311_v16, %v350_v38  ;;  %v1946_v16 = vadd.f32 %v7379_v43, %v350_v38 }
 0x14e   :  { %v2049_v32 = vpop.f32.mrf.mxu0  ;;  %v1993_v15 = vadd.f32 %v7381_v49, %v1940_v50  ;;  %v2042_v49 = vadd.f32 %v7431_v63, %v1989_v25  ;;  %v5956_v63 = vld [vmem:[%s8307_s3 + $0x380] ss:$16 sps:$4 sm:$0xff]  }
 0x14f   :  { %v1985_v4 = vadd.f32 %v7345_v30, %v1932_v53  ;;  %v5958_v30 = vld [vmem:[%s8307_s3 + $0x384] ss:$16 sps:$4 sm:$0xff]   ;;  %v2050_v55 = vadd.f32 %v2049_v32, %v1997_v42  ;;  %v5959_v32 = vld [vmem:[%s8307_s3 + $0x360] ss:$16 sps:$4 sm:$0xff]   ;;  %v5973_v42 = vld [vmem:[%s8307_s3 + $0x2ec] ss:$16 sps:$4 sm:$0xff]  }
 0x150   :  { %3270 = vmatpush2.bf16.msra.mxu0 %v5860_v57  ;;  %v2051_v46 = vpop.f32.mrf.mxu0  ;;  %v1942_v57 = vadd.f32 %v7347_v31, %v350_v38  ;;  %v5953_v31 = vld [vmem:[%s8307_s3 + $0x3a0] ss:$16 sps:$4 sm:$0xff]   ;;  %v2046_v43 = vadd.f32 %v7453_v10, %v1993_v15  ;;  %v2095_v44 = vadd.f32 %v2094_v40, %v2042_v49  ;;  %v5878_v49 = vld [vmem:[%s8307_s3 + $0xc8] ss:$16 sps:$4 sm:$0xff]  }
 0x151   :  { %3271 = vmatprep.subr.bf16.mxu0 %v5865_v60  ;;  %v2100_v60 = vpop.f32.mrf.mxu1  ;;  %3309 = vmatpush2.bf16.msra.mxu1 %v5953_v31  ;;  %v2038_v6 = vadd.f32 %v7399_v48, %v1985_v4  ;;  %v5962_v50 = vld [vmem:[%s8307_s3 + $0x340] ss:$16 sps:$4 sm:$0xff]   ;;  %v5970_v31 = vld [vmem:[%s8307_s3 + $0x304] ss:$16 sps:$4 sm:$0xff]   ;;  %v5875_v4 = vld [vmem:[%s8307_s3 + $0xe8] ss:$16 sps:$4 sm:$0xff]  }
 0x152   :  { %3310 = vmatprep.subr.bf16.mxu1 %v5958_v30  ;;  %v2099_v48 = vadd.f32 %v2098_v45, %v2046_v43  ;;  %v5965_v25 = vld [vmem:[%s8307_s3 + $0x320] ss:$16 sps:$4 sm:$0xff]   ;;  %v5883_v43 = vld [vmem:[%s8307_s3 + $0xac] ss:$16 sps:$4 sm:$0xff]   ;;  %v5887_v30 = vld [vmem:[%s8307_s3 + $0x68] ss:$16 sps:$4 sm:$0xff]  }
 0x153   :  { %v2102_v24 = vpop.f32.mrf.mxu1 }
 0x154   :  { %3272 = vmatpush2.bf16.msra.mxu0 %v5863_v0  ;;  %v2040_v0 = vadd.f32 %v7415_v56, %v1987_v19  ;;  %v1999_v56 = vadd.f32 %v7429_v62, %v1946_v16 }
 0x155   :  { %3273 = vmatprep.subr.bf16.mxu0 %v5868_v2  ;;  %v1995_v2 = vadd.f32 %v7397_v47, %v1942_v57  ;;  %3311 = vmatpush2.bf16.msra.mxu1 %v5956_v63  ;;  %v2104_v39 = vpop.f32.mrf.mxu1  ;;  %v5893_v63 = vld [vmem:[%s8307_s3 + $0x28] ss:$16 sps:$4 sm:$0xff]  }
 0x156   :  { %v2093_v9 = vadd.f32 %v2092_v23, %v2040_v0  ;;  %v5968_v0 = vld [vmem:[%s8307_s3 + $0x300] ss:$16 sps:$4 sm:$0xff]  }
 0x157   :  { %v2048_v47 = vadd.f32 %v7471_v51, %v1995_v2  ;;  %v5961_v51 = vld [vmem:[%s8307_s3 + $0x364] ss:$16 sps:$4 sm:$0xff]   ;;  %v5880_v2 = vld [vmem:[%s8307_s3 + $0xcc] ss:$16 sps:$4 sm:$0xff]  }
 0x158   :  { %3274 = vmatpush2.bf16.msra.mxu0 %v5866_v11  ;;  %v2052_v11 = vadd.f32 %v2051_v46, %v1999_v56  ;;  %3312 = vmatprep.subr.bf16.mxu1 %v5961_v51  ;;  %v5892_v56 = vld [vmem:[%s8307_s3 + $0x4c] ss:$16 sps:$4 sm:$0xff]  }
 0x159   :  { %3275 = vmatprep.subr.bf16.mxu0 %v5871_v13  ;;  %v2091_v13 = vadd.f32 %v7466_v58, %v2038_v6  ;;  %v2101_v18 = vadd.f32 %v2100_v60, %v2048_v47  ;;  %3313 = vmatpush2.bf16.msra.mxu1 %v5959_v32  ;;  %v5967_v60 = vld [vmem:[%s8307_s3 + $0x324] ss:$16 sps:$4 sm:$0xff]   ;;  %v5886_v6 = vld [vmem:[%s8307_s3 + $0x8c] ss:$16 sps:$4 sm:$0xff]   ;;  %v5890_v47 = vld [vmem:[%s8307_s3 + $0x48] ss:$16 sps:$4 sm:$0xff]  }
 0x15a   :  { %v2105_v8 = vadd.f32 %v2104_v39, %v2052_v11  ;;  %3314 = vmatprep.subr.bf16.mxu1 %v5964_v26  ;;  %v5904_v11 = vld [vmem:[%s8307_s3 + $0x1cc] ss:$16 sps:$4 sm:$0xff]   ;;  %v5905_v39 = vld [vmem:[%s8307_s3 + $0x1a8] ss:$16 sps:$4 sm:$0xff]  }
 0x15b   :  { %v5913_v51 = vld [vmem:[%s8307_s3 + $0x16c] ss:$16 sps:$4 sm:$0xff]   ;;  %v5914_v32 = vld [vmem:[%s8307_s3 + $0x148] ss:$16 sps:$4 sm:$0xff]  }
 0x15c   :  { %3276 = vmatpush2.bf16.msra.mxu0 %v5869_v17 }
 0x15d   :  { %3277 = vmatprep.subr.bf16.mxu0 %v5874_v20  ;;  %v2103_v20 = vadd.f32 %v2102_v24, %v2050_v55  ;;  %3315 = vmatpush2.bf16.msra.mxu1 %v5962_v50  ;;  %v5884_v24 = vld [vmem:[%s8307_s3 + $0x88] ss:$16 sps:$4 sm:$0xff]   ;;  %v5895_v55 = vld [vmem:[%s8307_s3 + $0x2c] ss:$16 sps:$4 sm:$0xff]  }
 0x15e   :  { %3316 = vmatprep.subr.bf16.mxu1 %v5967_v60 }
 0x160   :  { %3278 = vmatpush2.bf16.msra.mxu0 %v5872_v33 }
 0x161   :  { %3329 = vmatprep.subr.bf16.mxu0 %v5877_v35  ;;  %3317 = vmatpush2.bf16.msra.mxu1 %v5965_v25 }
 0x162   :  { %v2141_v54 = vpop.f32.mrf.mxu0  ;;  %3318 = vmatprep.subr.bf16.mxu1 %v5970_v31 }
 0x163   :  { %v2142_v33 = vadd.f32 %v2141_v54, %v2089_v12  ;;  %v5902_v12 = vld [vmem:[%s8307_s3 + $0x1c8] ss:$16 sps:$4 sm:$0xff]  }
 0x164   :  { %v2143_v61 = vpop.f32.mrf.mxu0 }
 0x165   :  { %v2144_v58 = vadd.f32 %v2143_v61, %v2091_v13  ;;  %v2425_v52 = vmax.f32 %v2142_v33, 0.0  ;;  %3319 = vmatpush2.bf16.msra.mxu1 %v5968_v0  ;;  %v5907_v13 = vld [vmem:[%s8307_s3 + $0x1ac] ss:$16 sps:$4 sm:$0xff]  }
 0x166   :  { %v2145_v1 = vpop.f32.mrf.mxu0  ;;  %3370 = vmatprep.subr.bf16.mxu1 %v5973_v42  ;;  %v5919_v33 = vld [vmem:[%s8307_s3 + $0x12c] ss:$16 sps:$4 sm:$0xff]  }
 0x167   :  { %v2146_v62 = vadd.f32 %v2145_v1, %v2093_v9  ;;  %v2426_v53 = vmax.f32 %v2144_v58, 0.0  ;;  %v5898_v9 = vld [vmem:[%s8307_s3 + $0xc] ss:$16 sps:$4 sm:$0xff]  }
 0x168   :  { %v2147_v7 = vpop.f32.mrf.mxu0  ;;  %v5922_v58 = vld [vmem:[%s8307_s3 + $0x10c] ss:$16 sps:$4 sm:$0xff]  }
 0x169   :  { %v2148_v23 = vadd.f32 %v2147_v7, %v2095_v44  ;;  %v2429_v38 = vmax.f32 %v2146_v62, 0.0  ;;  %v5889_v7 = vld [vmem:[%s8307_s3 + $0x6c] ss:$16 sps:$4 sm:$0xff]  }
 0x16a   :  { %v2151_v10 = vpop.f32.mrf.mxu0  ;;  %v5901_v44 = vld [vmem:[%s8307_s3 + $0x1ec] ss:$16 sps:$4 sm:$0xff]  }
 0x16b   :  { %v2152_v29 = vadd.f32 %v2151_v10, %v2099_v48  ;;  %v2430_v27 = vmax.f32 %v2148_v23, 0.0  ;;  %v2441_v19 = vmax.f32 %v2425_v52, %v2429_v38  ;;  %v5896_v10 = vld [vmem:[%s8307_s3 + $0x8] ss:$16 sps:$4 sm:$0xff]   ;;  %v5910_v62 = vld [vmem:[%s8307_s3 + $0x18c] ss:$16 sps:$4 sm:$0xff]  }
 0x16c   :  { %v2153_v17 = vpop.f32.mrf.mxu0  ;;  %v5899_v48 = vld [vmem:[%s8307_s3 + $0x1e8] ss:$16 sps:$4 sm:$0xff]   ;;  %v5916_v23 = vld [vmem:[%s8307_s3 + $0x14c] ss:$16 sps:$4 sm:$0xff]  }
 0x16d   :  { %v2154_v35 = vadd.f32 %v2153_v17, %v2101_v18  ;;  %v2433_v45 = vmax.f32 %v2152_v29, 0.0  ;;  %v2442_v61 = vmax.f32 %v2426_v53, %v2430_v27  ;;  %v5908_v17 = vld [vmem:[%s8307_s3 + $0x188] ss:$16 sps:$4 sm:$0xff]  }
 0x16e   :  { %v2155_v34 = vpop.f32.mrf.mxu0 }
 0x16f   :  { %v2156_v36 = vadd.f32 %v2155_v34, %v2103_v20  ;;  %v2434_v54 = vmax.f32 %v2154_v35, 0.0  ;;  %v5911_v20 = vld [vmem:[%s8307_s3 + $0x168] ss:$16 sps:$4 sm:$0xff]  }
 0x170   :  { %v2157_v40 = vpop.f32.mrf.mxu0 }
 0x171   :  { %v2437_v46 = vmax.f32 %v2156_v36, 0.0  ;;  %v2158_v41 = vadd.f32 %v2157_v40, %v2105_v8  ;;  %v5917_v8 = vld [vmem:[%s8307_s3 + $0x128] ss:$16 sps:$4 sm:$0xff]  }
 0x172   :  { %v5920_v36 = vld [vmem:[%s8307_s3 + $0x108] ss:$16 sps:$4 sm:$0xff]  }
 0x173   :  { %v2445_v57 = vmax.f32 %v2433_v45, %v2437_v46  ;;  %v2438_v59 = vmax.f32 %v2158_v41, 0.0 }
 0x175   :  { %v2446_v21 = vmax.f32 %v2434_v54, %v2438_v59  ;;  %v2449_v15 = vmax.f32 %v2441_v19, %v2445_v57 }
 0x177   :  { %v2450_v16 = vmax.f32 %v2442_v61, %v2446_v21  ;;  %v7575_v1 = vpack.c.bf16 %v2449_v15, %v2449_v15  ;;  %v7673_v21 = vsub.s32 2, %v7464_v14 }
 0x179   :  { %v2454_v37 = vpack.c.bf16 %v2450_v16, %v2450_v16  ;;  %v7676_v16 = vsub.s32 3, %v7464_v14  ;;  %v354_v31 = vrot.slane %v7491_v28, %v7673_v21 }
 0x17b   :  { %3279 = vmatprep.mubr.bf16.mxu0 %v2454_v37 }
 0x17c   :  { %3280 = vmatmul.mubr.bf16.vlgmr.msra.gmra.mxu0 %v7575_v1 }
 0x17d   :  { %3330 = vmatpush1.bf16.msra.mxu0 %v5875_v4  ;;  %3361 = vmatprep.mubr.bf16.mxu0 %v2454_v37 }
 0x17e   :  { %3331 = vmatprep.subr.bf16.mxu0 %v5880_v2  ;;  %v358_v2 = vrot.slane %v7491_v28, %v7676_v16 }
 0x181   :  { %3332 = vmatpush1.bf16.msra.mxu0 %v5878_v49 }
 0x182   :  { %3333 = vmatprep.subr.bf16.mxu0 %v5883_v43 }
 0x183   :  { %v2194_v18 = vpop.f32.mrf.mxu1 }
 0x185   :  { %3334 = vmatpush1.bf16.msra.mxu0 %v5881_v5  ;;  %v2196_v29 = vpop.f32.mrf.mxu1 }
 0x186   :  { %3335 = vmatprep.subr.bf16.mxu0 %v5886_v6 }
 0x187   :  { %v2198_v34 = vpop.f32.mrf.mxu1 }
 0x188   :  { %v2199_v49 = vadd.f32 %v2198_v34, %v354_v31 }
 0x189   :  { %3336 = vmatpush1.bf16.msra.mxu0 %v5884_v24  ;;  %v2200_v35 = vpop.f32.mrf.mxu1 }
 0x18a   :  { %3337 = vmatprep.subr.bf16.mxu0 %v5889_v7  ;;  %v2201_v6 = vadd.f32 %v2200_v35, %v358_v2  ;;  %v2195_v7 = vadd.f32 %v2194_v18, %v354_v31 }
 0x18b   :  { %v2204_v38 = vpop.f32.mrf.mxu1 }
 0x18c   :  { %v2205_v42 = vadd.f32 %v2204_v38, %v354_v31 }
 0x18d   :  { %3338 = vmatpush1.bf16.msra.mxu0 %v5887_v30  ;;  %v2206_v40 = vpop.f32.mrf.mxu1 }
 0x18e   :  { %3339 = vmatprep.subr.bf16.mxu0 %v5892_v56  ;;  %v2207_v24 = vadd.f32 %v2206_v40, %v358_v2 }
 0x18f   :  { %v2208_v26 = vpop.f32.mrf.mxu1 }
 0x190   :  { %v2209_v14 = vadd.f32 %v2208_v26, %v354_v31 }
 0x191   :  { %3340 = vmatpush1.bf16.msra.mxu0 %v5890_v47  ;;  %v2210_v27 = vpop.f32.mrf.mxu1 }
 0x192   :  { %3341 = vmatprep.subr.bf16.mxu0 %v5895_v55  ;;  %v2197_v55 = vadd.f32 %v2196_v29, %v358_v2 }
 0x195   :  { %3342 = vmatpush1.bf16.msra.mxu0 %v5893_v63 }
 0x196   :  { %3343 = vmatprep.subr.bf16.mxu0 %v5898_v9 }
 0x199   :  { %3344 = vmatpush1.bf16.msra.mxu0 %v5896_v10 }
 0x19a   :  { %3345 = vmatprep.subr.bf16.mxu0 %v5901_v44  ;;  %v2211_v44 = vadd.f32 %v2210_v27, %v358_v2 }
 0x19d   :  { %3346 = vmatpush2.bf16.msra.mxu0 %v5899_v48 }
 0x19e   :  { %3347 = vmatprep.subr.bf16.mxu0 %v5904_v11 }
 0x1a1   :  { %3348 = vmatpush2.bf16.msra.mxu0 %v5902_v12 }
 0x1a2   :  { %3349 = vmatprep.subr.bf16.mxu0 %v5907_v13  ;;  %v2247_v46 = vpop.f32.mrf.mxu0 }
 0x1a3   :  { %v2248_v10 = vadd.f32 %v2247_v46, %v2195_v7 }
 0x1a4   :  { %v2249_v50 = vpop.f32.mrf.mxu0 }
 0x1a5   :  { %3350 = vmatpush2.bf16.msra.mxu0 %v5905_v39  ;;  %v2250_v28 = vadd.f32 %v2249_v50, %v2197_v55  ;;  %v5976_v55 = vld [vmem:[%s8307_s3 + $0x2cc] ss:$16 sps:$4 sm:$0xff]  }
 0x1a6   :  { %3351 = vmatprep.subr.bf16.mxu0 %v5910_v62  ;;  %v2251_v53 = vpop.f32.mrf.mxu0 }
 0x1a7   :  { %v2252_v30 = vadd.f32 %v2251_v53, %v2199_v49 }
 0x1a8   :  { %v2253_v57 = vpop.f32.mrf.mxu0 }
 0x1a9   :  { %3352 = vmatpush2.bf16.msra.mxu0 %v5908_v17  ;;  %v2254_v63 = vadd.f32 %v2253_v57, %v2201_v6 }
 0x1aa   :  { %3353 = vmatprep.subr.bf16.mxu0 %v5913_v51  ;;  %v2257_v59 = vpop.f32.mrf.mxu0 }
 0x1ab   :  { %v2258_v9 = vadd.f32 %v2257_v59, %v2205_v42 }
 0x1ac   :  { %v2259_v60 = vpop.f32.mrf.mxu0 }
 0x1ad   :  { %3354 = vmatpush2.bf16.msra.mxu0 %v5911_v20  ;;  %v2260_v13 = vadd.f32 %v2259_v60, %v2207_v24 }
 0x1ae   :  { %3355 = vmatprep.subr.bf16.mxu0 %v5916_v23  ;;  %v2261_v25 = vpop.f32.mrf.mxu0 }
 0x1af   :  { %v2262_v17 = vadd.f32 %v2261_v25, %v2209_v14 }
 0x1b0   :  { %v2263_v37 = vpop.f32.mrf.mxu0 }
 0x1b1   :  { %3356 = vmatpush2.bf16.msra.mxu0 %v5914_v32 }
 0x1b2   :  { %3357 = vmatprep.subr.bf16.mxu0 %v5919_v33 }
 0x1b5   :  { %3358 = vmatpush2.bf16.msra.mxu0 %v5917_v8 }
 0x1b6   :  { %3359 = vmatprep.subr.bf16.mxu0 %v5922_v58 }
 0x1b9   :  { %3360 = vmatpush2.bf16.msra.mxu0 %v5920_v36  ;;  %v2264_v36 = vadd.f32 %v2263_v37, %v2211_v44  ;;  %v5982_v44 = vld [vmem:[%s8307_s3 + $0x28c] ss:$16 sps:$4 sm:$0xff]  }
 0x1bc   :  { %3362 = vmatmul.mubr.bf16.vlgmr.msra.gmra.mxu0 %v7575_v1 }
 0x1c3   :  { %v2300_v45 = vpop.f32.mrf.mxu1 }
 0x1c4   :  { %v2301_v51 = vadd.f32 %v2300_v45, %v2248_v10  ;;  %v5977_v10 = vld [vmem:[%s8307_s3 + $0x2a8] ss:$16 sps:$4 sm:$0xff]  }
 0x1c5   :  { %v2302_v41 = vpop.f32.mrf.mxu1 }
 0x1c6   :  { %v2303_v32 = vadd.f32 %v2302_v41, %v2250_v28  ;;  %v5980_v28 = vld [vmem:[%s8307_s3 + $0x288] ss:$16 sps:$4 sm:$0xff]  }
 0x1c7   :  { %v2304_v52 = vpop.f32.mrf.mxu1 }
 0x1c8   :  { %v2305_v48 = vadd.f32 %v2304_v52, %v2252_v30 }
 0x1c9   :  { %v2306_v54 = vpop.f32.mrf.mxu1 }
 0x1ca   :  { %v2307_v39 = vadd.f32 %v2306_v54, %v2254_v63  ;;  %v5974_v63 = vld [vmem:[%s8307_s3 + $0x2c8] ss:$16 sps:$4 sm:$0xff]  }
 0x1cb   :  { %v2310_v19 = vpop.f32.mrf.mxu1 }
 0x1cc   :  { %v2311_v62 = vadd.f32 %v2310_v19, %v2258_v9  ;;  %v5979_v9 = vld [vmem:[%s8307_s3 + $0x2ac] ss:$16 sps:$4 sm:$0xff]  }
 0x1cd   :  { %v2312_v61 = vpop.f32.mrf.mxu1 }
 0x1ce   :  { %v2313_v33 = vadd.f32 %v2312_v61, %v2260_v13  ;;  %v5985_v13 = vld [vmem:[%s8307_s3 + $0x26c] ss:$16 sps:$4 sm:$0xff]  }
 0x1cf   :  { %v2314_v15 = vpop.f32.mrf.mxu1 }
 0x1d0   :  { %v2315_v38 = vadd.f32 %v2314_v15, %v2262_v17  ;;  %v5983_v17 = vld [vmem:[%s8307_s3 + $0x268] ss:$16 sps:$4 sm:$0xff]  }
 0x1d1   :  { %v2316_v4 = vpop.f32.mrf.mxu1 }
 0x1d2   :  { %v2317_v52 = vadd.f32 %v2316_v4, %v2264_v36  ;;  %v5992_v36 = vld [vmem:[%s8307_s3 + $0x208] ss:$16 sps:$4 sm:$0xff]  }
 0x1e2   :  { %v2353_v0 = vpop.f32.mrf.mxu0 }
 0x1e3   :  { %v2406_v1 = vpop.f32.mrf.mxu1  ;;  %v2354_v8 = vadd.f32 %v2353_v0, %v2301_v51  ;;  %v5988_v51 = vld [vmem:[%s8307_s3 + $0x24c] ss:$16 sps:$4 sm:$0xff]  }
 0x1e4   :  { %v2355_v43 = vpop.f32.mrf.mxu0 }
 0x1e5   :  { %v2408_v5 = vpop.f32.mrf.mxu1  ;;  %v2356_v40 = vadd.f32 %v2355_v43, %v2303_v32  ;;  %v2407_v57 = vadd.f32 %v2406_v1, %v2354_v8  ;;  %v5991_v32 = vld [vmem:[%s8307_s3 + $0x22c] ss:$16 sps:$4 sm:$0xff]  }
 0x1e6   :  { %v2357_v56 = vpop.f32.mrf.mxu0  ;;  %v5994_v8 = vld [vmem:[%s8307_s3 + $0x20c] ss:$16 sps:$4 sm:$0xff]  }
 0x1e7   :  { %v2410_v47 = vpop.f32.mrf.mxu1  ;;  %v2358_v20 = vadd.f32 %v2357_v56, %v2305_v48  ;;  %v2409_v41 = vadd.f32 %v2408_v5, %v2356_v40  ;;  %v2427_v42 = vmax.f32 %v2407_v57, 0.0  ;;  %v5971_v56 = vld [vmem:[%s8307_s3 + $0x2e8] ss:$16 sps:$4 sm:$0xff]   ;;  %v6019_v48 = vld [vmem:[%s8309_s5 + $0xe0] ss:$16 sps:$4 sm:$0xff]  }
 0x1e8   :  { %v2359_v11 = vpop.f32.mrf.mxu0  ;;  %v5997_v40 = vld [vmem:[%s8307_s3 + $0x3ec] ss:$16 sps:$4 sm:$0xff]   ;;  %v6045_v57 = vld [vmem:[%s8309_s5 + $0x1e4] ss:$16 sps:$4 sm:$0xff]  }
 0x1e9   :  { %v2412_v12 = vpop.f32.mrf.mxu1  ;;  %v2360_v34 = vadd.f32 %v2359_v11, %v2307_v39  ;;  %v2411_v27 = vadd.f32 %v2410_v47, %v2358_v20  ;;  %v2428_v49 = vmax.f32 %v2409_v41, 0.0  ;;  %v6021_v11 = vld [vmem:[%s8309_s5 + $0xe4] ss:$16 sps:$4 sm:$0xff]   ;;  %v6022_v39 = vld [vmem:[%s8309_s5 + $0xc0] ss:$16 sps:$4 sm:$0xff]  }
 0x1ea   :  { %v2363_v18 = vpop.f32.mrf.mxu0  ;;  %4209 = vmatprep.subr.bf16.mxu0 %v6021_v11  ;;  %v6025_v20 = vld [vmem:[%s8309_s5 + $0xa0] ss:$16 sps:$4 sm:$0xff]  }
 0x1eb   :  { %v2416_v23 = vpop.f32.mrf.mxu1  ;;  %v2364_v29 = vadd.f32 %v2363_v18, %v2311_v62  ;;  %v2413_v53 = vadd.f32 %v2412_v12, %v2360_v34  ;;  %v2431_v25 = vmax.f32 %v2411_v27, 0.0  ;;  %v6024_v12 = vld [vmem:[%s8309_s5 + $0xc4] ss:$16 sps:$4 sm:$0xff]   ;;  %4210 = vmatpush1.bf16.msra.mxu0 %v6019_v48  ;;  %v5995_v27 = vld [vmem:[%s8307_s3 + $0x3e8] ss:$16 sps:$4 sm:$0xff]  }
 0x1ec   :  { %v2365_v58 = vpop.f32.mrf.mxu0  ;;  %4211 = vmatprep.subr.bf16.mxu0 %v6024_v12  ;;  %v6027_v62 = vld [vmem:[%s8309_s5 + $0xa4] ss:$16 sps:$4 sm:$0xff]   ;;  %v6043_v41 = vld [vmem:[%s8309_s5 + $0x1e0] ss:$16 sps:$4 sm:$0xff]  }
 0x1ed   :  { %v2418_v35 = vpop.f32.mrf.mxu1  ;;  %v2366_v26 = vadd.f32 %v2365_v58, %v2313_v33  ;;  %v2417_v45 = vadd.f32 %v2416_v23, %v2364_v29  ;;  %v2432_v0 = vmax.f32 %v2413_v53, 0.0  ;;  %v2443_v24 = vmax.f32 %v2427_v42, %v2431_v25  ;;  %v6030_v18 = vld [vmem:[%s8309_s5 + $0x84] ss:$16 sps:$4 sm:$0xff]   ;;  %v5986_v23 = vld [vmem:[%s8307_s3 + $0x248] ss:$16 sps:$4 sm:$0xff]  }
 0x1ee   :  { %v2367_v46 = vpop.f32.mrf.mxu0  ;;  %v6028_v33 = vld [vmem:[%s8309_s5 + $0x80] ss:$16 sps:$4 sm:$0xff]   ;;  %v6033_v34 = vld [vmem:[%s8309_s5 + $0x64] ss:$16 sps:$4 sm:$0xff]   ;;  %v5989_v29 = vld [vmem:[%s8307_s3 + $0x228] ss:$16 sps:$4 sm:$0xff]  }
 0x1ef   :  { %v2420_v50 = vpop.f32.mrf.mxu1  ;;  %v2368_v54 = vadd.f32 %v2367_v46, %v2315_v38  ;;  %v2419_v19 = vadd.f32 %v2418_v35, %v2366_v26  ;;  %v2435_v37 = vmax.f32 %v2417_v45, 0.0  ;;  %v2444_v7 = vmax.f32 %v2428_v49, %v2432_v0  ;;  %4212 = vmatpush1.bf16.msra.mxu0 %v6022_v39  ;;  %v6031_v58 = vld [vmem:[%s8309_s5 + $0x60] ss:$16 sps:$4 sm:$0xff]   ;;  %v6036_v35 = vld [vmem:[%s8309_s5 + $0x44] ss:$16 sps:$4 sm:$0xff]  }
 0x1f0   :  { %v2369_v59 = vpop.f32.mrf.mxu0  ;;  %4213 = vmatprep.subr.bf16.mxu0 %v6027_v62  ;;  %v6034_v38 = vld [vmem:[%s8309_s5 + $0x40] ss:$16 sps:$4 sm:$0xff]   ;;  %v6039_v26 = vld [vmem:[%s8309_s5 + $0x24] ss:$16 sps:$4 sm:$0xff]   ;;  %v5998_v53 = vld [vmem:[%s8307_s3 + $0x3c8] ss:$16 sps:$4 sm:$0xff]  }
 0x1f1   :  { %v2421_v60 = vadd.f32 %v2420_v50, %v2368_v54  ;;  %v2370_v61 = vadd.f32 %v2369_v59, %v2317_v52  ;;  %v2422_v31 = vpop.f32.mrf.mxu1  ;;  %v2436_v43 = vmax.f32 %v2419_v19, 0.0  ;;  %v6037_v46 = vld [vmem:[%s8309_s5 + $0x20] ss:$16 sps:$4 sm:$0xff]   ;;  %v6000_v50 = vld [vmem:[%s8307_s3 + $0x3cc] ss:$16 sps:$4 sm:$0xff]  }
 0x1f2   :  { %v6042_v52 = vld [vmem:[%s8309_s5 + $0x4] ss:$16 sps:$4 sm:$0xff]   ;;  %v6040_v45 = vld [vmem:[%s8309_s5] ss:$16 sps:$4 sm:$0xff]   ;;  %v6003_v54 = vld [vmem:[%s8307_s3 + $0x3ac] ss:$16 sps:$4 sm:$0xff]  }
 0x1f3   :  { %v2439_v15 = vmax.f32 %v2421_v60, 0.0  ;;  %v2423_v2 = vadd.f32 %v2422_v31, %v2370_v61  ;;  %4214 = vmatpush1.bf16.msra.mxu0 %v6025_v20  ;;  %v6001_v59 = vld [vmem:[%s8307_s3 + $0x3a8] ss:$16 sps:$4 sm:$0xff]   ;;  %v6006_v19 = vld [vmem:[%s8307_s3 + $0x38c] ss:$16 sps:$4 sm:$0xff]  }
 0x1f4   :  { %4215 = vmatprep.subr.bf16.mxu0 %v6030_v18  ;;  %v6048_v60 = vld [vmem:[%s8309_s5 + $0x1c4] ss:$16 sps:$4 sm:$0xff]   ;;  %v6004_v61 = vld [vmem:[%s8307_s3 + $0x388] ss:$16 sps:$4 sm:$0xff]   ;;  %v6046_v25 = vld [vmem:[%s8309_s5 + $0x1c0] ss:$16 sps:$4 sm:$0xff]  }
 0x1f5   :  { %v2447_v6 = vmax.f32 %v2435_v37, %v2439_v15  ;;  %v2440_v4 = vmax.f32 %v2423_v2, 0.0  ;;  %v6009_v31 = vld [vmem:[%s8307_s3 + $0x36c] ss:$16 sps:$4 sm:$0xff]   ;;  %v6051_v0 = vld [vmem:[%s8309_s5 + $0x1a4] ss:$16 sps:$4 sm:$0xff]  }
 0x1f6   :  { %v6007_v37 = vld [vmem:[%s8307_s3 + $0x368] ss:$16 sps:$4 sm:$0xff]   ;;  %v6049_v15 = vld [vmem:[%s8309_s5 + $0x1a0] ss:$16 sps:$4 sm:$0xff]   ;;  %v6012_v2 = vld [vmem:[%s8307_s3 + $0x34c] ss:$16 sps:$4 sm:$0xff]  }
 0x1f7   :  { %v2448_v30 = vmax.f32 %v2436_v43, %v2440_v4  ;;  %v2451_v1 = vmax.f32 %v2443_v24, %v2447_v6  ;;  %4216 = vmatpush1.bf16.msra.mxu0 %v6028_v33  ;;  %v6054_v42 = vld [vmem:[%s8309_s5 + $0x184] ss:$16 sps:$4 sm:$0xff]   ;;  %v6010_v49 = vld [vmem:[%s8307_s3 + $0x348] ss:$16 sps:$4 sm:$0xff]   ;;  %v6052_v43 = vld [vmem:[%s8309_s5 + $0x180] ss:$16 sps:$4 sm:$0xff]  }
 0x1f8   :  { %4217 = vmatprep.subr.bf16.mxu0 %v6033_v34  ;;  %v6015_v6 = vld [vmem:[%s8307_s3 + $0x32c] ss:$16 sps:$4 sm:$0xff]   ;;  %v6057_v4 = vld [vmem:[%s8309_s5 + $0x164] ss:$16 sps:$4 sm:$0xff]   ;;  %v6013_v24 = vld [vmem:[%s8307_s3 + $0x328] ss:$16 sps:$4 sm:$0xff]  }
 0x1f9   :  { %v2452_v14 = vmax.f32 %v2444_v7, %v2448_v30  ;;  %v7685_v47 = vpack.c.bf16 %v2451_v1, %v2451_v1  ;;  %v6055_v7 = vld [vmem:[%s8309_s5 + $0x160] ss:$16 sps:$4 sm:$0xff]   ;;  %v6018_v30 = vld [vmem:[%s8307_s3 + $0x30c] ss:$16 sps:$4 sm:$0xff]   ;;  %v6060_v1 = vld [vmem:[%s8309_s5 + $0x144] ss:$16 sps:$4 sm:$0xff]  }
 0x1fa   :  { %v6066_v48 = vld [vmem:[%s8309_s5 + $0x104] ss:$16 sps:$4 sm:$0xff]   ;;  %v6067_v11 = vld [vmem:[%s8309_s5 + $0x2e0] ss:$16 sps:$4 sm:$0xff]  }
 0x1fb   :  { %v2456_v5 = vpack.c.bf16 %v2452_v14, %v2452_v14  ;;  %4218 = vmatpush1.bf16.msra.mxu0 %v6031_v58  ;;  %v6016_v14 = vld [vmem:[%s8307_s3 + $0x308] ss:$16 sps:$4 sm:$0xff]   ;;  %v6069_v12 = vld [vmem:[%s8309_s5 + $0x2e4] ss:$16 sps:$4 sm:$0xff]   ;;  %v6079_v62 = vld [vmem:[%s8309_s5 + $0x2a0] ss:$16 sps:$4 sm:$0xff]  }
 0x1fc   :  { %4219 = vmatprep.subr.bf16.mxu0 %v6036_v35  ;;  %v6075_v39 = vld [vmem:[%s8309_s5 + $0x2c4] ss:$16 sps:$4 sm:$0xff]   ;;  %v6091_v18 = vld [vmem:[%s8309_s5 + $0x260] ss:$16 sps:$4 sm:$0xff]  }
 0x1fd   :  { %3320 = vmatprep.mubr.bf16.mxu1 %v2456_v5  ;;  %v6087_v20 = vld [vmem:[%s8309_s5 + $0x284] ss:$16 sps:$4 sm:$0xff]   ;;  %v6103_v34 = vld [vmem:[%s8309_s5 + $0x220] ss:$16 sps:$4 sm:$0xff]  }
 0x1fe   :  { %3321 = vmatmul.mubr.bf16.vlgmr.msra.gmra.mxu1 %v7685_v47  ;;  %v6099_v33 = vld [vmem:[%s8309_s5 + $0x244] ss:$16 sps:$4 sm:$0xff]   ;;  %v6115_v35 = vld [vmem:[%s8309_s5 + $0x3e0] ss:$16 sps:$4 sm:$0xff]  }
 0x1ff   :  { %3371 = vmatpush1.bf16.msra.mxu1 %v5971_v56  ;;  %3402 = vmatprep.mubr.bf16.mxu1 %v2456_v5  ;;  %v6058_v5 = vld [vmem:[%s8309_s5 + $0x140] ss:$16 sps:$4 sm:$0xff]   ;;  %v6111_v58 = vld [vmem:[%s8309_s5 + $0x204] ss:$16 sps:$4 sm:$0xff]  }
 0x200   :  { %3372 = vmatprep.subr.bf16.mxu1 %v5976_v55  ;;  %4220 = vmatpush1.bf16.msra.mxu0 %v6034_v38  ;;  %v6121_v38 = vld [vmem:[%s8309_s5 + $0x3c0] ss:$16 sps:$4 sm:$0xff]  }
 0x201   :  { %4221 = vmatprep.subr.bf16.mxu0 %v6039_v26  ;;  %v6127_v26 = vld [vmem:[%s8309_s5 + $0x3a0] ss:$16 sps:$4 sm:$0xff]  }
 0x203   :  { %3373 = vmatpush1.bf16.msra.mxu1 %v5974_v63  ;;  %v6063_v63 = vld [vmem:[%s8309_s5 + $0x124] ss:$16 sps:$4 sm:$0xff]  }
 0x204   :  { %3374 = vmatprep.subr.bf16.mxu1 %v5979_v9  ;;  %4222 = vmatpush1.bf16.msra.mxu0 %v6037_v46  ;;  %v6061_v9 = vld [vmem:[%s8309_s5 + $0x120] ss:$16 sps:$4 sm:$0xff]  }
 0x205   :  { %4223 = vmatprep.subr.bf16.mxu0 %v6042_v52  ;;  %v6133_v46 = vld [vmem:[%s8309_s5 + $0x380] ss:$16 sps:$4 sm:$0xff]  }
 0x206   :  { %v6139_v52 = vld [vmem:[%s8309_s5 + $0x360] ss:$16 sps:$4 sm:$0xff]  }
 0x207   :  { %3375 = vmatpush1.bf16.msra.mxu1 %v5977_v10 }
 0x208   :  { %3376 = vmatprep.subr.bf16.mxu1 %v5982_v44  ;;  %4224 = vmatpush1.bf16.msra.mxu0 %v6040_v45  ;;  %v6145_v45 = vld [vmem:[%s8309_s5 + $0x340] ss:$16 sps:$4 sm:$0xff]  }
 0x209   :  { %4225 = vmatprep.subr.bf16.mxu0 %v6045_v57 }
 0x20b   :  { %3377 = vmatpush1.bf16.msra.mxu1 %v5980_v28  ;;  %v6072_v28 = vld [vmem:[%s8309_s5 + $0xec] ss:$16 sps:$4 sm:$0xff]  }
 0x20c   :  { %3378 = vmatprep.subr.bf16.mxu1 %v5985_v13  ;;  %4226 = vmatpush2.bf16.msra.mxu0 %v6043_v41  ;;  %v6073_v13 = vld [vmem:[%s8309_s5 + $0x2c0] ss:$16 sps:$4 sm:$0xff]  }
 0x20d   :  { %4227 = vmatprep.subr.bf16.mxu0 %v6048_v60 }
 0x20f   :  { %3379 = vmatpush1.bf16.msra.mxu1 %v5983_v17  ;;  %v6081_v17 = vld [vmem:[%s8309_s5 + $0x2a4] ss:$16 sps:$4 sm:$0xff]  }
 0x210   :  { %3380 = vmatprep.subr.bf16.mxu1 %v5988_v51  ;;  %4228 = vmatpush2.bf16.msra.mxu0 %v6046_v25  ;;  %v6085_v51 = vld [vmem:[%s8309_s5 + $0x280] ss:$16 sps:$4 sm:$0xff]  }
 0x211   :  { %4229 = vmatprep.subr.bf16.mxu0 %v6051_v0  ;;  %v6165_v0 = vld [vmem:[%s8309_s5 + $0x2ec] ss:$16 sps:$4 sm:$0xff]  }
 0x213   :  { %3381 = vmatpush1.bf16.msra.mxu1 %v5986_v23  ;;  %v6093_v23 = vld [vmem:[%s8309_s5 + $0x264] ss:$16 sps:$4 sm:$0xff]  }
 0x214   :  { %3382 = vmatprep.subr.bf16.mxu1 %v5991_v32  ;;  %4230 = vmatpush2.bf16.msra.mxu0 %v6049_v15  ;;  %v6097_v32 = vld [vmem:[%s8309_s5 + $0x240] ss:$16 sps:$4 sm:$0xff]  }
 0x215   :  { %4231 = vmatprep.subr.bf16.mxu0 %v6054_v42 }
 0x217   :  { %3383 = vmatpush1.bf16.msra.mxu1 %v5989_v29  ;;  %v6105_v29 = vld [vmem:[%s8309_s5 + $0x224] ss:$16 sps:$4 sm:$0xff]  }
 0x218   :  { %3384 = vmatprep.subr.bf16.mxu1 %v5994_v8  ;;  %4232 = vmatpush2.bf16.msra.mxu0 %v6052_v43  ;;  %v6109_v8 = vld [vmem:[%s8309_s5 + $0x200] ss:$16 sps:$4 sm:$0xff]  }
 0x219   :  { %4233 = vmatprep.subr.bf16.mxu0 %v6057_v4 }
 0x21b   :  { %3385 = vmatpush1.bf16.msra.mxu1 %v5992_v36  ;;  %v6117_v36 = vld [vmem:[%s8309_s5 + $0x3e4] ss:$16 sps:$4 sm:$0xff]  }
 0x21c   :  { %3386 = vmatprep.subr.bf16.mxu1 %v5997_v40  ;;  %4234 = vmatpush2.bf16.msra.mxu0 %v6055_v7  ;;  %v6123_v40 = vld [vmem:[%s8309_s5 + $0x3c4] ss:$16 sps:$4 sm:$0xff]  }
 0x21d   :  { %4235 = vmatprep.subr.bf16.mxu0 %v6060_v1 }
 0x21f   :  { %3387 = vmatpush2.bf16.msra.mxu1 %v5995_v27  ;;  %v6129_v27 = vld [vmem:[%s8309_s5 + $0x3a4] ss:$16 sps:$4 sm:$0xff]  }
 0x220   :  { %3388 = vmatprep.subr.bf16.mxu1 %v6000_v50  ;;  %4236 = vmatpush2.bf16.msra.mxu0 %v6058_v5  ;;  %v6135_v50 = vld [vmem:[%s8309_s5 + $0x384] ss:$16 sps:$4 sm:$0xff]  }
 0x221   :  { %4237 = vmatprep.subr.bf16.mxu0 %v6063_v63  ;;  %v6070_v63 = vld [vmem:[%s8309_s5 + $0xe8] ss:$16 sps:$4 sm:$0xff]  }
 0x223   :  { %3389 = vmatpush2.bf16.msra.mxu1 %v5998_v53  ;;  %v6141_v53 = vld [vmem:[%s8309_s5 + $0x364] ss:$16 sps:$4 sm:$0xff]  }
 0x224   :  { %3390 = vmatprep.subr.bf16.mxu1 %v6003_v54  ;;  %4238 = vmatpush2.bf16.msra.mxu0 %v6061_v9  ;;  %v6147_v54 = vld [vmem:[%s8309_s5 + $0x344] ss:$16 sps:$4 sm:$0xff]  }
 0x225   :  { %4239 = vmatprep.subr.bf16.mxu0 %v6066_v48  ;;  %v6090_v48 = vld [vmem:[%s8309_s5 + $0x8c] ss:$16 sps:$4 sm:$0xff]  }
 0x227   :  { %3391 = vmatpush2.bf16.msra.mxu1 %v6001_v59  ;;  %v6153_v59 = vld [vmem:[%s8309_s5 + $0x324] ss:$16 sps:$4 sm:$0xff]  }
 0x228   :  { %3392 = vmatprep.subr.bf16.mxu1 %v6006_v19  ;;  %v6151_v19 = vld [vmem:[%s8309_s5 + $0x320] ss:$16 sps:$4 sm:$0xff]  }
 0x22b   :  { %3393 = vmatpush2.bf16.msra.mxu1 %v6004_v61  ;;  %v6159_v61 = vld [vmem:[%s8309_s5 + $0x304] ss:$16 sps:$4 sm:$0xff]  }
 0x22c   :  { %3394 = vmatprep.subr.bf16.mxu1 %v6009_v31  ;;  %v6157_v31 = vld [vmem:[%s8309_s5 + $0x300] ss:$16 sps:$4 sm:$0xff]  }
 0x22f   :  { %3395 = vmatpush2.bf16.msra.mxu1 %v6007_v37  ;;  %v7988_v37 = vld [vmem:[%s8310_s4] sm:$0xf] }
 0x230   :  { %3396 = vmatprep.subr.bf16.mxu1 %v6012_v2  ;;  %v2590_v15 = vrot.slane %v7988_v37, %v7483_v3  ;;  %v2594_v2 = vrot.slane %v7988_v37, %v7486_v22 }
 0x233   :  { %3397 = vmatpush2.bf16.msra.mxu1 %v6010_v49 }
 0x234   :  { %3398 = vmatprep.subr.bf16.mxu1 %v6015_v6 }
 0x237   :  { %3399 = vmatpush2.bf16.msra.mxu1 %v6013_v24 }
 0x238   :  { %3400 = vmatprep.subr.bf16.mxu1 %v6018_v30 }
 0x23b   :  { %3401 = vmatpush2.bf16.msra.mxu1 %v6016_v14 }
 0x23c   :  { %v7862_v56 = vpop.f32.mrf.mxu0  ;;  %4250 = vmatprep.subr.bf16.mxu1 %v6069_v12  ;;  %v6094_v12 = vld [vmem:[%s8309_s5 + $0x68] ss:$16 sps:$4 sm:$0xff]  }
 0x23d   :  { %v3282_v42 = vadd.f32 %v7862_v56, %v2590_v15  ;;  %v6078_v56 = vld [vmem:[%s8309_s5 + $0xcc] ss:$16 sps:$4 sm:$0xff]  }
 0x23e   :  { %3403 = vmatmul.mubr.bf16.vlgmr.msra.gmra.mxu1 %v7685_v47  ;;  %v7865_v55 = vpop.f32.mrf.mxu0  ;;  %v6064_v47 = vld [vmem:[%s8309_s5 + $0x100] ss:$16 sps:$4 sm:$0xff]   ;;  %v6168_v15 = vld [vmem:[%s8309_s5 + $0x2cc] ss:$16 sps:$4 sm:$0xff]  }
 0x23f   :  { %4240 = vmatpush2.bf16.msra.mxu0 %v6064_v47  ;;  %4251 = vmatpush1.bf16.msra.mxu1 %v6067_v11  ;;  %v3284_v43 = vadd.f32 %v7865_v55, %v2594_v2  ;;  %v6076_v55 = vld [vmem:[%s8309_s5 + $0xc8] ss:$16 sps:$4 sm:$0xff]   ;;  %v6096_v11 = vld [vmem:[%s8309_s5 + $0x6c] ss:$16 sps:$4 sm:$0xff]  }
 0x240   :  { %v3285_v10 = vpop.f32.mrf.mxu0  ;;  %4291 = vmatprep.subr.bf16.mxu0 %v6072_v28  ;;  %4252 = vmatprep.subr.bf16.mxu1 %v6075_v39  ;;  %v6088_v47 = vld [vmem:[%s8309_s5 + $0x88] ss:$16 sps:$4 sm:$0xff]   ;;  %v6102_v28 = vld [vmem:[%s8309_s5 + $0x4c] ss:$16 sps:$4 sm:$0xff]  }
 0x241   :  { %v6084_v10 = vld [vmem:[%s8309_s5 + $0xac] ss:$16 sps:$4 sm:$0xff]   ;;  %v6166_v2 = vld [vmem:[%s8309_s5 + $0x2c8] ss:$16 sps:$4 sm:$0xff]  }
 0x242   :  { %v3286_v44 = vpop.f32.mrf.mxu0  ;;  %v6108_v39 = vld [vmem:[%s8309_s5 + $0x2c] ss:$16 sps:$4 sm:$0xff]  }
 0x243   :  { %4253 = vmatpush1.bf16.msra.mxu1 %v6073_v13  ;;  %v6082_v44 = vld [vmem:[%s8309_s5 + $0xa8] ss:$16 sps:$4 sm:$0xff]  }
 0x244   :  { %4254 = vmatprep.subr.bf16.mxu1 %v6081_v17  ;;  %v6100_v13 = vld [vmem:[%s8309_s5 + $0x48] ss:$16 sps:$4 sm:$0xff]   ;;  %v6114_v17 = vld [vmem:[%s8309_s5 + $0xc] ss:$16 sps:$4 sm:$0xff]  }
 0x247   :  { %4255 = vmatpush1.bf16.msra.mxu1 %v6079_v62  ;;  %v6106_v62 = vld [vmem:[%s8309_s5 + $0x28] ss:$16 sps:$4 sm:$0xff]  }
 0x248   :  { %4256 = vmatprep.subr.bf16.mxu1 %v6087_v20  ;;  %v6120_v20 = vld [vmem:[%s8309_s5 + $0x1ec] ss:$16 sps:$4 sm:$0xff]  }
 0x24b   :  { %4257 = vmatpush1.bf16.msra.mxu1 %v6085_v51  ;;  %v6112_v51 = vld [vmem:[%s8309_s5 + $0x8] ss:$16 sps:$4 sm:$0xff]  }
 0x24c   :  { %4258 = vmatprep.subr.bf16.mxu1 %v6093_v23  ;;  %v6126_v23 = vld [vmem:[%s8309_s5 + $0x1cc] ss:$16 sps:$4 sm:$0xff]  }
 0x24f   :  { %4259 = vmatpush1.bf16.msra.mxu1 %v6091_v18  ;;  %v6118_v18 = vld [vmem:[%s8309_s5 + $0x1e8] ss:$16 sps:$4 sm:$0xff]  }
 0x250   :  { %4260 = vmatprep.subr.bf16.mxu1 %v6099_v33  ;;  %v6132_v33 = vld [vmem:[%s8309_s5 + $0x1ac] ss:$16 sps:$4 sm:$0xff]  }
 0x253   :  { %4261 = vmatpush1.bf16.msra.mxu1 %v6097_v32  ;;  %v6124_v32 = vld [vmem:[%s8309_s5 + $0x1c8] ss:$16 sps:$4 sm:$0xff]  }
 0x254   :  { %4262 = vmatprep.subr.bf16.mxu1 %v6105_v29  ;;  %v6138_v29 = vld [vmem:[%s8309_s5 + $0x18c] ss:$16 sps:$4 sm:$0xff]  }
 0x257   :  { %4263 = vmatpush1.bf16.msra.mxu1 %v6103_v34  ;;  %v6130_v34 = vld [vmem:[%s8309_s5 + $0x1a8] ss:$16 sps:$4 sm:$0xff]  }
 0x258   :  { %4264 = vmatprep.subr.bf16.mxu1 %v6111_v58  ;;  %v6144_v58 = vld [vmem:[%s8309_s5 + $0x16c] ss:$16 sps:$4 sm:$0xff]  }
 0x25b   :  { %4265 = vmatpush1.bf16.msra.mxu1 %v6109_v8  ;;  %v6136_v8 = vld [vmem:[%s8309_s5 + $0x188] ss:$16 sps:$4 sm:$0xff]  }
 0x25c   :  { %4266 = vmatprep.subr.bf16.mxu1 %v6117_v36  ;;  %v6150_v36 = vld [vmem:[%s8309_s5 + $0x14c] ss:$16 sps:$4 sm:$0xff]  }
 0x25f   :  { %4267 = vmatpush2.bf16.msra.mxu1 %v6115_v35  ;;  %v6142_v35 = vld [vmem:[%s8309_s5 + $0x168] ss:$16 sps:$4 sm:$0xff]  }
 0x260   :  { %4268 = vmatprep.subr.bf16.mxu1 %v6123_v40  ;;  %v6148_v40 = vld [vmem:[%s8309_s5 + $0x148] ss:$16 sps:$4 sm:$0xff]  }
 0x263   :  { %4269 = vmatpush2.bf16.msra.mxu1 %v6121_v38  ;;  %v2598_v38 = vrot.slane %v7988_v37, %v7673_v21 }
 0x264   :  { %4270 = vmatprep.subr.bf16.mxu1 %v6129_v27  ;;  %v2602_v27 = vrot.slane %v7988_v37, %v7676_v16  ;;  %v6163_v37 = vld [vmem:[%s8309_s5 + $0x2e8] ss:$16 sps:$4 sm:$0xff]  }
 0x267   :  { %4271 = vmatpush2.bf16.msra.mxu1 %v6127_v26  ;;  %v6156_v26 = vld [vmem:[%s8309_s5 + $0x12c] ss:$16 sps:$4 sm:$0xff]  }
 0x268   :  { %4272 = vmatprep.subr.bf16.mxu1 %v6135_v50  ;;  %v6154_v50 = vld [vmem:[%s8309_s5 + $0x128] ss:$16 sps:$4 sm:$0xff]  }
 0x26b   :  { %4273 = vmatpush2.bf16.msra.mxu1 %v6133_v46 }
 0x26c   :  { %4274 = vmatprep.subr.bf16.mxu1 %v6141_v53  ;;  %v6162_v53 = vld [vmem:[%s8309_s5 + $0x10c] ss:$16 sps:$4 sm:$0xff]  }
 0x26f   :  { %4275 = vmatpush2.bf16.msra.mxu1 %v6139_v52 }
 0x270   :  { %4276 = vmatprep.subr.bf16.mxu1 %v6147_v54 }
 0x273   :  { %4277 = vmatpush2.bf16.msra.mxu1 %v6145_v45 }
 0x274   :  { %4278 = vmatprep.subr.bf16.mxu1 %v6153_v59 }
 0x277   :  { %4279 = vmatpush2.bf16.msra.mxu1 %v6151_v19 }
 0x278   :  { %4280 = vmatprep.subr.bf16.mxu1 %v6159_v61 }
 0x27b   :  { %4281 = vmatpush2.bf16.msra.mxu1 %v6157_v31 }
 0x27c   :  { %v7966_v57 = vpop.f32.mrf.mxu0  ;;  %4332 = vmatprep.subr.bf16.mxu1 %v6165_v0 }
 0x27d   :  { %v3364_v46 = vadd.f32 %v7966_v57, %v2598_v38  ;;  %v6160_v57 = vld [vmem:[%s8309_s5 + $0x108] ss:$16 sps:$4 sm:$0xff]   ;;  %v6210_v38 = vld [vmem:[%s8309_s5 + $0x30c] ss:$16 sps:$4 sm:$0xff]  }
 0x27e   :  { %v7971_v41 = vpop.f32.mrf.mxu0 }
 0x27f   :  { %v3366_v45 = vadd.f32 %v7971_v41, %v2602_v27  ;;  %v6224_v27 = vld [vmem:[%s8311_s7 + $0x8] sm:$0xff]  }
 0x280   :  { %v3367_v60 = vpop.f32.mrf.mxu0 }
 0x282   :  { %v3368_v25 = vpop.f32.mrf.mxu0 }
 0x2be   :  { %v3322_v49 = vpop.f32.mrf.mxu1 }
 0x2bf   :  { %v3323_v6 = vadd.f32 %v3322_v49, %v3282_v42  ;;  %v6171_v42 = vld [vmem:[%s8309_s5 + $0x2ac] ss:$16 sps:$4 sm:$0xff]   ;;  %v6169_v49 = vld [vmem:[%s8309_s5 + $0x2a8] ss:$16 sps:$4 sm:$0xff]  }
 0x2c0   :  { %v3324_v4 = vpop.f32.mrf.mxu1 }
 0x2c1   :  { %v3325_v24 = vadd.f32 %v3324_v4, %v3284_v43  ;;  %v3411_v7 = vmax.f32 %v3323_v6, 0.0  ;;  %v6174_v43 = vld [vmem:[%s8309_s5 + $0x28c] ss:$16 sps:$4 sm:$0xff]   ;;  %v6172_v6 = vld [vmem:[%s8309_s5 + $0x288] ss:$16 sps:$4 sm:$0xff]  }
 0x2c2   :  { %v3326_v30 = vpop.f32.mrf.mxu1  ;;  %v6211_v4 = vld [vmem:[%s8311_s7 + $0x78] sm:$0xff]  }
 0x2c3   :  { %v3412_v1 = vmax.f32 %v3325_v24, 0.0  ;;  %v7999_v9 = vpack.c.bf16 %v3411_v7, %v3411_v7  ;;  %v6177_v24 = vld [vmem:[%s8309_s5 + $0x26c] ss:$16 sps:$4 sm:$0xff]   ;;  %v6213_v30 = vld [vmem:[%s8311_s7 + $0x70] sm:$0xff]  }
 0x2c4   :  { %v3327_v14 = vpop.f32.mrf.mxu1  ;;  %v6212_v7 = vld [vmem:[%s8311_s7 + $0x38] sm:$0xff]  }
 0x2c5   :  { %v3416_v5 = vpack.c.bf16 %v3412_v1, %v3412_v1  ;;  %v6214_v1 = vld [vmem:[%s8311_s7 + $0x30] sm:$0xff]   ;;  %v6215_v14 = vld [vmem:[%s8311_s7 + $0x68] sm:$0xff]  }
 0x2c7   :  { %4241 = vmatprep.mubr.bf16.mxu0 %v3416_v5 }
 0x2c8   :  { %4242 = vmatmul.mubr.bf16.vlgmr.msra.gmra.mxu0 %v7999_v9 }
 0x2c9   :  { %4292 = vmatpush1.bf16.msra.mxu0 %v6070_v63  ;;  %4323 = vmatprep.mubr.bf16.mxu0 %v3416_v5  ;;  %v6175_v5 = vld [vmem:[%s8309_s5 + $0x268] ss:$16 sps:$4 sm:$0xff]   ;;  %v6180_v63 = vld [vmem:[%s8309_s5 + $0x24c] ss:$16 sps:$4 sm:$0xff]  }
 0x2ca   :  { %4293 = vmatprep.subr.bf16.mxu0 %v6078_v56  ;;  %v6178_v56 = vld [vmem:[%s8309_s5 + $0x248] ss:$16 sps:$4 sm:$0xff]  }
 0x2cd   :  { %4294 = vmatpush1.bf16.msra.mxu0 %v6076_v55  ;;  %v6217_v55 = vld [vmem:[%s8311_s7 + $0x60] sm:$0xff]  }
 0x2ce   :  { %4295 = vmatprep.subr.bf16.mxu0 %v6084_v10  ;;  %v6183_v10 = vld [vmem:[%s8309_s5 + $0x22c] ss:$16 sps:$4 sm:$0xff]  }
 0x2d1   :  { %4296 = vmatpush1.bf16.msra.mxu0 %v6082_v44  ;;  %v6218_v44 = vld [vmem:[%s8311_s7 + $0x20] sm:$0xff]  }
 0x2d2   :  { %4297 = vmatprep.subr.bf16.mxu0 %v6090_v48  ;;  %v6219_v48 = vld [vmem:[%s8311_s7 + $0x58] sm:$0xff]  }
 0x2d5   :  { %4298 = vmatpush1.bf16.msra.mxu0 %v6088_v47  ;;  %v6181_v47 = vld [vmem:[%s8309_s5 + $0x228] ss:$16 sps:$4 sm:$0xff]  }
 0x2d6   :  { %4299 = vmatprep.subr.bf16.mxu0 %v6096_v11  ;;  %v6186_v11 = vld [vmem:[%s8309_s5 + $0x20c] ss:$16 sps:$4 sm:$0xff]  }
 0x2d9   :  { %4300 = vmatpush1.bf16.msra.mxu0 %v6094_v12  ;;  %v6220_v12 = vld [vmem:[%s8311_s7 + $0x18] sm:$0xff]  }
 0x2da   :  { %4301 = vmatprep.subr.bf16.mxu0 %v6102_v28  ;;  %v6221_v28 = vld [vmem:[%s8311_s7 + $0x50] sm:$0xff]  }
 0x2dd   :  { %4302 = vmatpush1.bf16.msra.mxu0 %v6100_v13  ;;  %v6184_v13 = vld [vmem:[%s8309_s5 + $0x208] ss:$16 sps:$4 sm:$0xff]  }
 0x2de   :  { %4303 = vmatprep.subr.bf16.mxu0 %v6108_v39  ;;  %v6189_v39 = vld [vmem:[%s8309_s5 + $0x3ec] ss:$16 sps:$4 sm:$0xff]  }
 0x2e1   :  { %4304 = vmatpush1.bf16.msra.mxu0 %v6106_v62  ;;  %v6222_v62 = vld [vmem:[%s8311_s7 + $0x10] sm:$0xff]  }
 0x2e2   :  { %4305 = vmatprep.subr.bf16.mxu0 %v6114_v17  ;;  %v6187_v17 = vld [vmem:[%s8309_s5 + $0x3e8] ss:$16 sps:$4 sm:$0xff]  }
 0x2e5   :  { %4306 = vmatpush1.bf16.msra.mxu0 %v6112_v51  ;;  %v6192_v51 = vld [vmem:[%s8309_s5 + $0x3cc] ss:$16 sps:$4 sm:$0xff]  }
 0x2e6   :  { %4307 = vmatprep.subr.bf16.mxu0 %v6120_v20  ;;  %v6190_v20 = vld [vmem:[%s8309_s5 + $0x3c8] ss:$16 sps:$4 sm:$0xff]  }
 0x2e9   :  { %4308 = vmatpush2.bf16.msra.mxu0 %v6118_v18  ;;  %v6195_v18 = vld [vmem:[%s8309_s5 + $0x3ac] ss:$16 sps:$4 sm:$0xff]  }
 0x2ea   :  { %4309 = vmatprep.subr.bf16.mxu0 %v6126_v23  ;;  %v6193_v23 = vld [vmem:[%s8309_s5 + $0x3a8] ss:$16 sps:$4 sm:$0xff]  }
 0x2ed   :  { %4310 = vmatpush2.bf16.msra.mxu0 %v6124_v32  ;;  %v6198_v32 = vld [vmem:[%s8309_s5 + $0x38c] ss:$16 sps:$4 sm:$0xff]  }
 0x2ee   :  { %4311 = vmatprep.subr.bf16.mxu0 %v6132_v33  ;;  %v6196_v33 = vld [vmem:[%s8309_s5 + $0x388] ss:$16 sps:$4 sm:$0xff]  }
 0x2f1   :  { %4312 = vmatpush2.bf16.msra.mxu0 %v6130_v34  ;;  %v6201_v34 = vld [vmem:[%s8309_s5 + $0x36c] ss:$16 sps:$4 sm:$0xff]  }
 0x2f2   :  { %4313 = vmatprep.subr.bf16.mxu0 %v6138_v29  ;;  %v6199_v29 = vld [vmem:[%s8309_s5 + $0x368] ss:$16 sps:$4 sm:$0xff]  }
 0x2f5   :  { %4314 = vmatpush2.bf16.msra.mxu0 %v6136_v8  ;;  %v6204_v8 = vld [vmem:[%s8309_s5 + $0x34c] ss:$16 sps:$4 sm:$0xff]  }
 0x2f6   :  { %4315 = vmatprep.subr.bf16.mxu0 %v6144_v58  ;;  %v6202_v58 = vld [vmem:[%s8309_s5 + $0x348] ss:$16 sps:$4 sm:$0xff]  }
 0x2f9   :  { %4316 = vmatpush2.bf16.msra.mxu0 %v6142_v35  ;;  %v6207_v35 = vld [vmem:[%s8309_s5 + $0x32c] ss:$16 sps:$4 sm:$0xff]  }
 0x2fa   :  { %4317 = vmatprep.subr.bf16.mxu0 %v6150_v36  ;;  %v6205_v36 = vld [vmem:[%s8309_s5 + $0x328] ss:$16 sps:$4 sm:$0xff]  }
 0x2fd   :  { %4318 = vmatpush2.bf16.msra.mxu0 %v6148_v40  ;;  %v6208_v40 = vld [vmem:[%s8309_s5 + $0x308] ss:$16 sps:$4 sm:$0xff]  }
 0x2fe   :  { %v3404_v52 = vpop.f32.mrf.mxu1  ;;  %4319 = vmatprep.subr.bf16.mxu0 %v6156_v26  ;;  %v6223_v26 = vld [vmem:[%s8311_s7 + $0x48] sm:$0xff]  }
 0x2ff   :  { %v3405_v54 = vadd.f32 %v3404_v52, %v3364_v46  ;;  %v6225_v46 = vld [vmem:[%s8311_s7 + $0x40] sm:$0xff]   ;;  %v6227_v52 = vld [vmem:[%s8311_s7 + $0xf8] sm:$0xff]  }
 0x300   :  { %v3406_v59 = vpop.f32.mrf.mxu1 }
 0x301   :  { %v3407_v19 = vadd.f32 %v3406_v59, %v3366_v45  ;;  %4320 = vmatpush2.bf16.msra.mxu0 %v6154_v50  ;;  %v3413_v60 = vmax.f32 %v3405_v54, 0.0  ;;  %v6226_v50 = vld [vmem:[%s8311_s7] sm:$0xff]   ;;  %v6229_v45 = vld [vmem:[%s8311_s7 + $0xf0] sm:$0xff]   ;;  %v6231_v59 = vld [vmem:[%s8311_s7 + $0xe8] sm:$0xff]  }
 0x302   :  { %v3408_v61 = vpop.f32.mrf.mxu1  ;;  %4321 = vmatprep.subr.bf16.mxu0 %v6162_v53  ;;  %v6228_v53 = vld [vmem:[%s8311_s7 + $0xb8] sm:$0xff]   ;;  %v6230_v54 = vld [vmem:[%s8311_s7 + $0xb0] sm:$0xff]  }
 0x303   :  { %v3414_v25 = vmax.f32 %v3407_v19, 0.0  ;;  %v8101_v41 = vpack.c.bf16 %v3413_v60, %v3413_v60  ;;  %v6232_v19 = vld [vmem:[%s8311_s7 + $0xa8] sm:$0xff]   ;;  %v6234_v60 = vld [vmem:[%s8311_s7 + $0xa0] sm:$0xff]   ;;  %v6235_v61 = vld [vmem:[%s8311_s7 + $0xd8] sm:$0xff]  }
 0x304   :  { %v3409_v31 = vpop.f32.mrf.mxu1 }
 0x305   :  { %v3418_v0 = vpack.c.bf16 %v3414_v25, %v3414_v25  ;;  %4322 = vmatpush2.bf16.msra.mxu0 %v6160_v57  ;;  %v6233_v57 = vld [vmem:[%s8311_s7 + $0xe0] sm:$0xff]   ;;  %v6236_v25 = vld [vmem:[%s8311_s7 + $0x98] sm:$0xff]   ;;  %v6237_v31 = vld [vmem:[%s8311_s7 + $0xd0] sm:$0xff]  }
 0x306   :  { %5324 = vmatprep.subr.bf16.mxu0 %v6211_v4  ;;  %v3547_v4 = vld [vmem:[%s8312_s6] sm:$0xf] }
 0x307   :  { %4282 = vmatprep.mubr.bf16.mxu1 %v3418_v0 }
 0x308   :  { %4283 = vmatmul.mubr.bf16.vlgmr.msra.gmra.mxu1 %v8101_v41  ;;  %4324 = vmatmul.mubr.bf16.vlgmr.msra.gmra.mxu0 %v7999_v9  ;;  %v6216_v9 = vld [vmem:[%s8311_s7 + $0x28] sm:$0xff]  }
 0x309   :  { %4333 = vmatpush1.bf16.msra.mxu1 %v6163_v37  ;;  %4364 = vmatprep.mubr.bf16.mxu1 %v3418_v0  ;;  %v6238_v0 = vld [vmem:[%s8311_s7 + $0x90] sm:$0xff]  }
 0x30a   :  { %4334 = vmatprep.subr.bf16.mxu1 %v6168_v15  ;;  %5325 = vmatpush3.bf16.msra.mxu0 %v6212_v7  ;;  %v6240_v15 = vld [vmem:[%s8311_s7 + $0x88] sm:$0xff]   ;;  %v3556_v7 = vrot.slane %v3547_v4, %v7486_v22  ;;  %v3564_v22 = vrot.slane %v3547_v4, %v7676_v16  ;;  %v5291_v16 = vld [vmem:[%s8313_s8] ss:$0 sm:$0xff] }
 0x30b   :  { %5326 = vmatprep.subr.bf16.mxu0 %v6213_v30 }
 0x30d   :  { %4335 = vmatpush1.bf16.msra.mxu1 %v6166_v2 }
 0x30e   :  { %4336 = vmatprep.subr.bf16.mxu1 %v6171_v42  ;;  %5327 = vmatpush3.bf16.msra.mxu0 %v6214_v1 }
 0x30f   :  { %5328 = vmatprep.subr.bf16.mxu0 %v6215_v14 }
 0x311   :  { %4337 = vmatpush1.bf16.msra.mxu1 %v6169_v49  ;;  %v6241_v49 = vld [vmem:[%s8311_s7 + $0xc0] sm:$0xff]  }
 0x312   :  { %4338 = vmatprep.subr.bf16.mxu1 %v6174_v43  ;;  %5329 = vmatpush3.bf16.msra.mxu0 %v6216_v9  ;;  %v6242_v43 = vld [vmem:[%s8311_s7 + $0x80] sm:$0xff]  }
 0x313   :  { %5330 = vmatprep.subr.bf16.mxu0 %v6217_v55 }
 0x315   :  { %4339 = vmatpush1.bf16.msra.mxu1 %v6172_v6 }
 0x316   :  { %4340 = vmatprep.subr.bf16.mxu1 %v6177_v24  ;;  %5331 = vmatpush3.bf16.msra.mxu0 %v6218_v44  ;;  %v3552_v24 = vrot.slane %v3547_v4, %v7483_v3  ;;  %v3560_v3 = vrot.slane %v3547_v4, %v7673_v21 }
 0x317   :  { %5332 = vmatprep.subr.bf16.mxu0 %v6219_v48 }
 0x319   :  { %4341 = vmatpush1.bf16.msra.mxu1 %v6175_v5 }
 0x31a   :  { %4342 = vmatprep.subr.bf16.mxu1 %v6180_v63  ;;  %5333 = vmatpush3.bf16.msra.mxu0 %v6220_v12 }
 0x31b   :  { %5334 = vmatprep.subr.bf16.mxu0 %v6221_v28 }
 0x31d   :  { %4343 = vmatpush1.bf16.msra.mxu1 %v6178_v56 }
 0x31e   :  { %4344 = vmatprep.subr.bf16.mxu1 %v6183_v10  ;;  %5335 = vmatpush3.bf16.msra.mxu0 %v6222_v62 }
 0x31f   :  { %5336 = vmatprep.subr.bf16.mxu0 %v6223_v26 }
 0x321   :  { %4345 = vmatpush1.bf16.msra.mxu1 %v6181_v47 }
 0x322   :  { %4346 = vmatprep.subr.bf16.mxu1 %v6186_v11  ;;  %5337 = vmatpush3.bf16.msra.mxu0 %v6224_v27 }
 0x323   :  { %5338 = vmatprep.subr.bf16.mxu0 %v6225_v46 }
 0x325   :  { %4347 = vmatpush1.bf16.msra.mxu1 %v6184_v13 }
 0x326   :  { %4348 = vmatprep.subr.bf16.mxu1 %v6189_v39  ;;  %5339 = vmatpush3.bf16.msra.mxu0 %v6226_v50 }
 0x329   :  { %4349 = vmatpush2.bf16.msra.mxu1 %v6187_v17 }
 0x32a   :  { %4350 = vmatprep.subr.bf16.mxu1 %v6192_v51 }
 0x32d   :  { %4351 = vmatpush2.bf16.msra.mxu1 %v6190_v20 }
 0x32e   :  { %4352 = vmatprep.subr.bf16.mxu1 %v6195_v18 }
 0x331   :  { %4353 = vmatpush2.bf16.msra.mxu1 %v6193_v23 }
 0x332   :  { %4354 = vmatprep.subr.bf16.mxu1 %v6198_v32 }
 0x335   :  { %4355 = vmatpush2.bf16.msra.mxu1 %v6196_v33 }
 0x336   :  { %4356 = vmatprep.subr.bf16.mxu1 %v6201_v34 }
 0x339   :  { %4357 = vmatpush2.bf16.msra.mxu1 %v6199_v29 }
 0x33a   :  { %4358 = vmatprep.subr.bf16.mxu1 %v6204_v8 }
 0x33d   :  { %4359 = vmatpush2.bf16.msra.mxu1 %v6202_v58 }
 0x33e   :  { %4360 = vmatprep.subr.bf16.mxu1 %v6207_v35 }
 0x341   :  { %4361 = vmatpush2.bf16.msra.mxu1 %v6205_v36 }
 0x342   :  { %4362 = vmatprep.subr.bf16.mxu1 %v6210_v38 }
 0x345   :  { %4363 = vmatpush2.bf16.msra.mxu1 %v6208_v40 }
 0x346   :  { %5346 = vmatprep.subr.bf16.mxu1 %v6227_v52 }
 0x348   :  { %4365 = vmatmul.mubr.bf16.vlgmr.msra.gmra.mxu1 %v8101_v41  ;;  %v6239_v41 = vld [vmem:[%s8311_s7 + $0xc8] sm:$0xff]  }
 0x349   :  { %5347 = vmatpush3.bf16.msra.mxu1 %v6228_v53 }
 0x34a   :  { %5348 = vmatprep.subr.bf16.mxu1 %v6229_v45 }
 0x34d   :  { %5349 = vmatpush3.bf16.msra.mxu1 %v6230_v54 }
 0x34e   :  { %5350 = vmatprep.subr.bf16.mxu1 %v6231_v59 }
 0x351   :  { %5351 = vmatpush3.bf16.msra.mxu1 %v6232_v19 }
 0x352   :  { %5352 = vmatprep.subr.bf16.mxu1 %v6233_v57 }
 0x355   :  { %5353 = vmatpush3.bf16.msra.mxu1 %v6234_v60 }
 0x356   :  { %5354 = vmatprep.subr.bf16.mxu1 %v6235_v61 }
 0x359   :  { %5355 = vmatpush3.bf16.msra.mxu1 %v6236_v25 }
 0x35a   :  { %5356 = vmatprep.subr.bf16.mxu1 %v6237_v31 }
 0x35d   :  { %5357 = vmatpush3.bf16.msra.mxu1 %v6238_v0 }
 0x35e   :  { %5358 = vmatprep.subr.bf16.mxu1 %v6239_v41 }
 0x361   :  { %5359 = vmatpush3.bf16.msra.mxu1 %v6240_v15 }
 0x362   :  { %5360 = vmatprep.subr.bf16.mxu1 %v6241_v49 }
 0x365   :  { %5361 = vmatpush3.bf16.msra.mxu1 %v6242_v43 }
 0x388   :  { %v4243_v37 = vpop.f32.mrf.mxu0 }
 0x389   :  { %v4244_v30 = vadd.f32 %v4243_v37, %v3552_v24 }
 0x38a   :  { %v4245_v2 = vpop.f32.mrf.mxu0 }
 0x38b   :  { %v4246_v5 = vadd.f32 %v4245_v2, %v3556_v7 }
 0x38c   :  { %v4247_v42 = vpop.f32.mrf.mxu0 }
 0x38e   :  { %v4248_v6 = vpop.f32.mrf.mxu0 }
 0x3c8   :  { %v4284_v1 = vpop.f32.mrf.mxu1  ;;  %v4325_v14 = vpop.f32.mrf.mxu0 }
 0x3c9   :  { %v4285_v63 = vadd.f32 %v4284_v1, %v4244_v30  ;;  %v4326_v39 = vadd.f32 %v4325_v14, %v3560_v3 }
 0x3ca   :  { %v4286_v9 = vpop.f32.mrf.mxu1  ;;  %v4327_v56 = vpop.f32.mrf.mxu0 }
 0x3cb   :  { %v4287_v55 = vadd.f32 %v4286_v9, %v4246_v5  ;;  %v4373_v10 = vmax.f32 %v4285_v63, 0.0  ;;  %v4328_v17 = vadd.f32 %v4327_v56, %v3564_v22 }
 0x3cc   :  { %v4288_v44 = vpop.f32.mrf.mxu1  ;;  %v4329_v48 = vpop.f32.mrf.mxu0 }
 0x3cd   :  { %v4374_v47 = vmax.f32 %v4287_v55, 0.0  ;;  %v4377_v13 = vpack.c.bf16 %v4373_v10, %v4373_v10 }
 0x3ce   :  { %v4289_v11 = vpop.f32.mrf.mxu1  ;;  %v4330_v12 = vpop.f32.mrf.mxu0 }
 0x3cf   :  { %v4378_v28 = vpack.c.bf16 %v4374_v47, %v4374_v47 }
 0x3d1   :  { %4676 = vmatprep.mubr.bf16.mxu0 %v4378_v28 }
 0x3d2   :  { %4677 = vmatmul.mubr.bf16.vlgmr.msra.gmra.mxu0 %v4377_v13 }
 0x408   :  { %v4366_v62 = vpop.f32.mrf.mxu1 }
 0x409   :  { %v4367_v51 = vadd.f32 %v4366_v62, %v4326_v39 }
 0x40a   :  { %v4368_v20 = vpop.f32.mrf.mxu1 }
 0x40b   :  { %v4369_v18 = vadd.f32 %v4368_v20, %v4328_v17  ;;  %v4375_v23 = vmax.f32 %v4367_v51, 0.0 }
 0x40c   :  { %v4370_v32 = vpop.f32.mrf.mxu1 }
 0x40d   :  { %v4376_v33 = vmax.f32 %v4369_v18, 0.0  ;;  %v4379_v8 = vpack.c.bf16 %v4375_v23, %v4375_v23 }
 0x40e   :  { %v4371_v34 = vpop.f32.mrf.mxu1 }
 0x40f   :  { %v4380_v29 = vpack.c.bf16 %v4376_v33, %v4376_v33 }
 0x411   :  { %4716 = vmatprep.mubr.bf16.mxu1 %v4380_v29 }
 0x412   :  { %4717 = vmatmul.mubr.bf16.vlgmr.msra.gmra.mxu1 %v4379_v8 }
 0x492   :  { %v5340_v58 = vpop.f32.mrf.mxu0 }
 0x494   :  { %v5341_v35 = vpop.f32.mrf.mxu0 }
 0x495   :  { %v5342_v38 = vadd.f32 %v5341_v35, %v5340_v58 }
 0x496   :  { %v5343_v36 = vpop.f32.mrf.mxu0 }
 0x497   :  { %v4679_v27 = vadd.f32 %v5342_v38, %v5291_v16 }
 0x498   :  { %v5344_v21 = vpop.f32.mrf.mxu0 }
 0x4d2   :  { %v5362_v40 = vpop.f32.mrf.mxu1 }
 0x4d4   :  { %v5363_v26 = vpop.f32.mrf.mxu1 }
 0x4d5   :  { %v5364_v46 = vadd.f32 %v5363_v26, %v5362_v40 }
 0x4d6   :  { %v5365_v50 = vpop.f32.mrf.mxu1 }
 0x4d7   :  { %v4719_v52 = vadd.f32 %v5364_v46, %v4679_v27 }
 0x4d8   :  { %v5366_v53 = vpop.f32.mrf.mxu1 }
 0x4d9   :  { %4724 = vst [vmem:[%s8314_s9] sm:$0xff] %v4719_v52 }

</bundles_post_ra>
